<compile_context>
chip_gen: v5e
topology: v5e:2x2
jax: 0.10.0
libtpu: 0.0.40
codegen_flags: <defaults>
</compile_context>

<pallas_src>
import jax
import jax.numpy as jnp
from jax import lax
from jax.experimental import pallas as pl
from jax.experimental.pallas import tpu as pltpu

# Model hyperparameters (consistent with StackedLstm.__init__)
INPUT_SIZE = 16
LAYER_NUM = 2
HIDDEN_SIZE = 32
SEQ_LENGTH = 8
BATCH = 2

_VMEM = pl.BlockSpec(memory_space=pltpu.MemorySpace.VMEM)

# Gate-column block order inside the packed 8H axis: [f | i | o | g], each 2H wide and internally
# [fwd | bwd].  PyTorch's order is [i f g o]; this permutation maps our block order -> theirs.
_GATE_PERM = (1, 0, 3, 2)   # -> f, i, o, g


# ---------------------------------------------------------------- kernel -----

def make_fused_kernel(num_layers, seq_len, hidden, batch):
    T, H, B = seq_len, hidden, batch
    H2, H4, H6 = 2 * H, 4 * H, 6 * H
    f32 = jnp.float32

    def lstm_step(gin, h_cat, c_cat, wh):
        # One fused bidirectional step: both directions' gates in one (B,2H)@(2H,8H) matmul
        # against the block-diagonal recurrent weight.
        gates = gin + jnp.dot(h_cat, wh, preferred_element_type=f32)
        # Nonlinearities only on the lanes that need them (columns are [f|i|o|g]):
        sig = jax.nn.sigmoid(gates[:, :H6])      # f, i, o  (contiguous 6H lanes)
        g = jnp.tanh(gates[:, H6:])              # g only   (trailing 2H lanes)
        # Lane alignment: f@0 with c@0, i@64 with g@64, o@0 with tanh(c)@0.
        c_cat = sig[:, :H2] * c_cat + sig[:, H2:H4] * g
        h_cat = sig[:, H4:H6] * jnp.tanh(c_cat)
        return h_cat, c_cat

    def kernel(*refs):
        xp_ref = refs[0]
        layer_refs = refs[1:1 + 3 * num_layers]
        wlin_ref = refs[1 + 3 * num_layers]
        blin_ref = refs[2 + 3 * num_layers]
        o_ref = refs[3 + 3 * num_layers]
        gin_ref = refs[4 + 3 * num_layers]       # VMEM scratch (T*B, 8H): batched projections
        pair_ref = refs[5 + 3 * num_layers]      # VMEM scratch (T*B, 4H): next-layer pair input

        src_ref = xp_ref                         # projection input of the current layer
        acc = None
        for l in range(num_layers):
            wx = layer_refs[3 * l][...]          # (D_pair, 8H), gate-interleaved columns
            wh = layer_refs[3 * l + 1][...]      # (2H, 8H), block-diagonal over direction
            b = layer_refs[3 * l + 2][...]       # (1, 8H)

            # Batched input projection: ONE MXU call covers all T steps of both directions,
            # staged to VMEM scratch so nothing long-lived sits in vregs.
            gin_ref[...] = jnp.dot(src_ref[...], wx, preferred_element_type=f32) + b

            h_cat = jnp.zeros((B, H2), f32)      # [h_fwd | h_bwd]
            c_cat = jnp.zeros((B, H2), f32)
            last = (l == num_layers - 1)
            if last:
                acc = jnp.zeros((B, 2), f32) + blin_ref[...]
            for s in range(T):
                h_cat, c_cat = lstm_step(gin_ref[pl.ds(s * B, B), :], h_cat, c_cat, wh)
                if last:
                    # Final linear folded into the recurrence (off the serial h->c->h chain).
                    acc = acc + jnp.dot(h_cat, wlin_ref[s], preferred_element_type=f32)
                else:
                    # Stage next layer's pair input: pair[s] = [h_cat[s] | h_cat[T-1-s]]
                    #   = [h_fwd[s] | h_bwd[T-1-s] | h_fwd[T-1-s] | h_bwd[s]]
                    pair_ref[pl.ds(s * B, B), pl.ds(0, H2)] = h_cat
                    pair_ref[pl.ds((T - 1 - s) * B, B), pl.ds(H2, H2)] = h_cat
            src_ref = pair_ref

        o_ref[...] = acc

    return kernel


# --------------------------------------------------------------- wrapper -----

def stacked_lstm_forward(x, packed):
    B = x.shape[0]
    x = x.reshape(B, SEQ_LENGTH, INPUT_SIZE).astype(jnp.float32)
    # Per-step (fwd, bwd) pair input, built once outside the kernel (tiny):
    #   xp[s*B + b] = [x[b, s], x[b, T-1-s]]
    xt = jnp.transpose(x, (1, 0, 2))                        # (T, B, D0)
    xp = jnp.concatenate([xt, xt[::-1]], axis=-1)           # (T, B, 2*D0)
    xp = xp.reshape(SEQ_LENGTH * B, 2 * INPUT_SIZE)

    args = [xp]
    for wx, wh, b in packed["layers"]:
        args += [wx, wh, b]
    args += [packed["wlin"], packed["blin"]]

    kernel = make_fused_kernel(LAYER_NUM, SEQ_LENGTH, HIDDEN_SIZE, B)
    return pl.pallas_call(
        kernel,
        out_shape=jax.ShapeDtypeStruct((B, 2), jnp.float32),
        in_specs=[_VMEM] * len(args),
        out_specs=_VMEM,
        scratch_shapes=[
            pltpu.VMEM((SEQ_LENGTH * B, 8 * HIDDEN_SIZE), jnp.float32),   # gin (projections)
            pltpu.VMEM((SEQ_LENGTH * B, 4 * HIDDEN_SIZE), jnp.float32),   # pair (layer handoff)
        ],
    )(*args)


# -------------------------------------------------------------- params -------

def init_params(key):
    """Raw PyTorch-convention parameters."""
    k = 1.0 / (HIDDEN_SIZE ** 0.5)
    keys = iter(jax.random.split(key, 64))

    def u(shape, bound):
        return jax.random.uniform(next(keys), shape, jnp.float32, -bound, bound)

    params = {"conv_w": u((1,), 1.0), "conv_b": u((1,), 1.0), "lstm": []}
    for l in range(LAYER_NUM):
        d_in = INPUT_SIZE if l == 0 else 2 * HIDDEN_SIZE
        layer = []
        for _d in range(2):                       # forward, backward
            layer.append({
                "w_ih": u((4 * HIDDEN_SIZE, d_in), k),
                "w_hh": u((4 * HIDDEN_SIZE, HIDDEN_SIZE), k),
                "b_ih": u((4 * HIDDEN_SIZE,), k),
                "b_hh": u((4 * HIDDEN_SIZE,), k),
            })
        params["lstm"].append(layer)
    fan_in = HIDDEN_SIZE * SEQ_LENGTH * 2
    kl = 1.0 / (fan_in ** 0.5)
    params["lin_w"] = u((2, fan_in), kl)
    params["lin_b"] = u((2,), kl)
    return params


def _gate_cols(w4_fwd, w4_bwd, H):
    """Interleave per-gate column blocks into [f_f f_b i_f i_b o_f o_b g_f g_b].

    w4_fwd / w4_bwd: (R, 4H) with PyTorch gate order [i f g o] along columns, or None (zeros).
    """
    ref = w4_fwd if w4_fwd is not None else w4_bwd
    z = jnp.zeros((ref.shape[0], H), jnp.float32)
    cols = []
    for g in _GATE_PERM:                                  # f, i, o, g
        cols.append(z if w4_fwd is None else w4_fwd[:, g * H:(g + 1) * H])
        cols.append(z if w4_bwd is None else w4_bwd[:, g * H:(g + 1) * H])
    return jnp.concatenate(cols, axis=1)


def pack_params(p):
    """Repack raw params into the fused-kernel layout (done once, outside the kernel)."""
    H, T = HIDDEN_SIZE, SEQ_LENGTH
    layers = []
    for l in range(LAYER_NUM):
        pf, pb = p["lstm"][l]
        wtf, wtb = pf["w_ih"].T, pb["w_ih"].T              # (D_in, 4H)
        if l == 0:
            # Layer 0 consumes x-pairs [x[s] | x[T-1-s]]: fwd weights in rows 0:D0 (fwd gate
            # columns only), bwd weights in rows D0:2*D0 (bwd gate columns only).
            wx = jnp.concatenate([_gate_cols(wtf, None, H),
                                  _gate_cols(None, wtb, H)], axis=0)          # (2*D0, 8H)
        else:
            # Layer l>0 consumes h-pairs [h_fwd[s] | h_bwd[T-1-s] | h_fwd[T-1-s] | h_bwd[s]]
            # staged by the previous layer's recurrence -> no realignment needed in-kernel.
            wx = jnp.concatenate([
                _gate_cols(wtf[:H], None, H),        # rows 0:H    h_fwd[s]      -> fwd gates
                _gate_cols(None, wtb[H:], H),        # rows H:2H   h_bwd[T-1-s]  -> bwd gates
                _gate_cols(None, wtb[:H], H),        # rows 2H:3H  h_fwd[T-1-s]  -> bwd gates
                _gate_cols(wtf[H:], None, H),        # rows 3H:4H  h_bwd[s]      -> fwd gates
            ], axis=0)                                                        # (4H, 8H)
        # Block-diagonal recurrent weight over direction, same column layout.
        wh = jnp.concatenate([_gate_cols(pf["w_hh"].T, None, H),
                              _gate_cols(None, pb["w_hh"].T, H)], axis=0)     # (2H, 8H)
        b = _gate_cols((pf["b_ih"] + pf["b_hh"])[None, :],
                       (pb["b_ih"] + pb["b_hh"])[None, :], H)                 # (1, 8H)
        if l == 0:
            # Exact fold of the 1x1 conv (y = cw*x + cb) into layer-0 input weights/bias.
            cw, cb = p["conv_w"][0], p["conv_b"][0]
            b = b + cb * jnp.sum(wx, axis=0, keepdims=True)
            wx = cw * wx
        layers.append((wx.astype(jnp.float32), wh.astype(jnp.float32), b.astype(jnp.float32)))

    # Final linear, pre-aligned to the last layer's step index s:
    #   W_s = [Wlin[s][:H] ; Wlin[T-1-s][H:2H]]  so that  acc += h_cat[s] @ W_s.
    wlT = p["lin_w"].T.reshape(T, 2 * H, 2)
    wlin = jnp.stack([jnp.concatenate([wlT[s, :H, :], wlT[T - 1 - s, H:, :]], axis=0)
                      for s in range(T)], axis=0)                             # (T, 2H, 2)
    blin = p["lin_b"].reshape(1, 2)
    return {"layers": layers, "wlin": wlin.astype(jnp.float32),
            "blin": blin.astype(jnp.float32)}


# ------------------------------------------------------------- reference -----

def _lstm_dir_ref(x_btd, w_ih, w_hh, b_ih, b_hh, reverse):
    H = w_hh.shape[1]
    B = x_btd.shape[0]
    xs = jnp.transpose(x_btd, (1, 0, 2))
    if reverse:
        xs = xs[::-1]
    wiT, whT, b = w_ih.T, w_hh.T, (b_ih + b_hh)[None, :]

    def step(carry, x_t):
        h, c = carry
        gates = x_t @ wiT + h @ whT + b
        i = jax.nn.sigmoid(gates[:, :H])
        f = jax.nn.sigmoid(gates[:, H:2 * H])
        g = jnp.tanh(gates[:, 2 * H:3 * H])
        o = jax.nn.sigmoid(gates[:, 3 * H:])
        c = f * c + i * g
        h = o * jnp.tanh(c)
        return (h, c), h

    z = jnp.zeros((B, H), jnp.float32)
    _, hs = lax.scan(step, (z, z), xs)
    if reverse:
        hs = hs[::-1]
    return jnp.transpose(hs, (1, 0, 2))


def forward_ref(x, params):
    B = x.shape[0]
    h = (x.reshape(B, SEQ_LENGTH, INPUT_SIZE).astype(jnp.float32)
         * params["conv_w"][0] + params["conv_b"][0])
    for l in range(LAYER_NUM):
        pf, pb = params["lstm"][l]
        of = _lstm_dir_ref(h, pf["w_ih"], pf["w_hh"], pf["b_ih"], pf["b_hh"], False)
        ob = _lstm_dir_ref(h, pb["w_ih"], pb["w_hh"], pb["b_ih"], pb["b_hh"], True)
        h = jnp.concatenate([of, ob], axis=-1)
    flat = h.reshape(B, SEQ_LENGTH * 2 * HIDDEN_SIZE)
    return flat @ params["lin_w"].T + params["lin_b"][None, :]


# ----------------------------------------------------------------- main ------

if __name__ == "__main__":
    key = jax.random.PRNGKey(0)
    pkey, xkey = jax.random.split(key)
    params = init_params(pkey)
    packed = pack_params(params)
    x = jax.random.normal(xkey, (BATCH, SEQ_LENGTH, INPUT_SIZE), jnp.float32)

    fwd = jax.jit(stacked_lstm_forward)
    out = jax.block_until_ready(fwd(x, packed))
    assert out.shape == (BATCH, 2), out.shape

    ref = jax.block_until_ready(forward_ref(x, params))
    assert jnp.allclose(out, ref, rtol=1e-3, atol=1e-3), (out, ref)

    print("KERNEL_OK")
</pallas_src>

<mosaic_0001>
module attributes {stable_mosaic.version = 11 : i64} {
  func.func @kernel(%arg0: memref<16x32xf32, #tpu.memory_space<vmem>>, %arg1: memref<32x256xf32, #tpu.memory_space<vmem>>, %arg2: memref<64x256xf32, #tpu.memory_space<vmem>>, %arg3: memref<1x256xf32, #tpu.memory_space<vmem>>, %arg4: memref<128x256xf32, #tpu.memory_space<vmem>>, %arg5: memref<64x256xf32, #tpu.memory_space<vmem>>, %arg6: memref<1x256xf32, #tpu.memory_space<vmem>>, %arg7: memref<8x64x2xf32, #tpu.memory_space<vmem>>, %arg8: memref<1x2xf32, #tpu.memory_space<vmem>>, %arg9: memref<2x2xf32, #tpu.memory_space<vmem>>, %arg10: memref<16x256xf32, #tpu.memory_space<vmem>>, %arg11: memref<16x128xf32, #tpu.memory_space<vmem>>) attributes {dimension_semantics = [], scalar_prefetch = 0 : i64, scratch_operands = 2 : i64, tpu.core_type = #tpu.core_type<tc>} {
    %c0 = arith.constant 0 : index
    %c0_0 = arith.constant 0 : index
    %0 = vector.load %arg1[%c0, %c0_0] : memref<32x256xf32, #tpu.memory_space<vmem>>, vector<32x256xf32>
    %c0_1 = arith.constant 0 : index
    %c0_2 = arith.constant 0 : index
    %1 = vector.load %arg2[%c0_1, %c0_2] : memref<64x256xf32, #tpu.memory_space<vmem>>, vector<64x256xf32>
    %c0_3 = arith.constant 0 : index
    %c0_4 = arith.constant 0 : index
    %2 = vector.load %arg3[%c0_3, %c0_4] : memref<1x256xf32, #tpu.memory_space<vmem>>, vector<1x256xf32>
    %c0_5 = arith.constant 0 : index
    %c0_6 = arith.constant 0 : index
    %3 = vector.load %arg0[%c0_5, %c0_6] : memref<16x32xf32, #tpu.memory_space<vmem>>, vector<16x32xf32>
    %cst = arith.constant dense<0.000000e+00> : vector<16x256xf32>
    %4 = tpu.matmul %3, %0, %cst {dimension_numbers = #tpu.dot_dimension_numbers<[1], [0], [0], [1], [0, 0, 1, 1], [], []>} : vector<16x32xf32>, vector<32x256xf32>, vector<16x256xf32> -> vector<16x256xf32>
    %5 = vector.broadcast %2 : vector<1x256xf32> to vector<16x256xf32>
    %6 = arith.addf %4, %5 : vector<16x256xf32>
    %c0_7 = arith.constant 0 : index
    %c0_8 = arith.constant 0 : index
    %7 = vector.load %arg10[%c0_7, %c0_8] : memref<16x256xf32, #tpu.memory_space<vmem>>, vector<16x256xf32>
    tpu.vector_store %arg10[%c0_7, %c0_8], %6 {strides = array<i32>} : memref<16x256xf32, #tpu.memory_space<vmem>>, vector<16x256xf32>,
    %cst_9 = arith.constant 0.000000e+00 : f32
    %8 = vector.broadcast %cst_9 : f32 to vector<2x64xf32>
    %cst_10 = arith.constant 0.000000e+00 : f32
    %9 = vector.broadcast %cst_10 : f32 to vector<2x64xf32>
    %c0_11 = arith.constant 0 : index
    %c0_12 = arith.constant 0 : index
    %10 = vector.load %arg10[%c0_11, %c0_12] : memref<16x256xf32, #tpu.memory_space<vmem>>, vector<2x256xf32>
    %cst_13 = arith.constant dense<0.000000e+00> : vector<2x256xf32>
    %11 = tpu.matmul %8, %1, %cst_13 {dimension_numbers = #tpu.dot_dimension_numbers<[1], [0], [0], [1], [0, 0, 1, 1], [], []>} : vector<2x64xf32>, vector<64x256xf32>, vector<2x256xf32> -> vector<2x256xf32>
    %12 = arith.addf %10, %11 : vector<2x256xf32>
    %13 = vector.extract_strided_slice %12 {offsets = [0, 0], sizes = [2, 192], strides = [1, 1]} : vector<2x256xf32> to vector<2x192xf32>
    %14 = arith.negf %13 : vector<2x192xf32>
    %15 = math.exp %14 : vector<2x192xf32>
    %cst_14 = arith.constant 1.000000e+00 : f32
    %16 = vector.broadcast %cst_14 : f32 to vector<2x192xf32>
    %17 = arith.addf %16, %15 : vector<2x192xf32>
    %18 = arith.divf %16, %17 : vector<2x192xf32>
    %19 = vector.extract_strided_slice %12 {offsets = [0, 192], sizes = [2, 64], strides = [1, 1]} : vector<2x256xf32> to vector<2x64xf32>
    %20 = math.tanh %19 : vector<2x64xf32>
    %21 = vector.extract_strided_slice %18 {offsets = [0, 0], sizes = [2, 64], strides = [1, 1]} : vector<2x192xf32> to vector<2x64xf32>
    %22 = arith.mulf %21, %9 : vector<2x64xf32>
    %23 = vector.extract_strided_slice %18 {offsets = [0, 64], sizes = [2, 64], strides = [1, 1]} : vector<2x192xf32> to vector<2x64xf32>
    %24 = arith.mulf %23, %20 : vector<2x64xf32>
    %25 = arith.addf %22, %24 : vector<2x64xf32>
    %26 = vector.extract_strided_slice %18 {offsets = [0, 128], sizes = [2, 64], strides = [1, 1]} : vector<2x192xf32> to vector<2x64xf32>
    %27 = math.tanh %25 : vector<2x64xf32>
    %28 = arith.mulf %26, %27 : vector<2x64xf32>
    %c0_15 = arith.constant 0 : index
    %c0_16 = arith.constant 0 : index
    %29 = vector.load %arg11[%c0_15, %c0_16] : memref<16x128xf32, #tpu.memory_space<vmem>>, vector<2x64xf32>
    tpu.vector_store %arg11[%c0_15, %c0_16], %28 {strides = array<i32>} : memref<16x128xf32, #tpu.memory_space<vmem>>, vector<2x64xf32>,
    %c14 = arith.constant 14 : index
    %c64 = arith.constant 64 : index
    %30 = vector.load %arg11[%c14, %c64] : memref<16x128xf32, #tpu.memory_space<vmem>>, vector<2x64xf32>
    tpu.vector_store %arg11[%c14, %c64], %28 {strides = array<i32>} : memref<16x128xf32, #tpu.memory_space<vmem>>, vector<2x64xf32>,
    %c2 = arith.constant 2 : index
    %c0_17 = arith.constant 0 : index
    %31 = vector.load %arg10[%c2, %c0_17] : memref<16x256xf32, #tpu.memory_space<vmem>>, vector<2x256xf32>
    %cst_18 = arith.constant dense<0.000000e+00> : vector<2x256xf32>
    %32 = tpu.matmul %28, %1, %cst_18 {dimension_numbers = #tpu.dot_dimension_numbers<[1], [0], [0], [1], [0, 0, 1, 1], [], []>} : vector<2x64xf32>, vector<64x256xf32>, vector<2x256xf32> -> vector<2x256xf32>
    %33 = arith.addf %31, %32 : vector<2x256xf32>
    %34 = vector.extract_strided_slice %33 {offsets = [0, 0], sizes = [2, 192], strides = [1, 1]} : vector<2x256xf32> to vector<2x192xf32>
    %35 = arith.negf %34 : vector<2x192xf32>
    %36 = math.exp %35 : vector<2x192xf32>
    %cst_19 = arith.constant 1.000000e+00 : f32
    %37 = vector.broadcast %cst_19 : f32 to vector<2x192xf32>
    %38 = arith.addf %37, %36 : vector<2x192xf32>
    %39 = arith.divf %37, %38 : vector<2x192xf32>
    %40 = vector.extract_strided_slice %33 {offsets = [0, 192], sizes = [2, 64], strides = [1, 1]} : vector<2x256xf32> to vector<2x64xf32>
    %41 = math.tanh %40 : vector<2x64xf32>
    %42 = vector.extract_strided_slice %39 {offsets = [0, 0], sizes = [2, 64], strides = [1, 1]} : vector<2x192xf32> to vector<2x64xf32>
    %43 = arith.mulf %42, %25 : vector<2x64xf32>
    %44 = vector.extract_strided_slice %39 {offsets = [0, 64], sizes = [2, 64], strides = [1, 1]} : vector<2x192xf32> to vector<2x64xf32>
    %45 = arith.mulf %44, %41 : vector<2x64xf32>
    %46 = arith.addf %43, %45 : vector<2x64xf32>
    %47 = vector.extract_strided_slice %39 {offsets = [0, 128], sizes = [2, 64], strides = [1, 1]} : vector<2x192xf32> to vector<2x64xf32>
    %48 = math.tanh %46 : vector<2x64xf32>
    %49 = arith.mulf %47, %48 : vector<2x64xf32>
    %c2_20 = arith.constant 2 : index
    %c0_21 = arith.constant 0 : index
    %50 = vector.load %arg11[%c2_20, %c0_21] : memref<16x128xf32, #tpu.memory_space<vmem>>, vector<2x64xf32>
    tpu.vector_store %arg11[%c2_20, %c0_21], %49 {strides = array<i32>} : memref<16x128xf32, #tpu.memory_space<vmem>>, vector<2x64xf32>,
    %c12 = arith.constant 12 : index
    %c64_22 = arith.constant 64 : index
    %51 = vector.load %arg11[%c12, %c64_22] : memref<16x128xf32, #tpu.memory_space<vmem>>, vector<2x64xf32>
    tpu.vector_store %arg11[%c12, %c64_22], %49 {strides = array<i32>} : memref<16x128xf32, #tpu.memory_space<vmem>>, vector<2x64xf32>,
    %c4 = arith.constant 4 : index
    %c0_23 = arith.constant 0 : index
    %52 = vector.load %arg10[%c4, %c0_23] : memref<16x256xf32, #tpu.memory_space<vmem>>, vector<2x256xf32>
    %cst_24 = arith.constant dense<0.000000e+00> : vector<2x256xf32>
    %53 = tpu.matmul %49, %1, %cst_24 {dimension_numbers = #tpu.dot_dimension_numbers<[1], [0], [0], [1], [0, 0, 1, 1], [], []>} : vector<2x64xf32>, vector<64x256xf32>, vector<2x256xf32> -> vector<2x256xf32>
    %54 = arith.addf %52, %53 : vector<2x256xf32>
    %55 = vector.extract_strided_slice %54 {offsets = [0, 0], sizes = [2, 192], strides = [1, 1]} : vector<2x256xf32> to vector<2x192xf32>
    %56 = arith.negf %55 : vector<2x192xf32>
    %57 = math.exp %56 : vector<2x192xf32>
    %cst_25 = arith.constant 1.000000e+00 : f32
    %58 = vector.broadcast %cst_25 : f32 to vector<2x192xf32>
    %59 = arith.addf %58, %57 : vector<2x192xf32>
    %60 = arith.divf %58, %59 : vector<2x192xf32>
    %61 = vector.extract_strided_slice %54 {offsets = [0, 192], sizes = [2, 64], strides = [1, 1]} : vector<2x256xf32> to vector<2x64xf32>
    %62 = math.tanh %61 : vector<2x64xf32>
    %63 = vector.extract_strided_slice %60 {offsets = [0, 0], sizes = [2, 64], strides = [1, 1]} : vector<2x192xf32> to vector<2x64xf32>
    %64 = arith.mulf %63, %46 : vector<2x64xf32>
    %65 = vector.extract_strided_slice %60 {offsets = [0, 64], sizes = [2, 64], strides = [1, 1]} : vector<2x192xf32> to vector<2x64xf32>
    %66 = arith.mulf %65, %62 : vector<2x64xf32>
    %67 = arith.addf %64, %66 : vector<2x64xf32>
    %68 = vector.extract_strided_slice %60 {offsets = [0, 128], sizes = [2, 64], strides = [1, 1]} : vector<2x192xf32> to vector<2x64xf32>
    %69 = math.tanh %67 : vector<2x64xf32>
    %70 = arith.mulf %68, %69 : vector<2x64xf32>
    %c4_26 = arith.constant 4 : index
    %c0_27 = arith.constant 0 : index
    %71 = vector.load %arg11[%c4_26, %c0_27] : memref<16x128xf32, #tpu.memory_space<vmem>>, vector<2x64xf32>
    tpu.vector_store %arg11[%c4_26, %c0_27], %70 {strides = array<i32>} : memref<16x128xf32, #tpu.memory_space<vmem>>, vector<2x64xf32>,
    %c10 = arith.constant 10 : index
    %c64_28 = arith.constant 64 : index
    %72 = vector.load %arg11[%c10, %c64_28] : memref<16x128xf32, #tpu.memory_space<vmem>>, vector<2x64xf32>
    tpu.vector_store %arg11[%c10, %c64_28], %70 {strides = array<i32>} : memref<16x128xf32, #tpu.memory_space<vmem>>, vector<2x64xf32>,
    %c6 = arith.constant 6 : index
    %c0_29 = arith.constant 0 : index
    %73 = vector.load %arg10[%c6, %c0_29] : memref<16x256xf32, #tpu.memory_space<vmem>>, vector<2x256xf32>
    %cst_30 = arith.constant dense<0.000000e+00> : vector<2x256xf32>
    %74 = tpu.matmul %70, %1, %cst_30 {dimension_numbers = #tpu.dot_dimension_numbers<[1], [0], [0], [1], [0, 0, 1, 1], [], []>} : vector<2x64xf32>, vector<64x256xf32>, vector<2x256xf32> -> vector<2x256xf32>
    %75 = arith.addf %73, %74 : vector<2x256xf32>
    %76 = vector.extract_strided_slice %75 {offsets = [0, 0], sizes = [2, 192], strides = [1, 1]} : vector<2x256xf32> to vector<2x192xf32>
    %77 = arith.negf %76 : vector<2x192xf32>
    %78 = math.exp %77 : vector<2x192xf32>
    %cst_31 = arith.constant 1.000000e+00 : f32
    %79 = vector.broadcast %cst_31 : f32 to vector<2x192xf32>
    %80 = arith.addf %79, %78 : vector<2x192xf32>
    %81 = arith.divf %79, %80 : vector<2x192xf32>
    %82 = vector.extract_strided_slice %75 {offsets = [0, 192], sizes = [2, 64], strides = [1, 1]} : vector<2x256xf32> to vector<2x64xf32>
    %83 = math.tanh %82 : vector<2x64xf32>
    %84 = vector.extract_strided_slice %81 {offsets = [0, 0], sizes = [2, 64], strides = [1, 1]} : vector<2x192xf32> to vector<2x64xf32>
    %85 = arith.mulf %84, %67 : vector<2x64xf32>
    %86 = vector.extract_strided_slice %81 {offsets = [0, 64], sizes = [2, 64], strides = [1, 1]} : vector<2x192xf32> to vector<2x64xf32>
    %87 = arith.mulf %86, %83 : vector<2x64xf32>
    %88 = arith.addf %85, %87 : vector<2x64xf32>
    %89 = vector.extract_strided_slice %81 {offsets = [0, 128], sizes = [2, 64], strides = [1, 1]} : vector<2x192xf32> to vector<2x64xf32>
    %90 = math.tanh %88 : vector<2x64xf32>
    %91 = arith.mulf %89, %90 : vector<2x64xf32>
    %c6_32 = arith.constant 6 : index
    %c0_33 = arith.constant 0 : index
    %92 = vector.load %arg11[%c6_32, %c0_33] : memref<16x128xf32, #tpu.memory_space<vmem>>, vector<2x64xf32>
    tpu.vector_store %arg11[%c6_32, %c0_33], %91 {strides = array<i32>} : memref<16x128xf32, #tpu.memory_space<vmem>>, vector<2x64xf32>,
    %c8 = arith.constant 8 : index
    %c64_34 = arith.constant 64 : index
    %93 = vector.load %arg11[%c8, %c64_34] : memref<16x128xf32, #tpu.memory_space<vmem>>, vector<2x64xf32>
    tpu.vector_store %arg11[%c8, %c64_34], %91 {strides = array<i32>} : memref<16x128xf32, #tpu.memory_space<vmem>>, vector<2x64xf32>,
    %c8_35 = arith.constant 8 : index
    %c0_36 = arith.constant 0 : index
    %94 = vector.load %arg10[%c8_35, %c0_36] : memref<16x256xf32, #tpu.memory_space<vmem>>, vector<2x256xf32>
    %cst_37 = arith.constant dense<0.000000e+00> : vector<2x256xf32>
    %95 = tpu.matmul %91, %1, %cst_37 {dimension_numbers = #tpu.dot_dimension_numbers<[1], [0], [0], [1], [0, 0, 1, 1], [], []>} : vector<2x64xf32>, vector<64x256xf32>, vector<2x256xf32> -> vector<2x256xf32>
    %96 = arith.addf %94, %95 : vector<2x256xf32>
    %97 = vector.extract_strided_slice %96 {offsets = [0, 0], sizes = [2, 192], strides = [1, 1]} : vector<2x256xf32> to vector<2x192xf32>
    %98 = arith.negf %97 : vector<2x192xf32>
    %99 = math.exp %98 : vector<2x192xf32>
    %cst_38 = arith.constant 1.000000e+00 : f32
    %100 = vector.broadcast %cst_38 : f32 to vector<2x192xf32>
    %101 = arith.addf %100, %99 : vector<2x192xf32>
    %102 = arith.divf %100, %101 : vector<2x192xf32>
    %103 = vector.extract_strided_slice %96 {offsets = [0, 192], sizes = [2, 64], strides = [1, 1]} : vector<2x256xf32> to vector<2x64xf32>
    %104 = math.tanh %103 : vector<2x64xf32>
    %105 = vector.extract_strided_slice %102 {offsets = [0, 0], sizes = [2, 64], strides = [1, 1]} : vector<2x192xf32> to vector<2x64xf32>
    %106 = arith.mulf %105, %88 : vector<2x64xf32>
    %107 = vector.extract_strided_slice %102 {offsets = [0, 64], sizes = [2, 64], strides = [1, 1]} : vector<2x192xf32> to vector<2x64xf32>
    %108 = arith.mulf %107, %104 : vector<2x64xf32>
    %109 = arith.addf %106, %108 : vector<2x64xf32>
    %110 = vector.extract_strided_slice %102 {offsets = [0, 128], sizes = [2, 64], strides = [1, 1]} : vector<2x192xf32> to vector<2x64xf32>
    %111 = math.tanh %109 : vector<2x64xf32>
    %112 = arith.mulf %110, %111 : vector<2x64xf32>
    %c8_39 = arith.constant 8 : index
    %c0_40 = arith.constant 0 : index
    %113 = vector.load %arg11[%c8_39, %c0_40] : memref<16x128xf32, #tpu.memory_space<vmem>>, vector<2x64xf32>
    tpu.vector_store %arg11[%c8_39, %c0_40], %112 {strides = array<i32>} : memref<16x128xf32, #tpu.memory_space<vmem>>, vector<2x64xf32>,
    %c6_41 = arith.constant 6 : index
    %c64_42 = arith.constant 64 : index
    %114 = vector.load %arg11[%c6_41, %c64_42] : memref<16x128xf32, #tpu.memory_space<vmem>>, vector<2x64xf32>
    tpu.vector_store %arg11[%c6_41, %c64_42], %112 {strides = array<i32>} : memref<16x128xf32, #tpu.memory_space<vmem>>, vector<2x64xf32>,
    %c10_43 = arith.constant 10 : index
    %c0_44 = arith.constant 0 : index
    %115 = vector.load %arg10[%c10_43, %c0_44] : memref<16x256xf32, #tpu.memory_space<vmem>>, vector<2x256xf32>
    %cst_45 = arith.constant dense<0.000000e+00> : vector<2x256xf32>
    %116 = tpu.matmul %112, %1, %cst_45 {dimension_numbers = #tpu.dot_dimension_numbers<[1], [0], [0], [1], [0, 0, 1, 1], [], []>} : vector<2x64xf32>, vector<64x256xf32>, vector<2x256xf32> -> vector<2x256xf32>
    %117 = arith.addf %115, %116 : vector<2x256xf32>
    %118 = vector.extract_strided_slice %117 {offsets = [0, 0], sizes = [2, 192], strides = [1, 1]} : vector<2x256xf32> to vector<2x192xf32>
    %119 = arith.negf %118 : vector<2x192xf32>
    %120 = math.exp %119 : vector<2x192xf32>
    %cst_46 = arith.constant 1.000000e+00 : f32
    %121 = vector.broadcast %cst_46 : f32 to vector<2x192xf32>
    %122 = arith.addf %121, %120 : vector<2x192xf32>
    %123 = arith.divf %121, %122 : vector<2x192xf32>
    %124 = vector.extract_strided_slice %117 {offsets = [0, 192], sizes = [2, 64], strides = [1, 1]} : vector<2x256xf32> to vector<2x64xf32>
    %125 = math.tanh %124 : vector<2x64xf32>
    %126 = vector.extract_strided_slice %123 {offsets = [0, 0], sizes = [2, 64], strides = [1, 1]} : vector<2x192xf32> to vector<2x64xf32>
    %127 = arith.mulf %126, %109 : vector<2x64xf32>
    %128 = vector.extract_strided_slice %123 {offsets = [0, 64], sizes = [2, 64], strides = [1, 1]} : vector<2x192xf32> to vector<2x64xf32>
    %129 = arith.mulf %128, %125 : vector<2x64xf32>
    %130 = arith.addf %127, %129 : vector<2x64xf32>
    %131 = vector.extract_strided_slice %123 {offsets = [0, 128], sizes = [2, 64], strides = [1, 1]} : vector<2x192xf32> to vector<2x64xf32>
    %132 = math.tanh %130 : vector<2x64xf32>
    %133 = arith.mulf %131, %132 : vector<2x64xf32>
    %c10_47 = arith.constant 10 : index
    %c0_48 = arith.constant 0 : index
    %134 = vector.load %arg11[%c10_47, %c0_48] : memref<16x128xf32, #tpu.memory_space<vmem>>, vector<2x64xf32>
    tpu.vector_store %arg11[%c10_47, %c0_48], %133 {strides = array<i32>} : memref<16x128xf32, #tpu.memory_space<vmem>>, vector<2x64xf32>,
    %c4_49 = arith.constant 4 : index
    %c64_50 = arith.constant 64 : index
    %135 = vector.load %arg11[%c4_49, %c64_50] : memref<16x128xf32, #tpu.memory_space<vmem>>, vector<2x64xf32>
    tpu.vector_store %arg11[%c4_49, %c64_50], %133 {strides = array<i32>} : memref<16x128xf32, #tpu.memory_space<vmem>>, vector<2x64xf32>,
    %c12_51 = arith.constant 12 : index
    %c0_52 = arith.constant 0 : index
    %136 = vector.load %arg10[%c12_51, %c0_52] : memref<16x256xf32, #tpu.memory_space<vmem>>, vector<2x256xf32>
    %cst_53 = arith.constant dense<0.000000e+00> : vector<2x256xf32>
    %137 = tpu.matmul %133, %1, %cst_53 {dimension_numbers = #tpu.dot_dimension_numbers<[1], [0], [0], [1], [0, 0, 1, 1], [], []>} : vector<2x64xf32>, vector<64x256xf32>, vector<2x256xf32> -> vector<2x256xf32>
    %138 = arith.addf %136, %137 : vector<2x256xf32>
    %139 = vector.extract_strided_slice %138 {offsets = [0, 0], sizes = [2, 192], strides = [1, 1]} : vector<2x256xf32> to vector<2x192xf32>
    %140 = arith.negf %139 : vector<2x192xf32>
    %141 = math.exp %140 : vector<2x192xf32>
    %cst_54 = arith.constant 1.000000e+00 : f32
    %142 = vector.broadcast %cst_54 : f32 to vector<2x192xf32>
    %143 = arith.addf %142, %141 : vector<2x192xf32>
    %144 = arith.divf %142, %143 : vector<2x192xf32>
    %145 = vector.extract_strided_slice %138 {offsets = [0, 192], sizes = [2, 64], strides = [1, 1]} : vector<2x256xf32> to vector<2x64xf32>
    %146 = math.tanh %145 : vector<2x64xf32>
    %147 = vector.extract_strided_slice %144 {offsets = [0, 0], sizes = [2, 64], strides = [1, 1]} : vector<2x192xf32> to vector<2x64xf32>
    %148 = arith.mulf %147, %130 : vector<2x64xf32>
    %149 = vector.extract_strided_slice %144 {offsets = [0, 64], sizes = [2, 64], strides = [1, 1]} : vector<2x192xf32> to vector<2x64xf32>
    %150 = arith.mulf %149, %146 : vector<2x64xf32>
    %151 = arith.addf %148, %150 : vector<2x64xf32>
    %152 = vector.extract_strided_slice %144 {offsets = [0, 128], sizes = [2, 64], strides = [1, 1]} : vector<2x192xf32> to vector<2x64xf32>
    %153 = math.tanh %151 : vector<2x64xf32>
    %154 = arith.mulf %152, %153 : vector<2x64xf32>
    %c12_55 = arith.constant 12 : index
    %c0_56 = arith.constant 0 : index
    %155 = vector.load %arg11[%c12_55, %c0_56] : memref<16x128xf32, #tpu.memory_space<vmem>>, vector<2x64xf32>
    tpu.vector_store %arg11[%c12_55, %c0_56], %154 {strides = array<i32>} : memref<16x128xf32, #tpu.memory_space<vmem>>, vector<2x64xf32>,
    %c2_57 = arith.constant 2 : index
    %c64_58 = arith.constant 64 : index
    %156 = vector.load %arg11[%c2_57, %c64_58] : memref<16x128xf32, #tpu.memory_space<vmem>>, vector<2x64xf32>
    tpu.vector_store %arg11[%c2_57, %c64_58], %154 {strides = array<i32>} : memref<16x128xf32, #tpu.memory_space<vmem>>, vector<2x64xf32>,
    %c14_59 = arith.constant 14 : index
    %c0_60 = arith.constant 0 : index
    %157 = vector.load %arg10[%c14_59, %c0_60] : memref<16x256xf32, #tpu.memory_space<vmem>>, vector<2x256xf32>
    %cst_61 = arith.constant dense<0.000000e+00> : vector<2x256xf32>
    %158 = tpu.matmul %154, %1, %cst_61 {dimension_numbers = #tpu.dot_dimension_numbers<[1], [0], [0], [1], [0, 0, 1, 1], [], []>} : vector<2x64xf32>, vector<64x256xf32>, vector<2x256xf32> -> vector<2x256xf32>
    %159 = arith.addf %157, %158 : vector<2x256xf32>
    %160 = vector.extract_strided_slice %159 {offsets = [0, 0], sizes = [2, 192], strides = [1, 1]} : vector<2x256xf32> to vector<2x192xf32>
    %161 = arith.negf %160 : vector<2x192xf32>
    %162 = math.exp %161 : vector<2x192xf32>
    %cst_62 = arith.constant 1.000000e+00 : f32
    %163 = vector.broadcast %cst_62 : f32 to vector<2x192xf32>
    %164 = arith.addf %163, %162 : vector<2x192xf32>
    %165 = arith.divf %163, %164 : vector<2x192xf32>
    %166 = vector.extract_strided_slice %159 {offsets = [0, 192], sizes = [2, 64], strides = [1, 1]} : vector<2x256xf32> to vector<2x64xf32>
    %167 = math.tanh %166 : vector<2x64xf32>
    %168 = vector.extract_strided_slice %165 {offsets = [0, 0], sizes = [2, 64], strides = [1, 1]} : vector<2x192xf32> to vector<2x64xf32>
    %169 = arith.mulf %168, %151 : vector<2x64xf32>
    %170 = vector.extract_strided_slice %165 {offsets = [0, 64], sizes = [2, 64], strides = [1, 1]} : vector<2x192xf32> to vector<2x64xf32>
    %171 = arith.mulf %170, %167 : vector<2x64xf32>
    %172 = arith.addf %169, %171 : vector<2x64xf32>
    %173 = vector.extract_strided_slice %165 {offsets = [0, 128], sizes = [2, 64], strides = [1, 1]} : vector<2x192xf32> to vector<2x64xf32>
    %174 = math.tanh %172 : vector<2x64xf32>
    %175 = arith.mulf %173, %174 : vector<2x64xf32>
    %c14_63 = arith.constant 14 : index
    %c0_64 = arith.constant 0 : index
    %176 = vector.load %arg11[%c14_63, %c0_64] : memref<16x128xf32, #tpu.memory_space<vmem>>, vector<2x64xf32>
    tpu.vector_store %arg11[%c14_63, %c0_64], %175 {strides = array<i32>} : memref<16x128xf32, #tpu.memory_space<vmem>>, vector<2x64xf32>,
    %c0_65 = arith.constant 0 : index
    %c64_66 = arith.constant 64 : index
    %177 = vector.load %arg11[%c0_65, %c64_66] : memref<16x128xf32, #tpu.memory_space<vmem>>, vector<2x64xf32>
    tpu.vector_store %arg11[%c0_65, %c64_66], %175 {strides = array<i32>} : memref<16x128xf32, #tpu.memory_space<vmem>>, vector<2x64xf32>,
    %c0_67 = arith.constant 0 : index
    %c0_68 = arith.constant 0 : index
    %178 = vector.load %arg4[%c0_67, %c0_68] : memref<128x256xf32, #tpu.memory_space<vmem>>, vector<128x256xf32>
    %c0_69 = arith.constant 0 : index
    %c0_70 = arith.constant 0 : index
    %179 = vector.load %arg5[%c0_69, %c0_70] : memref<64x256xf32, #tpu.memory_space<vmem>>, vector<64x256xf32>
    %c0_71 = arith.constant 0 : index
    %c0_72 = arith.constant 0 : index
    %180 = vector.load %arg6[%c0_71, %c0_72] : memref<1x256xf32, #tpu.memory_space<vmem>>, vector<1x256xf32>
    %c0_73 = arith.constant 0 : index
    %c0_74 = arith.constant 0 : index
    %181 = vector.load %arg11[%c0_73, %c0_74] : memref<16x128xf32, #tpu.memory_space<vmem>>, vector<16x128xf32>
    %cst_75 = arith.constant dense<0.000000e+00> : vector<16x256xf32>
    %182 = tpu.matmul %181, %178, %cst_75 {dimension_numbers = #tpu.dot_dimension_numbers<[1], [0], [0], [1], [0, 0, 1, 1], [], []>} : vector<16x128xf32>, vector<128x256xf32>, vector<16x256xf32> -> vector<16x256xf32>
    %183 = vector.broadcast %180 : vector<1x256xf32> to vector<16x256xf32>
    %184 = arith.addf %182, %183 : vector<16x256xf32>
    %c0_76 = arith.constant 0 : index
    %c0_77 = arith.constant 0 : index
    %185 = vector.load %arg10[%c0_76, %c0_77] : memref<16x256xf32, #tpu.memory_space<vmem>>, vector<16x256xf32>
    tpu.vector_store %arg10[%c0_76, %c0_77], %184 {strides = array<i32>} : memref<16x256xf32, #tpu.memory_space<vmem>>, vector<16x256xf32>,
    %cst_78 = arith.constant 0.000000e+00 : f32
    %186 = vector.broadcast %cst_78 : f32 to vector<2x64xf32>
    %cst_79 = arith.constant 0.000000e+00 : f32
    %187 = vector.broadcast %cst_79 : f32 to vector<2x64xf32>
    %cst_80 = arith.constant 0.000000e+00 : f32
    %188 = vector.broadcast %cst_80 : f32 to vector<2x2xf32>
    %c0_81 = arith.constant 0 : index
    %c0_82 = arith.constant 0 : index
    %189 = vector.load %arg8[%c0_81, %c0_82] : memref<1x2xf32, #tpu.memory_space<vmem>>, vector<1x2xf32>
    %190 = vector.broadcast %189 : vector<1x2xf32> to vector<2x2xf32>
    %191 = arith.addf %188, %190 : vector<2x2xf32>
    %c0_83 = arith.constant 0 : index
    %c0_84 = arith.constant 0 : index
    %192 = vector.load %arg10[%c0_83, %c0_84] : memref<16x256xf32, #tpu.memory_space<vmem>>, vector<2x256xf32>
    %cst_85 = arith.constant dense<0.000000e+00> : vector<2x256xf32>
    %193 = tpu.matmul %186, %179, %cst_85 {dimension_numbers = #tpu.dot_dimension_numbers<[1], [0], [0], [1], [0, 0, 1, 1], [], []>} : vector<2x64xf32>, vector<64x256xf32>, vector<2x256xf32> -> vector<2x256xf32>
    %194 = arith.addf %192, %193 : vector<2x256xf32>
    %195 = vector.extract_strided_slice %194 {offsets = [0, 0], sizes = [2, 192], strides = [1, 1]} : vector<2x256xf32> to vector<2x192xf32>
    %196 = arith.negf %195 : vector<2x192xf32>
    %197 = math.exp %196 : vector<2x192xf32>
    %cst_86 = arith.constant 1.000000e+00 : f32
    %198 = vector.broadcast %cst_86 : f32 to vector<2x192xf32>
    %199 = arith.addf %198, %197 : vector<2x192xf32>
    %200 = arith.divf %198, %199 : vector<2x192xf32>
    %201 = vector.extract_strided_slice %194 {offsets = [0, 192], sizes = [2, 64], strides = [1, 1]} : vector<2x256xf32> to vector<2x64xf32>
    %202 = math.tanh %201 : vector<2x64xf32>
    %203 = vector.extract_strided_slice %200 {offsets = [0, 0], sizes = [2, 64], strides = [1, 1]} : vector<2x192xf32> to vector<2x64xf32>
    %204 = arith.mulf %203, %187 : vector<2x64xf32>
    %205 = vector.extract_strided_slice %200 {offsets = [0, 64], sizes = [2, 64], strides = [1, 1]} : vector<2x192xf32> to vector<2x64xf32>
    %206 = arith.mulf %205, %202 : vector<2x64xf32>
    %207 = arith.addf %204, %206 : vector<2x64xf32>
    %208 = vector.extract_strided_slice %200 {offsets = [0, 128], sizes = [2, 64], strides = [1, 1]} : vector<2x192xf32> to vector<2x64xf32>
    %209 = math.tanh %207 : vector<2x64xf32>
    %210 = arith.mulf %208, %209 : vector<2x64xf32>
    %c0_87 = arith.constant 0 : index
    %c0_88 = arith.constant 0 : index
    %c0_89 = arith.constant 0 : index
    %211 = vector.load %arg7[%c0_87, %c0_88, %c0_89] : memref<8x64x2xf32, #tpu.memory_space<vmem>>, vector<1x64x2xf32>
    %212 = vector.shape_cast %211 : vector<1x64x2xf32> to vector<64x2xf32>
    %cst_90 = arith.constant dense<0.000000e+00> : vector<2x2xf32>
    %213 = tpu.matmul %210, %212, %cst_90 {dimension_numbers = #tpu.dot_dimension_numbers<[1], [0], [0], [1], [0, 0, 1, 1], [], []>} : vector<2x64xf32>, vector<64x2xf32>, vector<2x2xf32> -> vector<2x2xf32>
    %214 = arith.addf %191, %213 : vector<2x2xf32>
    %c2_91 = arith.constant 2 : index
    %c0_92 = arith.constant 0 : index
    %215 = vector.load %arg10[%c2_91, %c0_92] : memref<16x256xf32, #tpu.memory_space<vmem>>, vector<2x256xf32>
    %cst_93 = arith.constant dense<0.000000e+00> : vector<2x256xf32>
    %216 = tpu.matmul %210, %179, %cst_93 {dimension_numbers = #tpu.dot_dimension_numbers<[1], [0], [0], [1], [0, 0, 1, 1], [], []>} : vector<2x64xf32>, vector<64x256xf32>, vector<2x256xf32> -> vector<2x256xf32>
    %217 = arith.addf %215, %216 : vector<2x256xf32>
    %218 = vector.extract_strided_slice %217 {offsets = [0, 0], sizes = [2, 192], strides = [1, 1]} : vector<2x256xf32> to vector<2x192xf32>
    %219 = arith.negf %218 : vector<2x192xf32>
    %220 = math.exp %219 : vector<2x192xf32>
    %cst_94 = arith.constant 1.000000e+00 : f32
    %221 = vector.broadcast %cst_94 : f32 to vector<2x192xf32>
    %222 = arith.addf %221, %220 : vector<2x192xf32>
    %223 = arith.divf %221, %222 : vector<2x192xf32>
    %224 = vector.extract_strided_slice %217 {offsets = [0, 192], sizes = [2, 64], strides = [1, 1]} : vector<2x256xf32> to vector<2x64xf32>
    %225 = math.tanh %224 : vector<2x64xf32>
    %226 = vector.extract_strided_slice %223 {offsets = [0, 0], sizes = [2, 64], strides = [1, 1]} : vector<2x192xf32> to vector<2x64xf32>
    %227 = arith.mulf %226, %207 : vector<2x64xf32>
    %228 = vector.extract_strided_slice %223 {offsets = [0, 64], sizes = [2, 64], strides = [1, 1]} : vector<2x192xf32> to vector<2x64xf32>
    %229 = arith.mulf %228, %225 : vector<2x64xf32>
    %230 = arith.addf %227, %229 : vector<2x64xf32>
    %231 = vector.extract_strided_slice %223 {offsets = [0, 128], sizes = [2, 64], strides = [1, 1]} : vector<2x192xf32> to vector<2x64xf32>
    %232 = math.tanh %230 : vector<2x64xf32>
    %233 = arith.mulf %231, %232 : vector<2x64xf32>
    %c1 = arith.constant 1 : index
    %c0_95 = arith.constant 0 : index
    %c0_96 = arith.constant 0 : index
    %234 = vector.load %arg7[%c1, %c0_95, %c0_96] : memref<8x64x2xf32, #tpu.memory_space<vmem>>, vector<1x64x2xf32>
    %235 = vector.shape_cast %234 : vector<1x64x2xf32> to vector<64x2xf32>
    %cst_97 = arith.constant dense<0.000000e+00> : vector<2x2xf32>
    %236 = tpu.matmul %233, %235, %cst_97 {dimension_numbers = #tpu.dot_dimension_numbers<[1], [0], [0], [1], [0, 0, 1, 1], [], []>} : vector<2x64xf32>, vector<64x2xf32>, vector<2x2xf32> -> vector<2x2xf32>
    %237 = arith.addf %214, %236 : vector<2x2xf32>
    %c4_98 = arith.constant 4 : index
    %c0_99 = arith.constant 0 : index
    %238 = vector.load %arg10[%c4_98, %c0_99] : memref<16x256xf32, #tpu.memory_space<vmem>>, vector<2x256xf32>
    %cst_100 = arith.constant dense<0.000000e+00> : vector<2x256xf32>
    %239 = tpu.matmul %233, %179, %cst_100 {dimension_numbers = #tpu.dot_dimension_numbers<[1], [0], [0], [1], [0, 0, 1, 1], [], []>} : vector<2x64xf32>, vector<64x256xf32>, vector<2x256xf32> -> vector<2x256xf32>
    %240 = arith.addf %238, %239 : vector<2x256xf32>
    %241 = vector.extract_strided_slice %240 {offsets = [0, 0], sizes = [2, 192], strides = [1, 1]} : vector<2x256xf32> to vector<2x192xf32>
    %242 = arith.negf %241 : vector<2x192xf32>
    %243 = math.exp %242 : vector<2x192xf32>
    %cst_101 = arith.constant 1.000000e+00 : f32
    %244 = vector.broadcast %cst_101 : f32 to vector<2x192xf32>
    %245 = arith.addf %244, %243 : vector<2x192xf32>
    %246 = arith.divf %244, %245 : vector<2x192xf32>
    %247 = vector.extract_strided_slice %240 {offsets = [0, 192], sizes = [2, 64], strides = [1, 1]} : vector<2x256xf32> to vector<2x64xf32>
    %248 = math.tanh %247 : vector<2x64xf32>
    %249 = vector.extract_strided_slice %246 {offsets = [0, 0], sizes = [2, 64], strides = [1, 1]} : vector<2x192xf32> to vector<2x64xf32>
    %250 = arith.mulf %249, %230 : vector<2x64xf32>
    %251 = vector.extract_strided_slice %246 {offsets = [0, 64], sizes = [2, 64], strides = [1, 1]} : vector<2x192xf32> to vector<2x64xf32>
    %252 = arith.mulf %251, %248 : vector<2x64xf32>
    %253 = arith.addf %250, %252 : vector<2x64xf32>
    %254 = vector.extract_strided_slice %246 {offsets = [0, 128], sizes = [2, 64], strides = [1, 1]} : vector<2x192xf32> to vector<2x64xf32>
    %255 = math.tanh %253 : vector<2x64xf32>
    %256 = arith.mulf %254, %255 : vector<2x64xf32>
    %c2_102 = arith.constant 2 : index
    %c0_103 = arith.constant 0 : index
    %c0_104 = arith.constant 0 : index
    %257 = vector.load %arg7[%c2_102, %c0_103, %c0_104] : memref<8x64x2xf32, #tpu.memory_space<vmem>>, vector<1x64x2xf32>
    %258 = vector.shape_cast %257 : vector<1x64x2xf32> to vector<64x2xf32>
    %cst_105 = arith.constant dense<0.000000e+00> : vector<2x2xf32>
    %259 = tpu.matmul %256, %258, %cst_105 {dimension_numbers = #tpu.dot_dimension_numbers<[1], [0], [0], [1], [0, 0, 1, 1], [], []>} : vector<2x64xf32>, vector<64x2xf32>, vector<2x2xf32> -> vector<2x2xf32>
    %260 = arith.addf %237, %259 : vector<2x2xf32>
    %c6_106 = arith.constant 6 : index
    %c0_107 = arith.constant 0 : index
    %261 = vector.load %arg10[%c6_106, %c0_107] : memref<16x256xf32, #tpu.memory_space<vmem>>, vector<2x256xf32>
    %cst_108 = arith.constant dense<0.000000e+00> : vector<2x256xf32>
    %262 = tpu.matmul %256, %179, %cst_108 {dimension_numbers = #tpu.dot_dimension_numbers<[1], [0], [0], [1], [0, 0, 1, 1], [], []>} : vector<2x64xf32>, vector<64x256xf32>, vector<2x256xf32> -> vector<2x256xf32>
    %263 = arith.addf %261, %262 : vector<2x256xf32>
    %264 = vector.extract_strided_slice %263 {offsets = [0, 0], sizes = [2, 192], strides = [1, 1]} : vector<2x256xf32> to vector<2x192xf32>
    %265 = arith.negf %264 : vector<2x192xf32>
    %266 = math.exp %265 : vector<2x192xf32>
    %cst_109 = arith.constant 1.000000e+00 : f32
    %267 = vector.broadcast %cst_109 : f32 to vector<2x192xf32>
    %268 = arith.addf %267, %266 : vector<2x192xf32>
    %269 = arith.divf %267, %268 : vector<2x192xf32>
    %270 = vector.extract_strided_slice %263 {offsets = [0, 192], sizes = [2, 64], strides = [1, 1]} : vector<2x256xf32> to vector<2x64xf32>
    %271 = math.tanh %270 : vector<2x64xf32>
    %272 = vector.extract_strided_slice %269 {offsets = [0, 0], sizes = [2, 64], strides = [1, 1]} : vector<2x192xf32> to vector<2x64xf32>
    %273 = arith.mulf %272, %253 : vector<2x64xf32>
    %274 = vector.extract_strided_slice %269 {offsets = [0, 64], sizes = [2, 64], strides = [1, 1]} : vector<2x192xf32> to vector<2x64xf32>
    %275 = arith.mulf %274, %271 : vector<2x64xf32>
    %276 = arith.addf %273, %275 : vector<2x64xf32>
    %277 = vector.extract_strided_slice %269 {offsets = [0, 128], sizes = [2, 64], strides = [1, 1]} : vector<2x192xf32> to vector<2x64xf32>
    %278 = math.tanh %276 : vector<2x64xf32>
    %279 = arith.mulf %277, %278 : vector<2x64xf32>
    %c3 = arith.constant 3 : index
    %c0_110 = arith.constant 0 : index
    %c0_111 = arith.constant 0 : index
    %280 = vector.load %arg7[%c3, %c0_110, %c0_111] : memref<8x64x2xf32, #tpu.memory_space<vmem>>, vector<1x64x2xf32>
    %281 = vector.shape_cast %280 : vector<1x64x2xf32> to vector<64x2xf32>
    %cst_112 = arith.constant dense<0.000000e+00> : vector<2x2xf32>
    %282 = tpu.matmul %279, %281, %cst_112 {dimension_numbers = #tpu.dot_dimension_numbers<[1], [0], [0], [1], [0, 0, 1, 1], [], []>} : vector<2x64xf32>, vector<64x2xf32>, vector<2x2xf32> -> vector<2x2xf32>
    %283 = arith.addf %260, %282 : vector<2x2xf32>
    %c8_113 = arith.constant 8 : index
    %c0_114 = arith.constant 0 : index
    %284 = vector.load %arg10[%c8_113, %c0_114] : memref<16x256xf32, #tpu.memory_space<vmem>>, vector<2x256xf32>
    %cst_115 = arith.constant dense<0.000000e+00> : vector<2x256xf32>
    %285 = tpu.matmul %279, %179, %cst_115 {dimension_numbers = #tpu.dot_dimension_numbers<[1], [0], [0], [1], [0, 0, 1, 1], [], []>} : vector<2x64xf32>, vector<64x256xf32>, vector<2x256xf32> -> vector<2x256xf32>
    %286 = arith.addf %284, %285 : vector<2x256xf32>
    %287 = vector.extract_strided_slice %286 {offsets = [0, 0], sizes = [2, 192], strides = [1, 1]} : vector<2x256xf32> to vector<2x192xf32>
    %288 = arith.negf %287 : vector<2x192xf32>
    %289 = math.exp %288 : vector<2x192xf32>
    %cst_116 = arith.constant 1.000000e+00 : f32
    %290 = vector.broadcast %cst_116 : f32 to vector<2x192xf32>
    %291 = arith.addf %290, %289 : vector<2x192xf32>
    %292 = arith.divf %290, %291 : vector<2x192xf32>
    %293 = vector.extract_strided_slice %286 {offsets = [0, 192], sizes = [2, 64], strides = [1, 1]} : vector<2x256xf32> to vector<2x64xf32>
    %294 = math.tanh %293 : vector<2x64xf32>
    %295 = vector.extract_strided_slice %292 {offsets = [0, 0], sizes = [2, 64], strides = [1, 1]} : vector<2x192xf32> to vector<2x64xf32>
    %296 = arith.mulf %295, %276 : vector<2x64xf32>
    %297 = vector.extract_strided_slice %292 {offsets = [0, 64], sizes = [2, 64], strides = [1, 1]} : vector<2x192xf32> to vector<2x64xf32>
    %298 = arith.mulf %297, %294 : vector<2x64xf32>
    %299 = arith.addf %296, %298 : vector<2x64xf32>
    %300 = vector.extract_strided_slice %292 {offsets = [0, 128], sizes = [2, 64], strides = [1, 1]} : vector<2x192xf32> to vector<2x64xf32>
    %301 = math.tanh %299 : vector<2x64xf32>
    %302 = arith.mulf %300, %301 : vector<2x64xf32>
    %c4_117 = arith.constant 4 : index
    %c0_118 = arith.constant 0 : index
    %c0_119 = arith.constant 0 : index
    %303 = vector.load %arg7[%c4_117, %c0_118, %c0_119] : memref<8x64x2xf32, #tpu.memory_space<vmem>>, vector<1x64x2xf32>
    %304 = vector.shape_cast %303 : vector<1x64x2xf32> to vector<64x2xf32>
    %cst_120 = arith.constant dense<0.000000e+00> : vector<2x2xf32>
    %305 = tpu.matmul %302, %304, %cst_120 {dimension_numbers = #tpu.dot_dimension_numbers<[1], [0], [0], [1], [0, 0, 1, 1], [], []>} : vector<2x64xf32>, vector<64x2xf32>, vector<2x2xf32> -> vector<2x2xf32>
    %306 = arith.addf %283, %305 : vector<2x2xf32>
    %c10_121 = arith.constant 10 : index
    %c0_122 = arith.constant 0 : index
    %307 = vector.load %arg10[%c10_121, %c0_122] : memref<16x256xf32, #tpu.memory_space<vmem>>, vector<2x256xf32>
    %cst_123 = arith.constant dense<0.000000e+00> : vector<2x256xf32>
    %308 = tpu.matmul %302, %179, %cst_123 {dimension_numbers = #tpu.dot_dimension_numbers<[1], [0], [0], [1], [0, 0, 1, 1], [], []>} : vector<2x64xf32>, vector<64x256xf32>, vector<2x256xf32> -> vector<2x256xf32>
    %309 = arith.addf %307, %308 : vector<2x256xf32>
    %310 = vector.extract_strided_slice %309 {offsets = [0, 0], sizes = [2, 192], strides = [1, 1]} : vector<2x256xf32> to vector<2x192xf32>
    %311 = arith.negf %310 : vector<2x192xf32>
    %312 = math.exp %311 : vector<2x192xf32>
    %cst_124 = arith.constant 1.000000e+00 : f32
    %313 = vector.broadcast %cst_124 : f32 to vector<2x192xf32>
    %314 = arith.addf %313, %312 : vector<2x192xf32>
    %315 = arith.divf %313, %314 : vector<2x192xf32>
    %316 = vector.extract_strided_slice %309 {offsets = [0, 192], sizes = [2, 64], strides = [1, 1]} : vector<2x256xf32> to vector<2x64xf32>
    %317 = math.tanh %316 : vector<2x64xf32>
    %318 = vector.extract_strided_slice %315 {offsets = [0, 0], sizes = [2, 64], strides = [1, 1]} : vector<2x192xf32> to vector<2x64xf32>
    %319 = arith.mulf %318, %299 : vector<2x64xf32>
    %320 = vector.extract_strided_slice %315 {offsets = [0, 64], sizes = [2, 64], strides = [1, 1]} : vector<2x192xf32> to vector<2x64xf32>
    %321 = arith.mulf %320, %317 : vector<2x64xf32>
    %322 = arith.addf %319, %321 : vector<2x64xf32>
    %323 = vector.extract_strided_slice %315 {offsets = [0, 128], sizes = [2, 64], strides = [1, 1]} : vector<2x192xf32> to vector<2x64xf32>
    %324 = math.tanh %322 : vector<2x64xf32>
    %325 = arith.mulf %323, %324 : vector<2x64xf32>
    %c5 = arith.constant 5 : index
    %c0_125 = arith.constant 0 : index
    %c0_126 = arith.constant 0 : index
    %326 = vector.load %arg7[%c5, %c0_125, %c0_126] : memref<8x64x2xf32, #tpu.memory_space<vmem>>, vector<1x64x2xf32>
    %327 = vector.shape_cast %326 : vector<1x64x2xf32> to vector<64x2xf32>
    %cst_127 = arith.constant dense<0.000000e+00> : vector<2x2xf32>
    %328 = tpu.matmul %325, %327, %cst_127 {dimension_numbers = #tpu.dot_dimension_numbers<[1], [0], [0], [1], [0, 0, 1, 1], [], []>} : vector<2x64xf32>, vector<64x2xf32>, vector<2x2xf32> -> vector<2x2xf32>
    %329 = arith.addf %306, %328 : vector<2x2xf32>
    %c12_128 = arith.constant 12 : index
    %c0_129 = arith.constant 0 : index
    %330 = vector.load %arg10[%c12_128, %c0_129] : memref<16x256xf32, #tpu.memory_space<vmem>>, vector<2x256xf32>
    %cst_130 = arith.constant dense<0.000000e+00> : vector<2x256xf32>
    %331 = tpu.matmul %325, %179, %cst_130 {dimension_numbers = #tpu.dot_dimension_numbers<[1], [0], [0], [1], [0, 0, 1, 1], [], []>} : vector<2x64xf32>, vector<64x256xf32>, vector<2x256xf32> -> vector<2x256xf32>
    %332 = arith.addf %330, %331 : vector<2x256xf32>
    %333 = vector.extract_strided_slice %332 {offsets = [0, 0], sizes = [2, 192], strides = [1, 1]} : vector<2x256xf32> to vector<2x192xf32>
    %334 = arith.negf %333 : vector<2x192xf32>
    %335 = math.exp %334 : vector<2x192xf32>
    %cst_131 = arith.constant 1.000000e+00 : f32
    %336 = vector.broadcast %cst_131 : f32 to vector<2x192xf32>
    %337 = arith.addf %336, %335 : vector<2x192xf32>
    %338 = arith.divf %336, %337 : vector<2x192xf32>
    %339 = vector.extract_strided_slice %332 {offsets = [0, 192], sizes = [2, 64], strides = [1, 1]} : vector<2x256xf32> to vector<2x64xf32>
    %340 = math.tanh %339 : vector<2x64xf32>
    %341 = vector.extract_strided_slice %338 {offsets = [0, 0], sizes = [2, 64], strides = [1, 1]} : vector<2x192xf32> to vector<2x64xf32>
    %342 = arith.mulf %341, %322 : vector<2x64xf32>
    %343 = vector.extract_strided_slice %338 {offsets = [0, 64], sizes = [2, 64], strides = [1, 1]} : vector<2x192xf32> to vector<2x64xf32>
    %344 = arith.mulf %343, %340 : vector<2x64xf32>
    %345 = arith.addf %342, %344 : vector<2x64xf32>
    %346 = vector.extract_strided_slice %338 {offsets = [0, 128], sizes = [2, 64], strides = [1, 1]} : vector<2x192xf32> to vector<2x64xf32>
    %347 = math.tanh %345 : vector<2x64xf32>
    %348 = arith.mulf %346, %347 : vector<2x64xf32>
    %c6_132 = arith.constant 6 : index
    %c0_133 = arith.constant 0 : index
    %c0_134 = arith.constant 0 : index
    %349 = vector.load %arg7[%c6_132, %c0_133, %c0_134] : memref<8x64x2xf32, #tpu.memory_space<vmem>>, vector<1x64x2xf32>
    %350 = vector.shape_cast %349 : vector<1x64x2xf32> to vector<64x2xf32>
    %cst_135 = arith.constant dense<0.000000e+00> : vector<2x2xf32>
    %351 = tpu.matmul %348, %350, %cst_135 {dimension_numbers = #tpu.dot_dimension_numbers<[1], [0], [0], [1], [0, 0, 1, 1], [], []>} : vector<2x64xf32>, vector<64x2xf32>, vector<2x2xf32> -> vector<2x2xf32>
    %352 = arith.addf %329, %351 : vector<2x2xf32>
    %c14_136 = arith.constant 14 : index
    %c0_137 = arith.constant 0 : index
    %353 = vector.load %arg10[%c14_136, %c0_137] : memref<16x256xf32, #tpu.memory_space<vmem>>, vector<2x256xf32>
    %cst_138 = arith.constant dense<0.000000e+00> : vector<2x256xf32>
    %354 = tpu.matmul %348, %179, %cst_138 {dimension_numbers = #tpu.dot_dimension_numbers<[1], [0], [0], [1], [0, 0, 1, 1], [], []>} : vector<2x64xf32>, vector<64x256xf32>, vector<2x256xf32> -> vector<2x256xf32>
    %355 = arith.addf %353, %354 : vector<2x256xf32>
    %356 = vector.extract_strided_slice %355 {offsets = [0, 0], sizes = [2, 192], strides = [1, 1]} : vector<2x256xf32> to vector<2x192xf32>
    %357 = arith.negf %356 : vector<2x192xf32>
    %358 = math.exp %357 : vector<2x192xf32>
    %cst_139 = arith.constant 1.000000e+00 : f32
    %359 = vector.broadcast %cst_139 : f32 to vector<2x192xf32>
    %360 = arith.addf %359, %358 : vector<2x192xf32>
    %361 = arith.divf %359, %360 : vector<2x192xf32>
    %362 = vector.extract_strided_slice %355 {offsets = [0, 192], sizes = [2, 64], strides = [1, 1]} : vector<2x256xf32> to vector<2x64xf32>
    %363 = math.tanh %362 : vector<2x64xf32>
    %364 = vector.extract_strided_slice %361 {offsets = [0, 0], sizes = [2, 64], strides = [1, 1]} : vector<2x192xf32> to vector<2x64xf32>
    %365 = arith.mulf %364, %345 : vector<2x64xf32>
    %366 = vector.extract_strided_slice %361 {offsets = [0, 64], sizes = [2, 64], strides = [1, 1]} : vector<2x192xf32> to vector<2x64xf32>
    %367 = arith.mulf %366, %363 : vector<2x64xf32>
    %368 = arith.addf %365, %367 : vector<2x64xf32>
    %369 = vector.extract_strided_slice %361 {offsets = [0, 128], sizes = [2, 64], strides = [1, 1]} : vector<2x192xf32> to vector<2x64xf32>
    %370 = math.tanh %368 : vector<2x64xf32>
    %371 = arith.mulf %369, %370 : vector<2x64xf32>
    %c7 = arith.constant 7 : index
    %c0_140 = arith.constant 0 : index
    %c0_141 = arith.constant 0 : index
    %372 = vector.load %arg7[%c7, %c0_140, %c0_141] : memref<8x64x2xf32, #tpu.memory_space<vmem>>, vector<1x64x2xf32>
    %373 = vector.shape_cast %372 : vector<1x64x2xf32> to vector<64x2xf32>
    %cst_142 = arith.constant dense<0.000000e+00> : vector<2x2xf32>
    %374 = tpu.matmul %371, %373, %cst_142 {dimension_numbers = #tpu.dot_dimension_numbers<[1], [0], [0], [1], [0, 0, 1, 1], [], []>} : vector<2x64xf32>, vector<64x2xf32>, vector<2x2xf32> -> vector<2x2xf32>
    %375 = arith.addf %352, %374 : vector<2x2xf32>
    %c0_143 = arith.constant 0 : index
    %c0_144 = arith.constant 0 : index
    %376 = vector.load %arg9[%c0_143, %c0_144] : memref<2x2xf32, #tpu.memory_space<vmem>>, vector<2x2xf32>
    tpu.vector_store %arg9[%c0_143, %c0_144], %375 {strides = array<i32>} : memref<2x2xf32, #tpu.memory_space<vmem>>, vector<2x2xf32>,
    return
  }
}

</mosaic_0001>

<bundles_post_ra>
// kernel: stacked_lstm_forward.1
= control target key start
LH: loop header
LB: loop body
LE: loop exit
PB: predicated region body
PF: predicated region fallthrough
CT: control target
= control target key end

     0   :  { %vm65_vm0 = vcmask 261120   ;;  %s3571_s0 = inlined_call_operand.vmem [shape: f32[16,32], index: 0, kind: input, shape index: {}]   ;;  %s3572_s1 = inlined_call_operand.vmem [shape: f32[32,256], index: 1, kind: input, shape index: {}]   ;;  %s3573_s2 = inlined_call_operand.vmem [shape: f32[64,256], index: 2, kind: input, shape index: {}]   ;;  %s3574_s3 = inlined_call_operand.vmem [shape: f32[1,256], index: 3, kind: input, shape index: {}]   ;;  %s3575_s4 = inlined_call_operand.vmem [shape: f32[128,256], index: 4, kind: input, shape index: {}]   ;;  %s3576_s5 = inlined_call_operand.vmem [shape: f32[64,256], index: 5, kind: input, shape index: {}]   ;;  %s3577_s6 = inlined_call_operand.vmem [shape: f32[1,256], index: 6, kind: input, shape index: {}]   ;;  %s3578_s7 = inlined_call_operand.vmem [shape: f32[8,64,2], index: 7, kind: input, shape index: {}]   ;;  %s3579_s8 = inlined_call_operand.vmem [shape: f32[1,2], index: 8, kind: input, shape index: {}]   ;;  %s3580_s9 = inlined_call_operand.hbm [shape: f32[2,2], index: 9, kind: output, shape index: {}]  }
   0x1   :  { %v2607_v0 = vld [vmem:[%s3573_s2 + $0x70] sm:$0xff]  ;;  %v2612_v1 = vld [vmem:[%s3573_s2 + $0x60] sm:$0xff]  ;;  %v2632_v6 = vld [vmem:[%s3573_s2 + $0x78] sm:$0xff] }
   0x2   :  { %v39_v2 = vld [vmem:[%s3572_s1 + $0x30] sm:$0xff]  ;;  %136 = vmatpush.msra.mxu2 %v2607_v0  ;;  %v37_v3 = vld [vmem:[%s3572_s1 + $0x20] sm:$0xff]  ;;  %v2638_v7 = vld [vmem:[%s3573_s2 + $0x68] sm:$0xff]  ;;  %156 = vmatpush.msra.mxu3 %v2632_v6 }
   0x3   :  { %84 = vmatpush.msra.mxu0 %v39_v2  ;;  %v2624_v4 = vld [vmem:[%s3573_s2 + $0x50] sm:$0xff]  ;;  %v2643_v8 = vld [vmem:[%s3573_s2 + $0x40] sm:$0xff]  ;;  %v40_v10 = vld [vmem:[%s3572_s1 + $0x38] sm:$0xff] }
   0x4   :  { %v35_v5 = vld [vmem:[%s3572_s1 + $0x10] sm:$0xff]  ;;  %137 = vmatpush.msra.mxu2 %v2612_v1  ;;  %v33_v9 = vld [vmem:[%s3572_s1] sm:$0xff]  ;;  %v2659_v12 = vld [vmem:[%s3573_s2 + $0x58] sm:$0xff]  ;;  %157 = vmatpush.msra.mxu3 %v2638_v7 }
   0x5   :  { %85 = vmatpush.msra.mxu0 %v37_v3  ;;  %v58_v11 = vld [vmem:[%s3571_s0] sm:$0xff]  ;;  %v2664_v13 = vld [vmem:[%s3573_s2 + $0x30] sm:$0xff]  ;;  %107 = vmatpush.msra.mxu1 %v40_v10  ;;  %v38_v14 = vld [vmem:[%s3572_s1 + $0x28] sm:$0xff] }
   0x6   :  { %138 = vmatpush.msra.mxu2 %v2624_v4  ;;  %v2674_v15 = vld [vmem:[%s3573_s2 + $0x48] sm:$0xff]  ;;  %v2679_v16 = vld [vmem:[%s3573_s2 + $0x20] sm:$0xff]  ;;  %158 = vmatpush.msra.mxu3 %v2659_v12  ;;  %v36_v17 = vld [vmem:[%s3572_s1 + $0x18] sm:$0xff] }
   0x7   :  { %86 = vmatpush.msra.mxu0 %v35_v5  ;;  %108 = vmatpush.msra.mxu1 %v38_v14  ;;  %v2690_v18 = vld [vmem:[%s3573_s2 + $0x38] sm:$0xff] }
   0x8   :  { %139 = vmatpush.msra.mxu2 %v2643_v8 }
   0x9   :  { %87 = vmatpush.msra.mxu0 %v33_v9 }
   0xa   :  { %2185 = vmatmul.msk.f32.vlgmr.msra.gmra.mxu0 %vm65_vm0, %v58_v11  ;;  %140 = vmatpush.msra.mxu2 %v2664_v13 }
   0xb   :  { %14 = vsyncpa [#allocation5], 0  ;;  %v2695_v19 = vld [vmem:[%s3573_s2 + $0x10] sm:$0xff]  ;;  %159 = vmatpush.msra.mxu3 %v2674_v15  ;;  %v34_v20 = vld [vmem:[%s3572_s1 + $0x8] sm:$0xff]  ;;  %238 = vmatpush.msrb.mxu0 %v2607_v0  ;;  %v2551_v25 = vmov 0.0   ;;  %vm124_vm9 = vcmask 523264  }
   0xc   :  { %141 = vmatpush.msra.mxu2 %v2679_v16  ;;  %109 = vmatpush.msra.mxu1 %v36_v17  ;;  %v2706_v21 = vld [vmem:[%s3573_s2 + $0x28] sm:$0xff]  ;;  %v2711_v22 = vld [vmem:[%s3573_s2] sm:$0xff]  ;;  %v2719_v23 = vld [vmem:[%s3573_s2 + $0x18] sm:$0xff]  ;;  %vm218_vm10 = vcmask 517120   ;;  %s2553_s19 = smov [#allocation4]   ;;  %s2176_s23 = sshll.u32 %s3580_s9, 4  ;;  %s2177_s23 = int_to_ptr.hbm [resolvable:$true] %s2176_s23 }
   0xd   :  { %160 = vmatpush.msra.mxu3 %v2690_v18  ;;  %239 = vmatpush.msrb.mxu0 %v2612_v1  ;;  %v2727_v24 = vld [vmem:[%s3573_s2 + $0x8] sm:$0xff]  ;;  %v2798_v26 = vld [vmem:[%s3574_s3] sm:$0x3]  ;;  %s2552_s3 = smov 64   ;;  %s2174_s20 = sshll.u32 %s2553_s19, 4  ;;  %s2175_s20 = int_to_ptr.vmem [resolvable:$true] %s2174_s20 }
   0xe   :  { %142 = vmatpush.msra.mxu2 %v2695_v19  ;;  %110 = vmatpush.msra.mxu1 %v34_v20  ;;  %v61_v27 = vperm.slane %v2798_v26, 0  ;;  %v62_v30 = vperm.slane %v2798_v26, 1  ;;  %v59_v55 = vld [vmem:[%s3571_s0 + $0x8] sm:$0xff] }
   0xf   :  { %161 = vmatpush.msra.mxu3 %v2706_v21  ;;  %2187 = vmatmul.msk.f32.vlgmr.msra.gmra.mxu1 %vm65_vm0, %v58_v11 }
  0x10   :  { %143 = vmatpush.msra.mxu2 %v2711_v22  ;;  %258 = vmatpush.msrb.mxu1 %v2632_v6 }
  0x11   :  { %144 = vmatmul.f32.vlgmr.msra.gmra.mxu2 %v2551_v25  ;;  %162 = vmatpush.msra.mxu3 %v2719_v23 }
  0x12   :  { %259 = vmatpush.msrb.mxu1 %v2638_v7  ;;  %240 = vmatpush.msrb.mxu0 %v2624_v4 }
  0x13   :  { %163 = vmatpush.msra.mxu3 %v2727_v24  ;;  %350 = vmatpush.msrb.mxu2 %v2607_v0 }
  0x14   :  { %164 = vmatmul.f32.vlgmr.msra.gmra.mxu3 %v2551_v25  ;;  %260 = vmatpush.msrb.mxu1 %v2659_v12 }
  0x15   :  { %241 = vmatpush.msrb.mxu0 %v2643_v8  ;;  %370 = vmatpush.msrb.mxu3 %v2632_v6 }
  0x16   :  { %261 = vmatpush.msrb.mxu1 %v2674_v15  ;;  %351 = vmatpush.msrb.mxu2 %v2612_v1 }
  0x17   :  { %242 = vmatpush.msrb.mxu0 %v2664_v13  ;;  %371 = vmatpush.msrb.mxu3 %v2638_v7 }
  0x18   :  { %262 = vmatpush.msrb.mxu1 %v2690_v18  ;;  %352 = vmatpush.msrb.mxu2 %v2624_v4 }
  0x19   :  { %243 = vmatpush.msrb.mxu0 %v2679_v16  ;;  %372 = vmatpush.msrb.mxu3 %v2659_v12 }
  0x1a   :  { %263 = vmatpush.msrb.mxu1 %v2706_v21  ;;  %353 = vmatpush.msrb.mxu2 %v2643_v8 }
  0x1b   :  { %244 = vmatpush.msrb.mxu0 %v2695_v19  ;;  %373 = vmatpush.msrb.mxu3 %v2674_v15 }
  0x1c   :  { %264 = vmatpush.msrb.mxu1 %v2719_v23  ;;  %354 = vmatpush.msrb.mxu2 %v2664_v13 }
  0x1d   :  { %245 = vmatpush.msrb.mxu0 %v2711_v22  ;;  %374 = vmatpush.msrb.mxu3 %v2690_v18 }
  0x1e   :  { %265 = vmatpush.msrb.mxu1 %v2727_v24  ;;  %355 = vmatpush.msrb.mxu2 %v2679_v16 }
  0x1f   :  { %375 = vmatpush.msrb.mxu3 %v2706_v21  ;;  %462 = vmatpush.msra.mxu0 %v2607_v0 }
  0x20   :  { %356 = vmatpush.msrb.mxu2 %v2695_v19  ;;  %482 = vmatpush.msra.mxu1 %v2632_v6 }
  0x21   :  { %376 = vmatpush.msrb.mxu3 %v2719_v23  ;;  %463 = vmatpush.msra.mxu0 %v2612_v1 }
  0x22   :  { %357 = vmatpush.msrb.mxu2 %v2711_v22  ;;  %483 = vmatpush.msra.mxu1 %v2638_v7 }
  0x23   :  { %377 = vmatpush.msrb.mxu3 %v2727_v24  ;;  %464 = vmatpush.msra.mxu0 %v2624_v4 }
  0x24   :  { %484 = vmatpush.msra.mxu1 %v2659_v12  ;;  %574 = vmatpush.msra.mxu2 %v2607_v0 }
  0x25   :  { %465 = vmatpush.msra.mxu0 %v2643_v8  ;;  %594 = vmatpush.msra.mxu3 %v2632_v6 }
  0x26   :  { %485 = vmatpush.msra.mxu1 %v2674_v15  ;;  %575 = vmatpush.msra.mxu2 %v2612_v1 }
  0x27   :  { %466 = vmatpush.msra.mxu0 %v2664_v13  ;;  %595 = vmatpush.msra.mxu3 %v2638_v7 }
  0x28   :  { %486 = vmatpush.msra.mxu1 %v2690_v18  ;;  %576 = vmatpush.msra.mxu2 %v2624_v4 }
  0x29   :  { %467 = vmatpush.msra.mxu0 %v2679_v16  ;;  %596 = vmatpush.msra.mxu3 %v2659_v12 }
  0x2a   :  { %487 = vmatpush.msra.mxu1 %v2706_v21  ;;  %577 = vmatpush.msra.mxu2 %v2643_v8 }
  0x2b   :  { %468 = vmatpush.msra.mxu0 %v2695_v19  ;;  %597 = vmatpush.msra.mxu3 %v2674_v15 }
  0x2c   :  { %488 = vmatpush.msra.mxu1 %v2719_v23  ;;  %578 = vmatpush.msra.mxu2 %v2664_v13 }
  0x2d   :  { %469 = vmatpush.msra.mxu0 %v2711_v22  ;;  %598 = vmatpush.msra.mxu3 %v2690_v18 }
  0x2e   :  { %489 = vmatpush.msra.mxu1 %v2727_v24  ;;  %579 = vmatpush.msra.mxu2 %v2679_v16 }
  0x2f   :  { %599 = vmatpush.msra.mxu3 %v2706_v21  ;;  %2186 = vmatmul.msk.f32.gmra.mxu0 %vm65_vm0, %v59_v55 }
  0x30   :  { %580 = vmatpush.msra.mxu2 %v2695_v19  ;;  %2188 = vmatmul.msk.f32.gmra.mxu1 %vm65_vm0, %v59_v55 }
  0x31   :  { %600 = vmatpush.msra.mxu3 %v2719_v23 }
  0x32   :  { %581 = vmatpush.msra.mxu2 %v2711_v22 }
  0x33   :  { %601 = vmatpush.msra.mxu3 %v2727_v24 }
  0x87   :  { %v89_v28 = vpop.f32.mrf.mxu0 }
  0x88   :  { %v90_v29 = vadd.f32 %v89_v28, %v61_v27 }
  0x8a   :  { %118 = vst [vmem:[#allocation2 + $0x10] sm:$0xff] %v90_v29 }
  0x8c   :  { %v112_v31 = vpop.f32.mrf.mxu1 }
  0x8d   :  { %v113_v32 = vadd.f32 %v112_v31, %v62_v30 }
  0x8f   :  { %119 = vst [vmem:[#allocation2] sm:$0xff] %v113_v32 }
  0x91   :  { %v122_v33 = vld [vmem:[#allocation2 + $0x10] sm:$0x3] }
  0x94   :  { %v145_v34 = vpop.f32.mrf.mxu2 }
  0x95   :  { %v168_v35 = vadd.f32 %v145_v34, %v122_v33 }
  0x96   :  { %v123_v39 = vld [vmem:[#allocation2] sm:$0x3] }
  0x97   :  { %v2189_v36 = vmul.f32 -1.442695, %v168_v35  ;;  %v165_v40 = vpop.f32.mrf.mxu3  ;;  %v226_v35 = vld [vmem:[#allocation2 + $0x10] sm:$0xc] }
  0x98   :  { %v169_v42 = vadd.f32 %v165_v40, %v123_v39 }
  0x99   :  { %2317 = vpow2.f32 %v2189_v36 }
  0x9a   :  { %v2190_v54 = vmul.f32 -1.442695, %v169_v42 }
  0x9f   :  { %v2318_v37 = vpop.eup %2317 }
  0xa0   :  { %v176_v38 = vadd.f32 1.0, %v2318_v37 }
  0xa2   :  { %2319 = vrcp.f32 %v176_v38  ;;  %v189_v45 = vand.u32 2147483648, %v176_v38  ;;  %v187_v47 = vand.u32 2147483647, %v176_v38  ;;  %vm183_vm2 = vweird.f32 %v176_v38 }
  0xa3   :  { %2321 = vtanh.f32 %v169_v42  ;;  %v227_v42 = vld [vmem:[#allocation2] sm:$0xc] }
  0xa4   :  { %v190_v50 = vor.u32 1.1754944e-38, %v189_v45  ;;  %vm188_vm4 = vcmp.eq.f32.partialorder %v187_v47, 8.507059e+37  ;;  %2323 = vpow2.f32 %v2190_v54 }
  0xa8   :  { %v2320_v41 = vpop.eup %2319 }
  0xa9   :  { %v179_v43 = vmul.f32 %v2320_v41, %v176_v38  ;;  %vm184_vm1 = vweird.f32 %v2320_v41  ;;  %v2322_v49 = vpop.eup %2321 }
  0xaa   :  { %vm185_vm3 = vmor %vm183_vm2, %vm184_vm1  ;;  %v2324_v56 = vpop.eup %2323 }
  0xab   :  { %v180_v44 = vsub.f32 1.0, %v179_v43  ;;  %v177_v57 = vadd.f32 1.0, %v2324_v56 }
  0xac   :  { %v92_v28 = vpop.f32.mrf.mxu0 }
  0xad   :  { %v181_v46 = vmul.f32 %v2320_v41, %v180_v44  ;;  %2325 = vrcp.f32 %v177_v57  ;;  %vm198_vm5 = vweird.f32 %v177_v57  ;;  %v204_v3 = vand.u32 2147483648, %v177_v57  ;;  %v115_v29 = vpop.f32.mrf.mxu1 }
  0xae   :  { %v202_v9 = vand.u32 2147483647, %v177_v57  ;;  %v93_v31 = vadd.f32 %v92_v28, %v61_v27  ;;  %v116_v32 = vadd.f32 %v115_v29, %v62_v30 }
  0xaf   :  { %v182_v48 = vadd.f32 %v2320_v41, %v181_v46  ;;  %v205_v10 = vor.u32 1.1754944e-38, %v204_v3 }
  0xb0   :  { %vm203_vm8 = vcmp.eq.f32.partialorder %v202_v9, 8.507059e+37  ;;  %120 = vst [vmem:[#allocation2 + $0x18] sm:$0xff] %v93_v31 }
  0xb1   :  { %v186_v51 = vsel %vm185_vm3, %v2320_v41, %v182_v48  ;;  %121 = vst [vmem:[#allocation2 + $0x8] sm:$0xff] %v116_v32  ;;  %vm329_vm3 = vcmask 519170   ;;  %v337_v32 = vld [vmem:[#allocation2 + $0x10] sm:$0x30] }
  0xb2   :  { %v191_v52 = vsel %vm188_vm4, %v190_v50, %v186_v51 }
  0xb3   :  { %v210_v53 = vmul.f32 %v2322_v49, %v191_v52  ;;  %v2326_v58 = vpop.eup %2325  ;;  %v209_v62 = vmul.f32 0.0, %v191_v52 }
  0xb4   :  { %v194_v59 = vmul.f32 %v2326_v58, %v177_v57  ;;  %vm199_vm6 = vweird.f32 %v2326_v58 }
  0xb5   :  { %212 = vrot.lane.b32.xlu0 %v210_v53, %s2552_s3  ;;  %vm200_vm7 = vmor %vm198_vm5, %vm199_vm6 }
  0xb6   :  { %v195_v60 = vsub.f32 1.0, %v194_v59 }
  0xb8   :  { %v196_v61 = vmul.f32 %v2326_v58, %v195_v60 }
  0xba   :  { %v197_v5 = vadd.f32 %v2326_v58, %v196_v61 }
  0xbc   :  { %v201_v11 = vsel %vm200_vm7, %v2326_v58, %v197_v5 }
  0xbd   :  { %v206_v17 = vsel %vm203_vm8, %v205_v10, %v201_v11 }
 0x127   :  { %v213_v63 = vpop.permute.xlu0 %212 }
 0x128   :  { %v2812_v2 = vadd.f32 %v213_v63, %v209_v62 }
 0x12a   :  { %2327 = vtanh.f32 %v2812_v2  ;;  %v318_v49 = vrot.slane %v2812_v2, 6 }
 0x130   :  { %v2328_v14 = vpop.eup %2327 }
 0x131   :  { %v2815_v20 = vmul.f32 %v2328_v14, %v206_v17 }
 0x133   :  { %2191 = vmatmul.msk.f32.vlgmr.msrb.gmra.mxu0 %vm124_vm9, %v2815_v20  ;;  %2192 = vmatmul.msk.f32.vlgmr.msrb.gmra.mxu1 %vm124_vm9, %v2815_v20  ;;  %219 = vst.msk [vmem:[#allocation3] sm:$0x3] %vm218_vm10, %v2815_v20 }
 0x134   :  { %677 = vmatpush.msrb.mxu0 %v2607_v0  ;;  %697 = vmatpush.msrb.mxu1 %v2632_v6 }
 0x136   :  { %678 = vmatpush.msrb.mxu0 %v2612_v1  ;;  %698 = vmatpush.msrb.mxu1 %v2638_v7 }
 0x138   :  { %679 = vmatpush.msrb.mxu0 %v2624_v4  ;;  %699 = vmatpush.msrb.mxu1 %v2659_v12 }
 0x13a   :  { %680 = vmatpush.msrb.mxu0 %v2643_v8  ;;  %700 = vmatpush.msrb.mxu1 %v2674_v15 }
 0x13c   :  { %681 = vmatpush.msrb.mxu0 %v2664_v13  ;;  %701 = vmatpush.msrb.mxu1 %v2690_v18 }
 0x13e   :  { %682 = vmatpush.msrb.mxu0 %v2679_v16  ;;  %702 = vmatpush.msrb.mxu1 %v2706_v21 }
 0x140   :  { %683 = vmatpush.msrb.mxu0 %v2695_v19  ;;  %703 = vmatpush.msrb.mxu1 %v2719_v23 }
 0x142   :  { %684 = vmatpush.msrb.mxu0 %v2711_v22  ;;  %704 = vmatpush.msrb.mxu1 %v2727_v24 }
 0x1b0   :  { %v247_v33 = vpop.f32.mrf.mxu0  ;;  %v267_v40 = vpop.f32.mrf.mxu1 }
 0x1b1   :  { %v272_v34 = vrot.slane %v247_v33, 6  ;;  %v273_v41 = vrot.slane %v267_v40, 6 }
 0x1b3   :  { %v276_v36 = vadd.f32 %v272_v34, %v226_v35  ;;  %v277_v44 = vadd.f32 %v273_v41, %v227_v42 }
 0x1b5   :  { %v2193_v37 = vmul.f32 -1.442695, %v276_v36  ;;  %v2194_v55 = vmul.f32 -1.442695, %v277_v44 }
 0x1b7   :  { %2329 = vpow2.f32 %v2193_v37 }
 0x1bd   :  { %v2330_v38 = vpop.eup %2329 }
 0x1be   :  { %v284_v39 = vadd.f32 1.0, %v2330_v38 }
 0x1c0   :  { %2331 = vrcp.f32 %v284_v39  ;;  %v297_v26 = vand.u32 2147483648, %v284_v39  ;;  %v295_v46 = vand.u32 2147483647, %v284_v39  ;;  %vm291_vm12 = vweird.f32 %v284_v39 }
 0x1c1   :  { %2333 = vtanh.f32 %v277_v44 }
 0x1c2   :  { %v298_v48 = vor.u32 1.1754944e-38, %v297_v26  ;;  %vm296_vm14 = vcmp.eq.f32.partialorder %v295_v46, 8.507059e+37  ;;  %2335 = vpow2.f32 %v2194_v55 }
 0x1c6   :  { %v2332_v43 = vpop.eup %2331 }
 0x1c7   :  { %v287_v27 = vmul.f32 %v2332_v43, %v284_v39  ;;  %vm292_vm11 = vweird.f32 %v2332_v43  ;;  %v2334_v51 = vpop.eup %2333  ;;  %v338_v39 = vld [vmem:[#allocation2] sm:$0x30] }
 0x1c8   :  { %vm293_vm13 = vmor %vm291_vm12, %vm292_vm11  ;;  %v2336_v56 = vpop.eup %2335 }
 0x1c9   :  { %v288_v45 = vsub.f32 1.0, %v287_v27  ;;  %v285_v57 = vadd.f32 1.0, %v2336_v56 }
 0x1cb   :  { %v289_v30 = vmul.f32 %v2332_v43, %v288_v45  ;;  %2337 = vrcp.f32 %v285_v57  ;;  %v312_v3 = vand.u32 2147483648, %v285_v57  ;;  %vm306_vm0 = vweird.f32 %v285_v57 }
 0x1cc   :  { %v310_v5 = vand.u32 2147483647, %v285_v57 }
 0x1cd   :  { %v290_v47 = vadd.f32 %v2332_v43, %v289_v30  ;;  %v313_v10 = vor.u32 1.1754944e-38, %v312_v3 }
 0x1ce   :  { %vm311_vm2 = vcmp.eq.f32.partialorder %v310_v5, 8.507059e+37 }
 0x1cf   :  { %v294_v50 = vsel %vm293_vm13, %v2332_v43, %v290_v47 }
 0x1d0   :  { %v299_v52 = vsel %vm296_vm14, %v298_v48, %v294_v50  ;;  %vm441_vm14 = vcmask 521220  }
 0x1d1   :  { %v321_v53 = vmul.f32 %v2334_v51, %v299_v52  ;;  %v320_v54 = vmul.f32 %v318_v49, %v299_v52  ;;  %v2338_v58 = vpop.eup %2337 }
 0x1d2   :  { %v302_v59 = vmul.f32 %v2338_v58, %v285_v57  ;;  %vm307_vm15 = vweird.f32 %v2338_v58 }
 0x1d3   :  { %323 = vrot.lane.b32.xlu0 %v321_v53, %s2552_s3  ;;  %vm308_vm1 = vmor %vm306_vm0, %vm307_vm15 }
 0x1d4   :  { %v303_v60 = vsub.f32 1.0, %v302_v59 }
 0x1d6   :  { %v304_v61 = vmul.f32 %v2338_v58, %v303_v60 }
 0x1d8   :  { %v305_v2 = vadd.f32 %v2338_v58, %v304_v61 }
 0x1da   :  { %v309_v9 = vsel %vm308_vm1, %v2338_v58, %v305_v2 }
 0x1db   :  { %v314_v14 = vsel %vm311_vm2, %v313_v10, %v309_v9 }
 0x245   :  { %v324_v62 = vpop.permute.xlu0 %323 }
 0x246   :  { %v2845_v63 = vadd.f32 %v324_v62, %v320_v54 }
 0x248   :  { %2339 = vtanh.f32 %v2845_v63  ;;  %v430_v46 = vrot.slane %v2845_v63, 6 }
 0x24e   :  { %v2340_v11 = vpop.eup %2339 }
 0x24f   :  { %v2848_v17 = vmul.f32 %v2340_v11, %v314_v14 }
 0x251   :  { %v339_v28 = vrot.slane %v2848_v17, 2  ;;  %330 = vst.msk [vmem:[#allocation3] sm:$0xc] %vm329_vm3, %v2848_v17 }
 0x253   :  { %2195 = vmatmul.msk.f32.vlgmr.msrb.gmra.mxu2 %vm124_vm9, %v339_v28  ;;  %2196 = vmatmul.msk.f32.vlgmr.msrb.gmra.mxu3 %vm124_vm9, %v339_v28 }
 0x254   :  { %787 = vmatpush.msrb.mxu2 %v2607_v0  ;;  %807 = vmatpush.msrb.mxu3 %v2632_v6 }
 0x256   :  { %788 = vmatpush.msrb.mxu2 %v2612_v1  ;;  %808 = vmatpush.msrb.mxu3 %v2638_v7 }
 0x258   :  { %789 = vmatpush.msrb.mxu2 %v2624_v4  ;;  %809 = vmatpush.msrb.mxu3 %v2659_v12 }
 0x25a   :  { %790 = vmatpush.msrb.mxu2 %v2643_v8  ;;  %810 = vmatpush.msrb.mxu3 %v2674_v15 }
 0x25c   :  { %791 = vmatpush.msrb.mxu2 %v2664_v13  ;;  %811 = vmatpush.msrb.mxu3 %v2690_v18 }
 0x25e   :  { %792 = vmatpush.msrb.mxu2 %v2679_v16  ;;  %812 = vmatpush.msrb.mxu3 %v2706_v21 }
 0x260   :  { %793 = vmatpush.msrb.mxu2 %v2695_v19  ;;  %813 = vmatpush.msrb.mxu3 %v2719_v23 }
 0x262   :  { %794 = vmatpush.msrb.mxu2 %v2711_v22  ;;  %814 = vmatpush.msrb.mxu3 %v2727_v24 }
 0x2d6   :  { %v359_v29 = vpop.f32.mrf.mxu2  ;;  %v379_v37 = vpop.f32.mrf.mxu3 }
 0x2d7   :  { %v384_v31 = vrot.slane %v359_v29, 4  ;;  %v385_v38 = vrot.slane %v379_v37, 4 }
 0x2d9   :  { %v388_v33 = vadd.f32 %v384_v31, %v337_v32  ;;  %v389_v41 = vadd.f32 %v385_v38, %v338_v39 }
 0x2db   :  { %v2197_v34 = vmul.f32 -1.442695, %v388_v33  ;;  %v2198_v52 = vmul.f32 -1.442695, %v389_v41 }
 0x2dd   :  { %2341 = vpow2.f32 %v2197_v34 }
 0x2e3   :  { %v2342_v35 = vpop.eup %2341 }
 0x2e4   :  { %v396_v36 = vadd.f32 1.0, %v2342_v35 }
 0x2e6   :  { %2343 = vrcp.f32 %v396_v36  ;;  %v409_v44 = vand.u32 2147483648, %v396_v36  ;;  %v407_v45 = vand.u32 2147483647, %v396_v36  ;;  %vm403_vm5 = vweird.f32 %v396_v36 }
 0x2e7   :  { %2345 = vtanh.f32 %v389_v41 }
 0x2e8   :  { %v410_v30 = vor.u32 1.1754944e-38, %v409_v44  ;;  %vm408_vm7 = vcmp.eq.f32.partialorder %v407_v45, 8.507059e+37  ;;  %2347 = vpow2.f32 %v2198_v52  ;;  %v561_v52 = vld [vmem:[#allocation2 + $0x18] sm:$0x3] }
 0x2ec   :  { %v2344_v40 = vpop.eup %2343 }
 0x2ed   :  { %v399_v42 = vmul.f32 %v2344_v40, %v396_v36  ;;  %vm404_vm4 = vweird.f32 %v2344_v40  ;;  %v2346_v48 = vpop.eup %2345 }
 0x2ee   :  { %vm405_vm6 = vmor %vm403_vm5, %vm404_vm4  ;;  %v2348_v53 = vpop.eup %2347 }
 0x2ef   :  { %v400_v43 = vsub.f32 1.0, %v399_v42  ;;  %v397_v54 = vadd.f32 1.0, %v2348_v53 }
 0x2f1   :  { %v401_v27 = vmul.f32 %v2344_v40, %v400_v43  ;;  %2349 = vrcp.f32 %v397_v54  ;;  %v424_v62 = vand.u32 2147483648, %v397_v54  ;;  %vm418_vm11 = vweird.f32 %v397_v54 }
 0x2f2   :  { %v422_v63 = vand.u32 2147483647, %v397_v54 }
 0x2f3   :  { %v402_v26 = vadd.f32 %v2344_v40, %v401_v27  ;;  %v425_v3 = vor.u32 1.1754944e-38, %v424_v62 }
 0x2f4   :  { %vm423_vm13 = vcmp.eq.f32.partialorder %v422_v63, 8.507059e+37 }
 0x2f5   :  { %v406_v47 = vsel %vm405_vm6, %v2344_v40, %v402_v26 }
 0x2f6   :  { %v411_v49 = vsel %vm408_vm7, %v410_v30, %v406_v47 }
 0x2f7   :  { %v433_v50 = vmul.f32 %v2346_v48, %v411_v49  ;;  %v432_v51 = vmul.f32 %v430_v46, %v411_v49  ;;  %v2350_v55 = vpop.eup %2349 }
 0x2f8   :  { %v414_v56 = vmul.f32 %v2350_v55, %v397_v54  ;;  %vm419_vm8 = vweird.f32 %v2350_v55 }
 0x2f9   :  { %435 = vrot.lane.b32.xlu1 %v433_v50, %s2552_s3  ;;  %vm420_vm12 = vmor %vm418_vm11, %vm419_vm8  ;;  %vm553_vm8 = vcmask 523270  }
 0x2fa   :  { %v415_v57 = vsub.f32 1.0, %v414_v56 }
 0x2fc   :  { %v416_v58 = vmul.f32 %v2350_v55, %v415_v57 }
 0x2fe   :  { %v417_v61 = vadd.f32 %v2350_v55, %v416_v58 }
 0x300   :  { %v421_v2 = vsel %vm420_vm12, %v2350_v55, %v417_v61 }
 0x301   :  { %v426_v9 = vsel %vm423_vm13, %v425_v3, %v421_v2 }
 0x36b   :  { %v436_v59 = vpop.permute.xlu1 %435 }
 0x36c   :  { %v2873_v60 = vadd.f32 %v436_v59, %v432_v51  ;;  %v562_v59 = vld [vmem:[#allocation2 + $0x8] sm:$0x3] }
 0x36e   :  { %2351 = vtanh.f32 %v2873_v60  ;;  %v542_v31 = vrot.slane %v2873_v60, 6 }
 0x374   :  { %v2352_v5 = vpop.eup %2351 }
 0x375   :  { %v2876_v10 = vmul.f32 %v2352_v5, %v426_v9 }
 0x377   :  { %v451_v11 = vrot.slane %v2876_v10, 4  ;;  %442 = vst.msk [vmem:[#allocation3] sm:$0x30] %vm441_vm14, %v2876_v10 }
 0x379   :  { %2199 = vmatmul.msk.f32.vlgmr.msra.gmra.mxu0 %vm124_vm9, %v451_v11  ;;  %2200 = vmatmul.msk.f32.vlgmr.msra.gmra.mxu1 %vm124_vm9, %v451_v11 }
 0x37a   :  { %897 = vmatpush.msra.mxu0 %v2607_v0  ;;  %917 = vmatpush.msra.mxu1 %v2632_v6 }
 0x37c   :  { %898 = vmatpush.msra.mxu0 %v2612_v1  ;;  %918 = vmatpush.msra.mxu1 %v2638_v7 }
 0x37e   :  { %899 = vmatpush.msra.mxu0 %v2624_v4  ;;  %919 = vmatpush.msra.mxu1 %v2659_v12  ;;  %v449_v4 = vld [vmem:[#allocation2 + $0x10] sm:$0xc0] }
 0x380   :  { %900 = vmatpush.msra.mxu0 %v2643_v8  ;;  %920 = vmatpush.msra.mxu1 %v2674_v15 }
 0x382   :  { %901 = vmatpush.msra.mxu0 %v2664_v13  ;;  %921 = vmatpush.msra.mxu1 %v2690_v18 }
 0x384   :  { %902 = vmatpush.msra.mxu0 %v2679_v16  ;;  %922 = vmatpush.msra.mxu1 %v2706_v21  ;;  %v450_v16 = vld [vmem:[#allocation2] sm:$0xc0] }
 0x386   :  { %903 = vmatpush.msra.mxu0 %v2695_v19  ;;  %923 = vmatpush.msra.mxu1 %v2719_v23 }
 0x388   :  { %904 = vmatpush.msra.mxu0 %v2711_v22  ;;  %924 = vmatpush.msra.mxu1 %v2727_v24 }
 0x3f6   :  { %v471_v0 = vpop.f32.mrf.mxu0  ;;  %v491_v13 = vpop.f32.mrf.mxu1 }
 0x3f7   :  { %v496_v1 = vrot.slane %v471_v0, 2  ;;  %v497_v15 = vrot.slane %v491_v13, 2 }
 0x3f9   :  { %v500_v6 = vadd.f32 %v496_v1, %v449_v4  ;;  %v501_v19 = vadd.f32 %v497_v15, %v450_v16 }
 0x3fb   :  { %v2201_v7 = vmul.f32 -1.442695, %v500_v6  ;;  %v2202_v37 = vmul.f32 -1.442695, %v501_v19 }
 0x3fd   :  { %2353 = vpow2.f32 %v2201_v7 }
 0x403   :  { %v2354_v8 = vpop.eup %2353 }
 0x404   :  { %v508_v12 = vadd.f32 1.0, %v2354_v8 }
 0x406   :  { %2355 = vrcp.f32 %v508_v12  ;;  %v521_v22 = vand.u32 2147483648, %v508_v12  ;;  %v519_v24 = vand.u32 2147483647, %v508_v12  ;;  %vm515_vm0 = vweird.f32 %v508_v12 }
 0x407   :  { %2357 = vtanh.f32 %v501_v19 }
 0x408   :  { %v522_v29 = vor.u32 1.1754944e-38, %v521_v22  ;;  %vm520_vm2 = vcmp.eq.f32.partialorder %v519_v24, 8.507059e+37  ;;  %2359 = vpow2.f32 %v2202_v37  ;;  %v665_v37 = vld [vmem:[#allocation2 + $0x18] sm:$0xc] }
 0x40c   :  { %v2356_v18 = vpop.eup %2355 }
 0x40d   :  { %v511_v21 = vmul.f32 %v2356_v18, %v508_v12  ;;  %vm516_vm15 = vweird.f32 %v2356_v18  ;;  %v2358_v33 = vpop.eup %2357 }
 0x40e   :  { %vm517_vm1 = vmor %vm515_vm0, %vm516_vm15  ;;  %v2360_v38 = vpop.eup %2359 }
 0x40f   :  { %v512_v23 = vsub.f32 1.0, %v511_v21  ;;  %v509_v39 = vadd.f32 1.0, %v2360_v38 }
 0x411   :  { %v513_v14 = vmul.f32 %v2356_v18, %v512_v23  ;;  %2361 = vrcp.f32 %v509_v39  ;;  %v536_v26 = vand.u32 2147483648, %v509_v39  ;;  %vm530_vm5 = vweird.f32 %v509_v39 }
 0x412   :  { %v534_v30 = vand.u32 2147483647, %v509_v39 }
 0x413   :  { %v514_v28 = vadd.f32 %v2356_v18, %v513_v14  ;;  %v537_v47 = vor.u32 1.1754944e-38, %v536_v26 }
 0x414   :  { %vm535_vm7 = vcmp.eq.f32.partialorder %v534_v30, 8.507059e+37 }
 0x415   :  { %v518_v32 = vsel %vm517_vm1, %v2356_v18, %v514_v28 }
 0x416   :  { %v523_v34 = vsel %vm520_vm2, %v522_v29, %v518_v32 }
 0x417   :  { %v545_v35 = vmul.f32 %v2358_v33, %v523_v34  ;;  %v544_v36 = vmul.f32 %v542_v31, %v523_v34  ;;  %v2362_v40 = vpop.eup %2361 }
 0x418   :  { %v526_v41 = vmul.f32 %v2362_v40, %v509_v39  ;;  %vm531_vm4 = vweird.f32 %v2362_v40 }
 0x419   :  { %547 = vrot.lane.b32.xlu1 %v545_v35, %s2552_s3  ;;  %vm532_vm6 = vmor %vm530_vm5, %vm531_vm4 }
 0x41a   :  { %v527_v42 = vsub.f32 1.0, %v526_v41 }
 0x41c   :  { %v528_v43 = vmul.f32 %v2362_v40, %v527_v42 }
 0x41e   :  { %v529_v45 = vadd.f32 %v2362_v40, %v528_v43 }
 0x420   :  { %v533_v46 = vsel %vm532_vm6, %v2362_v40, %v529_v45 }
 0x421   :  { %v538_v49 = vsel %vm535_vm7, %v537_v47, %v533_v46 }
 0x48b   :  { %v548_v44 = vpop.permute.xlu1 %547 }
 0x48c   :  { %v550_v27 = vadd.f32 %v548_v44, %v544_v36  ;;  %v666_v44 = vld [vmem:[#allocation2 + $0x8] sm:$0xc] }
 0x48e   :  { %2363 = vtanh.f32 %v550_v27  ;;  %v648_v0 = vrot.slane %v550_v27, 6 }
 0x494   :  { %v2364_v48 = vpop.eup %2363 }
 0x495   :  { %v2901_v50 = vmul.f32 %v2364_v48, %v538_v49 }
 0x497   :  { %v563_v51 = vrot.slane %v2901_v50, 6  ;;  %554 = vst.msk [vmem:[#allocation3] sm:$0xc0] %vm553_vm8, %v2901_v50 }
 0x499   :  { %2203 = vmatmul.msk.f32.vlgmr.msra.gmra.mxu2 %vm124_vm9, %v563_v51  ;;  %2204 = vmatmul.msk.f32.vlgmr.msra.gmra.mxu3 %vm124_vm9, %v563_v51 }
 0x51c   :  { %v583_v53 = vpop.f32.mrf.mxu2  ;;  %v603_v58 = vpop.f32.mrf.mxu3 }
 0x51d   :  { %v606_v54 = vadd.f32 %v583_v53, %v561_v52  ;;  %v607_v61 = vadd.f32 %v603_v58, %v562_v59 }
 0x51f   :  { %v2205_v55 = vmul.f32 -1.442695, %v606_v54  ;;  %v2206_v12 = vmul.f32 -1.442695, %v607_v61 }
 0x521   :  { %2365 = vpow2.f32 %v2205_v55 }
 0x527   :  { %v2366_v56 = vpop.eup %2365 }
 0x528   :  { %v614_v57 = vadd.f32 1.0, %v2366_v56 }
 0x52a   :  { %2367 = vrcp.f32 %v614_v57  ;;  %v627_v2 = vand.u32 2147483648, %v614_v57  ;;  %v625_v5 = vand.u32 2147483647, %v614_v57  ;;  %vm621_vm12 = vweird.f32 %v614_v57 }
 0x52b   :  { %2369 = vtanh.f32 %v607_v61 }
 0x52c   :  { %v628_v11 = vor.u32 1.1754944e-38, %v627_v2  ;;  %vm626_vm15 = vcmp.eq.f32.partialorder %v625_v5, 8.507059e+37  ;;  %2371 = vpow2.f32 %v2206_v12 }
 0x530   :  { %v2368_v60 = vpop.eup %2367 }
 0x531   :  { %v617_v62 = vmul.f32 %v2368_v60, %v614_v57  ;;  %vm622_vm11 = vweird.f32 %v2368_v60  ;;  %v2370_v4 = vpop.eup %2369 }
 0x532   :  { %vm623_vm13 = vmor %vm621_vm12, %vm622_vm11  ;;  %v2372_v13 = vpop.eup %2371 }
 0x533   :  { %v618_v63 = vsub.f32 1.0, %v617_v62  ;;  %v615_v15 = vadd.f32 1.0, %v2372_v13 }
 0x535   :  { %v619_v3 = vmul.f32 %v2368_v60, %v618_v63  ;;  %2373 = vrcp.f32 %v615_v15  ;;  %v642_v24 = vand.u32 2147483648, %v615_v15  ;;  %vm636_vm1 = vweird.f32 %v615_v15 }
 0x536   :  { %v640_v28 = vand.u32 2147483647, %v615_v15 }
 0x537   :  { %v620_v9 = vadd.f32 %v2368_v60, %v619_v3  ;;  %v643_v31 = vor.u32 1.1754944e-38, %v642_v24 }
 0x538   :  { %vm641_vm4 = vcmp.eq.f32.partialorder %v640_v28, 8.507059e+37  ;;  %v775_v28 = vld [vmem:[#allocation2 + $0x8] sm:$0x30] }
 0x539   :  { %v624_v1 = vsel %vm623_vm13, %v2368_v60, %v620_v9 }
 0x53a   :  { %v629_v6 = vsel %vm626_vm15, %v628_v11, %v624_v1 }
 0x53b   :  { %v651_v7 = vmul.f32 %v2370_v4, %v629_v6  ;;  %v650_v8 = vmul.f32 %v648_v0, %v629_v6  ;;  %v2374_v16 = vpop.eup %2373 }
 0x53c   :  { %v632_v18 = vmul.f32 %v2374_v16, %v615_v15  ;;  %vm637_vm0 = vweird.f32 %v2374_v16 }
 0x53d   :  { %653 = vrot.lane.b32.xlu2 %v651_v7, %s2552_s3  ;;  %vm638_vm2 = vmor %vm636_vm1, %vm637_vm0  ;;  %vm224_vm0 = vcmask 1041920  }
 0x53e   :  { %v633_v19 = vsub.f32 1.0, %v632_v18  ;;  %v774_v18 = vld [vmem:[#allocation2 + $0x18] sm:$0x30] }
 0x540   :  { %v634_v21 = vmul.f32 %v2374_v16, %v633_v19 }
 0x542   :  { %v635_v14 = vadd.f32 %v2374_v16, %v634_v21 }
 0x544   :  { %v639_v29 = vsel %vm638_vm2, %v2374_v16, %v635_v14 }
 0x545   :  { %v644_v33 = vsel %vm641_vm4, %v643_v31, %v639_v29 }
 0x597   :  { %v654_v23 = vpop.permute.xlu2 %653 }
 0x598   :  { %v656_v22 = vadd.f32 %v654_v23, %v650_v8 }
 0x59a   :  { %2375 = vtanh.f32 %v656_v22  ;;  %v757_v52 = vrot.slane %v656_v22, 6 }
 0x5a0   :  { %v2376_v32 = vpop.eup %2375 }
 0x5a1   :  { %v2909_v34 = vmul.f32 %v2376_v32, %v644_v33 }
 0x5a3   :  { %2207 = vmatmul.msk.f32.vlgmr.msrb.gmra.mxu0 %vm124_vm9, %v2909_v34  ;;  %2208 = vmatmul.msk.f32.vlgmr.msrb.gmra.mxu1 %vm124_vm9, %v2909_v34 }
 0x620   :  { %v686_v35 = vpop.f32.mrf.mxu0  ;;  %v706_v42 = vpop.f32.mrf.mxu1 }
 0x621   :  { %v711_v36 = vrot.slane %v686_v35, 6  ;;  %v712_v43 = vrot.slane %v706_v42, 6 }
 0x623   :  { %v715_v38 = vadd.f32 %v711_v36, %v665_v37  ;;  %v716_v45 = vadd.f32 %v712_v43, %v666_v44 }
 0x625   :  { %v2209_v39 = vmul.f32 -1.442695, %v715_v38  ;;  %v2210_v58 = vmul.f32 -1.442695, %v716_v45 }
 0x627   :  { %2377 = vpow2.f32 %v2209_v39 }
 0x62d   :  { %v2378_v40 = vpop.eup %2377 }
 0x62e   :  { %v723_v41 = vadd.f32 1.0, %v2378_v40 }
 0x630   :  { %2379 = vrcp.f32 %v723_v41  ;;  %v736_v46 = vand.u32 2147483648, %v723_v41  ;;  %v734_v48 = vand.u32 2147483647, %v723_v41  ;;  %vm730_vm6 = vweird.f32 %v723_v41 }
 0x631   :  { %2381 = vtanh.f32 %v716_v45 }
 0x632   :  { %v737_v51 = vor.u32 1.1754944e-38, %v736_v46  ;;  %vm735_vm11 = vcmp.eq.f32.partialorder %v734_v48, 8.507059e+37  ;;  %2383 = vpow2.f32 %v2210_v58 }
 0x636   :  { %v2380_v27 = vpop.eup %2379 }
 0x637   :  { %v726_v26 = vmul.f32 %v2380_v27, %v723_v41  ;;  %vm731_vm5 = vweird.f32 %v2380_v27  ;;  %v2382_v54 = vpop.eup %2381 }
 0x638   :  { %vm732_vm7 = vmor %vm730_vm6, %vm731_vm5  ;;  %v2384_v59 = vpop.eup %2383 }
 0x639   :  { %v727_v30 = vsub.f32 1.0, %v726_v26  ;;  %v724_v60 = vadd.f32 1.0, %v2384_v59 }
 0x63b   :  { %v728_v47 = vmul.f32 %v2380_v27, %v727_v30  ;;  %2385 = vrcp.f32 %v724_v60  ;;  %v751_v11 = vand.u32 2147483648, %v724_v60  ;;  %vm745_vm13 = vweird.f32 %v724_v60 }
 0x63c   :  { %v749_v0 = vand.u32 2147483647, %v724_v60 }
 0x63d   :  { %v729_v49 = vadd.f32 %v2380_v27, %v728_v47  ;;  %v752_v4 = vor.u32 1.1754944e-38, %v751_v11 }
 0x63e   :  { %vm750_vm1 = vcmp.eq.f32.partialorder %v749_v0, 8.507059e+37 }
 0x63f   :  { %v733_v53 = vsel %vm732_vm7, %v2380_v27, %v729_v49 }
 0x640   :  { %v738_v55 = vsel %vm735_vm11, %v737_v51, %v733_v53 }
 0x641   :  { %v760_v56 = vmul.f32 %v2382_v54, %v738_v55  ;;  %v759_v57 = vmul.f32 %v757_v52, %v738_v55  ;;  %v2386_v61 = vpop.eup %2385 }
 0x642   :  { %v741_v62 = vmul.f32 %v2386_v61, %v724_v60  ;;  %vm746_vm12 = vweird.f32 %v2386_v61 }
 0x643   :  { %762 = vrot.lane.b32.xlu2 %v760_v56, %s2552_s3  ;;  %vm747_vm15 = vmor %vm745_vm13, %vm746_vm12  ;;  %vm335_vm13 = vcmask 1043970  }
 0x644   :  { %v742_v63 = vsub.f32 1.0, %v741_v62 }
 0x646   :  { %v743_v2 = vmul.f32 %v2386_v61, %v742_v63 }
 0x648   :  { %v744_v9 = vadd.f32 %v2386_v61, %v743_v2 }
 0x64a   :  { %v748_v1 = vsel %vm747_vm15, %v2386_v61, %v744_v9 }
 0x64b   :  { %661 = vrot.lane.b32.xlu2 %v2909_v34, %s2552_s3  ;;  %v753_v8 = vsel %vm750_vm1, %v752_v4, %v748_v1 }
 0x69d   :  { %v763_v3 = vpop.permute.xlu2 %762 }
 0x69e   :  { %v765_v5 = vadd.f32 %v763_v3, %v759_v57  ;;  %v884_v3 = vld [vmem:[#allocation2 + $0x18] sm:$0xc0] }
 0x6a0   :  { %2387 = vtanh.f32 %v765_v5  ;;  %v867_v40 = vrot.slane %v765_v5, 6 }
 0x6a5   :  { %v662_v6 = vpop.permute.xlu2 %661 }
 0x6a6   :  { %v2388_v7 = vpop.eup %2387  ;;  %664 = vst.msk [vmem:[#allocation3 + $0x6] sm:$0x3] %vm224_vm0, %v662_v6  ;;  %v885_v6 = vld [vmem:[#allocation2 + $0x8] sm:$0xc0] }
 0x6a7   :  { %v2919_v12 = vmul.f32 %v2388_v7, %v753_v8 }
 0x6a9   :  { %v776_v13 = vrot.slane %v2919_v12, 2 }
 0x6ab   :  { %2211 = vmatmul.msk.f32.vlgmr.msrb.gmra.mxu2 %vm124_vm9, %v776_v13  ;;  %2212 = vmatmul.msk.f32.vlgmr.msrb.gmra.mxu3 %vm124_vm9, %v776_v13 }
 0x72e   :  { %v796_v15 = vpop.f32.mrf.mxu2  ;;  %v816_v14 = vpop.f32.mrf.mxu3 }
 0x72f   :  { %v821_v16 = vrot.slane %v796_v15, 4  ;;  %v822_v24 = vrot.slane %v816_v14, 4 }
 0x731   :  { %v825_v19 = vadd.f32 %v821_v16, %v774_v18  ;;  %v826_v31 = vadd.f32 %v822_v24, %v775_v28 }
 0x733   :  { %v2213_v21 = vmul.f32 -1.442695, %v825_v19  ;;  %v2214_v45 = vmul.f32 -1.442695, %v826_v31 }
 0x735   :  { %2389 = vpow2.f32 %v2213_v21 }
 0x73b   :  { %v2390_v23 = vpop.eup %2389 }
 0x73c   :  { %v833_v22 = vadd.f32 1.0, %v2390_v23 }
 0x73e   :  { %2391 = vrcp.f32 %v833_v22  ;;  %v846_v35 = vand.u32 2147483648, %v833_v22  ;;  %v844_v37 = vand.u32 2147483647, %v833_v22  ;;  %vm840_vm4 = vweird.f32 %v833_v22 }
 0x73f   :  { %2393 = vtanh.f32 %v826_v31 }
 0x740   :  { %v847_v39 = vor.u32 1.1754944e-38, %v846_v35  ;;  %vm845_vm6 = vcmp.eq.f32.partialorder %v844_v37, 8.507059e+37  ;;  %2395 = vpow2.f32 %v2214_v45 }
 0x744   :  { %v2392_v29 = vpop.eup %2391 }
 0x745   :  { %v836_v32 = vmul.f32 %v2392_v29, %v833_v22  ;;  %vm841_vm2 = vweird.f32 %v2392_v29  ;;  %v2394_v42 = vpop.eup %2393 }
 0x746   :  { %vm842_vm5 = vmor %vm840_vm4, %vm841_vm2  ;;  %v2396_v26 = vpop.eup %2395 }
 0x747   :  { %v837_v33 = vsub.f32 1.0, %v836_v32  ;;  %v834_v30 = vadd.f32 1.0, %v2396_v26  ;;  %v1016_v26 = vld [vmem:[%s3575_s4 + $0xb0] sm:$0xff] }
 0x749   :  { %v838_v36 = vmul.f32 %v2392_v29, %v837_v33  ;;  %2397 = vrcp.f32 %v834_v30  ;;  %v861_v54 = vand.u32 2147483648, %v834_v30  ;;  %vm855_vm11 = vweird.f32 %v834_v30 }
 0x74a   :  { %v859_v55 = vand.u32 2147483647, %v834_v30 }
 0x74b   :  { %v839_v38 = vadd.f32 %v2392_v29, %v838_v36  ;;  %v862_v57 = vor.u32 1.1754944e-38, %v861_v54  ;;  %v1013_v54 = vld [vmem:[%s3575_s4 + $0x98] sm:$0xff] }
 0x74c   :  { %vm860_vm15 = vcmp.eq.f32.partialorder %v859_v55, 8.507059e+37 }
 0x74d   :  { %v843_v41 = vsel %vm842_vm5, %v2392_v29, %v839_v38 }
 0x74e   :  { %v848_v43 = vsel %vm845_vm6, %v847_v39, %v843_v41  ;;  %v1024_v39 = vld [vmem:[%s3575_s4 + $0xf0] sm:$0xff] }
 0x74f   :  { %v870_v44 = vmul.f32 %v2394_v42, %v848_v43  ;;  %v869_v27 = vmul.f32 %v867_v40, %v848_v43  ;;  %v2398_v46 = vpop.eup %2397  ;;  %v1025_v40 = vld [vmem:[%s3575_s4 + $0xf8] sm:$0xff]  ;;  %1050 = vmatpush.msra.mxu2 %v1024_v39  ;;  %v1020_v41 = vld [vmem:[%s3575_s4 + $0xd0] sm:$0xff] }
 0x750   :  { %v851_v47 = vmul.f32 %v2398_v46, %v834_v30  ;;  %vm856_vm7 = vweird.f32 %v2398_v46  ;;  %1073 = vmatpush.msra.mxu3 %v1025_v40  ;;  %v1021_v42 = vld [vmem:[%s3575_s4 + $0xd8] sm:$0xff]  ;;  %v3141_v40 = vld [vmem:[%s3576_s5] sm:$0xff] }
 0x751   :  { %872 = vrot.lane.b32.xlu0 %v870_v44, %s2552_s3  ;;  %vm857_vm12 = vmor %vm855_vm11, %vm856_vm7  ;;  %v1018_v44 = vld [vmem:[%s3575_s4 + $0xc0] sm:$0xff]  ;;  %v1017_v30 = vld [vmem:[%s3575_s4 + $0xb8] sm:$0xff] }
 0x752   :  { %v852_v48 = vsub.f32 1.0, %v851_v47  ;;  %v3133_v39 = vld [vmem:[%s3576_s5 + $0x18] sm:$0xff] }
 0x754   :  { %v853_v49 = vmul.f32 %v2398_v46, %v852_v48  ;;  %v1014_v48 = vld [vmem:[%s3575_s4 + $0xa0] sm:$0xff] }
 0x756   :  { %v854_v53 = vadd.f32 %v2398_v46, %v853_v49  ;;  %v1015_v49 = vld [vmem:[%s3575_s4 + $0xa8] sm:$0xff] }
 0x758   :  { %v858_v56 = vsel %vm857_vm12, %v2398_v46, %v854_v53  ;;  %v1012_v53 = vld [vmem:[%s3575_s4 + $0x90] sm:$0xff]  ;;  %vm447_vm12 = vcmask 1046020  }
 0x759   :  { %770 = vrot.lane.b32.xlu0 %v2919_v12, %s2552_s3  ;;  %v863_v60 = vsel %vm860_vm15, %v862_v57, %v858_v56  ;;  %v1010_v57 = vld [vmem:[%s3575_s4 + $0x80] sm:$0xff] }
 0x7c3   :  { %v873_v51 = vpop.permute.xlu0 %872 }
 0x7c4   :  { %v875_v52 = vadd.f32 %v873_v51, %v869_v27  ;;  %v1019_v27 = vld [vmem:[%s3575_s4 + $0xc8] sm:$0xff] }
 0x7c6   :  { %2399 = vtanh.f32 %v875_v52  ;;  %v977_v22 = vrot.slane %v875_v52, 6 }
 0x7cb   :  { %v771_v58 = vpop.permute.xlu0 %770 }
 0x7cc   :  { %v2400_v59 = vpop.eup %2399  ;;  %773 = vst.msk [vmem:[#allocation3 + $0x2] sm:$0xc] %vm335_vm13, %v771_v58  ;;  %v1011_v58 = vld [vmem:[%s3575_s4 + $0x88] sm:$0xff] }
 0x7cd   :  { %v2928_v61 = vmul.f32 %v2400_v59, %v863_v60 }
 0x7cf   :  { %v886_v62 = vrot.slane %v2928_v61, 4 }
 0x7d1   :  { %2215 = vmatmul.msk.f32.vlgmr.msra.gmra.mxu0 %vm124_vm9, %v886_v62  ;;  %2216 = vmatmul.msk.f32.vlgmr.msra.gmra.mxu1 %vm124_vm9, %v886_v62  ;;  %v1008_v62 = vld [vmem:[%s3575_s4 + $0x70] sm:$0xff] }
 0x84e   :  { %v906_v63 = vpop.f32.mrf.mxu0  ;;  %v926_v1 = vpop.f32.mrf.mxu1 }
 0x84f   :  { %v931_v2 = vrot.slane %v906_v63, 2  ;;  %v932_v4 = vrot.slane %v926_v1, 2  ;;  %v1009_v63 = vld [vmem:[%s3575_s4 + $0x78] sm:$0xff] }
 0x850   :  { %v1005_v1 = vld [vmem:[%s3575_s4 + $0x58] sm:$0xff] }
 0x851   :  { %v935_v5 = vadd.f32 %v931_v2, %v884_v3  ;;  %v936_v8 = vadd.f32 %v932_v4, %v885_v6  ;;  %v1002_v4 = vld [vmem:[%s3575_s4 + $0x40] sm:$0xff]  ;;  %v1003_v6 = vld [vmem:[%s3575_s4 + $0x48] sm:$0xff] }
 0x853   :  { %v2217_v9 = vmul.f32 -1.442695, %v935_v5  ;;  %v2218_v32 = vmul.f32 -1.442695, %v936_v8 }
 0x855   :  { %2401 = vpow2.f32 %v2217_v9  ;;  %v1006_v9 = vld [vmem:[%s3575_s4 + $0x60] sm:$0xff] }
 0x85b   :  { %v2402_v11 = vpop.eup %2401 }
 0x85c   :  { %v943_v0 = vadd.f32 1.0, %v2402_v11  ;;  %v1007_v11 = vld [vmem:[%s3575_s4 + $0x68] sm:$0xff] }
 0x85e   :  { %2403 = vrcp.f32 %v943_v0  ;;  %v956_v16 = vand.u32 2147483648, %v943_v0  ;;  %v954_v19 = vand.u32 2147483647, %v943_v0  ;;  %vm950_vm2 = vweird.f32 %v943_v0 }
 0x85f   :  { %2405 = vtanh.f32 %v936_v8 }
 0x860   :  { %v957_v23 = vor.u32 1.1754944e-38, %v956_v16  ;;  %vm955_vm5 = vcmp.eq.f32.partialorder %v954_v19, 8.507059e+37  ;;  %2407 = vpow2.f32 %v2218_v32  ;;  %v998_v16 = vld [vmem:[%s3575_s4 + $0x20] sm:$0xff]  ;;  %v3094_v32 = vld [vmem:[%s3576_s5 + $0x48] sm:$0xff] }
 0x861   :  { %v994_v19 = vld [vmem:[%s3575_s4] sm:$0xff] }
 0x864   :  { %v2404_v7 = vpop.eup %2403 }
 0x865   :  { %v946_v13 = vmul.f32 %v2404_v7, %v943_v0  ;;  %vm951_vm1 = vweird.f32 %v2404_v7  ;;  %v2406_v24 = vpop.eup %2405  ;;  %v1004_v0 = vld [vmem:[%s3575_s4 + $0x50] sm:$0xff] }
 0x866   :  { %vm952_vm4 = vmor %vm950_vm2, %vm951_vm1  ;;  %v2408_v33 = vpop.eup %2407  ;;  %vm559_vm1 = vcmask 1048070  }
 0x867   :  { %v947_v15 = vsub.f32 1.0, %v946_v13  ;;  %v944_v35 = vadd.f32 1.0, %v2408_v33  ;;  %v1000_v13 = vld [vmem:[%s3575_s4 + $0x30] sm:$0xff] }
 0x868   :  { %v3102_v33 = vld [vmem:[%s3576_s5 + $0x30] sm:$0xff] }
 0x869   :  { %v948_v18 = vmul.f32 %v2404_v7, %v947_v15  ;;  %2409 = vrcp.f32 %v944_v35  ;;  %v971_v51 = vand.u32 2147483648, %v944_v35  ;;  %vm965_vm7 = vweird.f32 %v944_v35  ;;  %v1001_v15 = vld [vmem:[%s3575_s4 + $0x38] sm:$0xff] }
 0x86a   :  { %v969_v52 = vand.u32 2147483647, %v944_v35 }
 0x86b   :  { %v949_v21 = vadd.f32 %v2404_v7, %v948_v18  ;;  %v972_v59 = vor.u32 1.1754944e-38, %v971_v51  ;;  %v997_v18 = vld [vmem:[%s3575_s4 + $0x18] sm:$0xff]  ;;  %v1203_v51 = vld [vmem:[%s3578_s7 + $0x30] sm:$0xff] }
 0x86c   :  { %vm970_vm15 = vcmp.eq.f32.partialorder %v969_v52, 8.507059e+37 }
 0x86d   :  { %v953_v14 = vsel %vm952_vm4, %v2404_v7, %v949_v21  ;;  %v995_v21 = vld [vmem:[%s3575_s4 + $0x8] sm:$0xff] }
 0x86e   :  { %v958_v28 = vsel %vm955_vm5, %v957_v23, %v953_v14  ;;  %v3054_v23 = vld [vmem:[%s3576_s5 + $0x70] sm:$0xff]  ;;  %v3064_v14 = vld [vmem:[%s3576_s5 + $0x60] sm:$0xff] }
 0x86f   :  { %v980_v29 = vmul.f32 %v2406_v24, %v958_v28  ;;  %v979_v31 = vmul.f32 %v977_v22, %v958_v28  ;;  %v2410_v36 = vpop.eup %2409  ;;  %v3059_v22 = vld [vmem:[%s3576_s5 + $0x78] sm:$0xff]  ;;  %1115 = vmatpush.msrb.mxu0 %v3054_v23  ;;  %v3071_v24 = vld [vmem:[%s3576_s5 + $0x68] sm:$0xff]  ;;  %v3076_v28 = vld [vmem:[%s3576_s5 + $0x50] sm:$0xff] }
 0x870   :  { %v961_v37 = vmul.f32 %v2410_v36, %v944_v35  ;;  %vm966_vm6 = vweird.f32 %v2410_v36  ;;  %1135 = vmatpush.msrb.mxu1 %v3059_v22  ;;  %v3107_v35 = vld [vmem:[%s3576_s5 + $0x38] sm:$0xff] }
 0x871   :  { %982 = vrot.lane.b32.xlu1 %v980_v29, %s2552_s3  ;;  %vm2982_vm11 = vmor %vm965_vm7, %vm966_vm6  ;;  %v3081_v29 = vld [vmem:[%s3576_s5 + $0x58] sm:$0xff]  ;;  %1116 = vmatpush.msrb.mxu0 %v3064_v14 }
 0x872   :  { %v962_v38 = vsub.f32 1.0, %v961_v37  ;;  %1136 = vmatpush.msrb.mxu1 %v3071_v24  ;;  %v3120_v37 = vld [vmem:[%s3576_s5 + $0x28] sm:$0xff] }
 0x873   :  { %1117 = vmatpush.msrb.mxu0 %v3076_v28 }
 0x874   :  { %v963_v43 = vmul.f32 %v2410_v36, %v962_v38  ;;  %1137 = vmatpush.msrb.mxu1 %v3081_v29  ;;  %v3128_v38 = vld [vmem:[%s3576_s5 + $0x10] sm:$0xff] }
 0x876   :  { %v964_v47 = vadd.f32 %v2410_v36, %v963_v43  ;;  %1138 = vmatpush.msrb.mxu1 %v3094_v32 }
 0x878   :  { %v968_v56 = vsel %vm2982_vm11, %v2410_v36, %v964_v47  ;;  %v3115_v36 = vld [vmem:[%s3576_s5 + $0x20] sm:$0xff]  ;;  %1139 = vmatpush.msrb.mxu1 %v3107_v35 }
 0x879   :  { %880 = vrot.lane.b32.xlu1 %v2928_v61, %s2552_s3  ;;  %v973_v3 = vsel %vm970_vm15, %v972_v59, %v968_v56 }
 0x87a   :  { %1140 = vmatpush.msrb.mxu1 %v3120_v37 }
 0x87c   :  { %1141 = vmatpush.msrb.mxu1 %v3133_v39 }
 0x881   :  { %221 = vrot.lane.b32.xlu1 %v2815_v20, %s2552_s3  ;;  %v1022_v20 = vld [vmem:[%s3575_s4 + $0xe0] sm:$0xff] }
 0x882   :  { %1051 = vmatpush.msra.mxu2 %v1022_v20  ;;  %v3146_v20 = vld [vmem:[%s3576_s5 + $0x8] sm:$0xff] }
 0x883   :  { %1142 = vmatpush.msrb.mxu1 %v3146_v20 }
 0x884   :  { %1052 = vmatpush.msra.mxu2 %v1020_v41  ;;  %1143 = vmatmul.f32.vlgmr.msrb.gmra.mxu1 %v2551_v25 }
 0x885   :  { %1239 = vmatpush.msra.mxu1 %v3054_v23 }
 0x886   :  { %1053 = vmatpush.msra.mxu2 %v1018_v44 }
 0x887   :  { %1240 = vmatpush.msra.mxu1 %v3064_v14 }
 0x888   :  { %1054 = vmatpush.msra.mxu2 %v1016_v26 }
 0x889   :  { %556 = vrot.lane.b32.xlu1 %v2901_v50, %s2552_s3  ;;  %v1023_v50 = vld [vmem:[%s3575_s4 + $0xe8] sm:$0xff]  ;;  %1241 = vmatpush.msra.mxu1 %v3076_v28 }
 0x88a   :  { %1074 = vmatpush.msra.mxu3 %v1023_v50  ;;  %1055 = vmatpush.msra.mxu2 %v1014_v48 }
 0x88c   :  { %1075 = vmatpush.msra.mxu3 %v1021_v42  ;;  %1056 = vmatpush.msra.mxu2 %v1012_v53 }
 0x88e   :  { %1076 = vmatpush.msra.mxu3 %v1019_v27  ;;  %1057 = vmatpush.msra.mxu2 %v1010_v57 }
 0x890   :  { %1077 = vmatpush.msra.mxu3 %v1017_v30  ;;  %1058 = vmatpush.msra.mxu2 %v1008_v62 }
 0x892   :  { %1078 = vmatpush.msra.mxu3 %v1015_v49  ;;  %1059 = vmatpush.msra.mxu2 %v1006_v9  ;;  %v1204_v49 = vld [vmem:[%s3578_s7 + $0x38] sm:$0xff] }
 0x894   :  { %1079 = vmatpush.msra.mxu3 %v1013_v54  ;;  %1060 = vmatpush.msra.mxu2 %v1004_v0 }
 0x896   :  { %1080 = vmatpush.msra.mxu3 %v1011_v58  ;;  %1061 = vmatpush.msra.mxu2 %v1002_v4  ;;  %v1202_v4 = vld [vmem:[%s3578_s7 + $0x28] sm:$0xff] }
 0x898   :  { %1081 = vmatpush.msra.mxu3 %v1009_v63  ;;  %1062 = vmatpush.msra.mxu2 %v1000_v13 }
 0x89a   :  { %1082 = vmatpush.msra.mxu3 %v1007_v11  ;;  %1063 = vmatpush.msra.mxu2 %v998_v16  ;;  %v1197_v16 = vld [vmem:[%s3578_s7] sm:$0xff] }
 0x89c   :  { %1083 = vmatpush.msra.mxu3 %v1005_v1 }
 0x89e   :  { %1084 = vmatpush.msra.mxu3 %v1003_v6  ;;  %v1201_v6 = vld [vmem:[%s3578_s7 + $0x20] sm:$0xff] }
 0x8a0   :  { %1085 = vmatpush.msra.mxu3 %v1001_v15  ;;  %v1198_v15 = vld [vmem:[%s3578_s7 + $0x8] sm:$0xff] }
 0x8e3   :  { %v983_v45 = vpop.permute.xlu1 %982 }
 0x8e4   :  { %v985_v46 = vadd.f32 %v983_v45, %v979_v31  ;;  %v3089_v31 = vld [vmem:[%s3576_s5 + $0x40] sm:$0xff] }
 0x8e5   :  { %1118 = vmatpush.msrb.mxu0 %v3089_v31  ;;  %1242 = vmatpush.msra.mxu1 %v3089_v31 }
 0x8e6   :  { %2411 = vtanh.f32 %v985_v46 }
 0x8e7   :  { %1119 = vmatpush.msrb.mxu0 %v3102_v33  ;;  %1243 = vmatpush.msra.mxu1 %v3102_v33 }
 0x8e9   :  { %1120 = vmatpush.msrb.mxu0 %v3115_v36  ;;  %1244 = vmatpush.msra.mxu1 %v3115_v36 }
 0x8eb   :  { %v881_v60 = vpop.permute.xlu1 %880  ;;  %1121 = vmatpush.msrb.mxu0 %v3128_v38  ;;  %1245 = vmatpush.msra.mxu1 %v3128_v38 }
 0x8ec   :  { %v2412_v2 = vpop.eup %2411  ;;  %883 = vst.msk [vmem:[#allocation3 - $0x2] sm:$0x30] %vm447_vm12, %v881_v60 }
 0x8ed   :  { %v987_v5 = vmul.f32 %v2412_v2, %v973_v3  ;;  %1122 = vmatpush.msrb.mxu0 %v3141_v40  ;;  %1246 = vmatpush.msra.mxu1 %v3141_v40 }
 0x8ee   :  { %1123 = vmatmul.f32.vlgmr.msrb.gmra.mxu0 %v2551_v25 }
 0x8ef   :  { %990 = vrot.lane.b32.xlu2 %v987_v5, %s2552_s3  ;;  %1394 = vmatpush.msrb.mxu1 %v3059_v22 }
 0x8f0   :  { %1216 = vmatpush.msra.mxu0 %v1204_v49 }
 0x8f1   :  { %1395 = vmatpush.msrb.mxu1 %v3071_v24 }
 0x8f2   :  { %1217 = vmatpush.msra.mxu0 %v1203_v51 }
 0x8f3   :  { %v222_v7 = vpop.permute.xlu1 %221  ;;  %1396 = vmatpush.msrb.mxu1 %v3081_v29 }
 0x8f4   :  { %225 = vst.msk [vmem:[#allocation3 + $0xe] sm:$0x3] %vm224_vm0, %v222_v7  ;;  %1218 = vmatpush.msra.mxu0 %v1202_v4  ;;  %v1200_v7 = vld [vmem:[%s3578_s7 + $0x18] sm:$0xff] }
 0x8f5   :  { %988 = vst.msk [vmem:[#allocation3 + $0x8] sm:$0xc0] %vm553_vm8, %v987_v5  ;;  %1397 = vmatpush.msrb.mxu1 %v3094_v32 }
 0x8f6   :  { %1219 = vmatpush.msra.mxu0 %v1201_v6 }
 0x8f7   :  { %332 = vrot.lane.b32.xlu2 %v2848_v17, %s2552_s3  ;;  %v999_v17 = vld [vmem:[%s3575_s4 + $0x28] sm:$0xff]  ;;  %1398 = vmatpush.msrb.mxu1 %v3107_v35 }
 0x8f8   :  { %1086 = vmatpush.msra.mxu3 %v999_v17  ;;  %1220 = vmatpush.msra.mxu0 %v1200_v7 }
 0x8f9   :  { %1399 = vmatpush.msrb.mxu1 %v3120_v37 }
 0x8fa   :  { %1087 = vmatpush.msra.mxu3 %v997_v18 }
 0x8fb   :  { %v557_v8 = vpop.permute.xlu1 %556  ;;  %1400 = vmatpush.msrb.mxu1 %v3133_v39 }
 0x8fc   :  { %560 = vst.msk [vmem:[#allocation3 + $0x2] sm:$0xc0] %vm559_vm1, %v557_v8  ;;  %1088 = vmatpush.msra.mxu3 %v995_v21 }
 0x8fd   :  { %659 = vst.msk [vmem:[#allocation3 + $0x8] sm:$0x3] %vm218_vm10, %v2909_v34  ;;  %v996_v34 = vld [vmem:[%s3575_s4 + $0x10] sm:$0xff]  ;;  %1401 = vmatpush.msrb.mxu1 %v3146_v20 }
 0x8fe   :  { %1064 = vmatpush.msra.mxu2 %v996_v34 }
 0x900   :  { %1065 = vmatpush.msra.mxu2 %v994_v19 }
 0x901   :  { %v1144_v55 = vpop.f32.mrf.mxu1 }
 0x902   :  { %1259 = vmatpush.msrb.mxu2 %v3059_v22 }
 0x904   :  { %1260 = vmatpush.msrb.mxu2 %v3071_v24 }
 0x906   :  { %1261 = vmatpush.msrb.mxu2 %v3081_v29 }
 0x908   :  { %1262 = vmatpush.msrb.mxu2 %v3094_v32 }
 0x90a   :  { %1263 = vmatpush.msrb.mxu2 %v3107_v35 }
 0x90c   :  { %1264 = vmatpush.msrb.mxu2 %v3120_v37 }
 0x90e   :  { %1265 = vmatpush.msrb.mxu2 %v3133_v39 }
 0x910   :  { %1266 = vmatpush.msrb.mxu2 %v3146_v20 }
 0x949   :  { %v991_v50 = vpop.permute.xlu2 %990 }
 0x94a   :  { %993 = vst.msk [vmem:[#allocation3 - $0x6] sm:$0xc0] %vm559_vm1, %v991_v50 }
 0x951   :  { %v333_v25 = vpop.permute.xlu2 %332  ;;  %v1043_v41 = vld [vmem:[#allocation3] sm:$0xff] }
 0x952   :  { %336 = vst.msk [vmem:[#allocation3 + $0xa] sm:$0xc] %vm335_vm13, %v333_v25  ;;  %1066 = vmatmul.f32.vlgmr.msra.gmra.mxu2 %v1043_v41  ;;  %1089 = vmatmul.f32.vlgmr.msra.gmra.mxu3 %v1043_v41 }
 0x953   :  { %878 = vst.msk [vmem:[#allocation3 + $0x8] sm:$0x30] %vm441_vm14, %v2928_v61  ;;  %v3180_v61 = vld [vmem:[%s3577_s6] sm:$0x3] }
 0x954   :  { %v1046_v42 = vperm.slane %v3180_v61, 0  ;;  %v1047_v43 = vperm.slane %v3180_v61, 1 }
 0x96b   :  { %v1124_v30 = vpop.f32.mrf.mxu0 }
 0x9d5   :  { %v1067_v44 = vpop.f32.mrf.mxu2  ;;  %v1090_v27 = vpop.f32.mrf.mxu3 }
 0x9d6   :  { %v1068_v45 = vadd.f32 %v1067_v44, %v1046_v42  ;;  %v1091_v26 = vadd.f32 %v1090_v27, %v1047_v43 }
 0x9d8   :  { %1096 = vst [vmem:[#allocation2 + $0x10] sm:$0xff] %v1068_v45 }
 0x9d9   :  { %1097 = vst [vmem:[#allocation2] sm:$0xff] %v1091_v26 }
 0x9df   :  { %v1105_v46 = vld [vmem:[#allocation2 + $0x10] sm:$0x3] }
 0x9e0   :  { %v1147_v47 = vadd.f32 %v1124_v30, %v1105_v46  ;;  %v1106_v54 = vld [vmem:[#allocation2] sm:$0x3] }
 0x9e1   :  { %v1148_v57 = vadd.f32 %v1144_v55, %v1106_v54 }
 0x9e2   :  { %v2219_v48 = vmul.f32 -1.442695, %v1147_v47 }
 0x9e3   :  { %v2220_v1 = vmul.f32 -1.442695, %v1148_v57 }
 0x9e4   :  { %2413 = vpow2.f32 %v2219_v48 }
 0x9ea   :  { %v2414_v52 = vpop.eup %2413 }
 0x9eb   :  { %v1155_v53 = vadd.f32 1.0, %v2414_v52  ;;  %v1229_v52 = vld [vmem:[#allocation2 + $0x10] sm:$0xc] }
 0x9ed   :  { %2415 = vrcp.f32 %v1155_v53  ;;  %v1168_v60 = vand.u32 2147483648, %v1155_v53  ;;  %v1166_v63 = vand.u32 2147483647, %v1155_v53  ;;  %vm1162_vm14 = vweird.f32 %v1155_v53 }
 0x9ee   :  { %2417 = vtanh.f32 %v1148_v57 }
 0x9ef   :  { %v1169_v3 = vor.u32 1.1754944e-38, %v1168_v60  ;;  %vm1167_vm0 = vcmp.eq.f32.partialorder %v1166_v63, 8.507059e+37  ;;  %2419 = vpow2.f32 %v2220_v1  ;;  %v2233_v60 = vld [vmem:[%s3578_s7 + $0x78] sm:$0xff] }
 0x9f0   :  { %1351 = vmatpush.msrb.mxu3 %v2233_v60  ;;  %v1364_v60 = vld [vmem:[#allocation2 + $0x10] sm:$0x30] }
 0x9f3   :  { %v2416_v56 = vpop.eup %2415 }
 0x9f4   :  { %v1158_v58 = vmul.f32 %v2416_v56, %v1155_v53  ;;  %vm1163_vm10 = vweird.f32 %v2416_v56  ;;  %v2418_v9 = vpop.eup %2417 }
 0x9f5   :  { %vm1164_vm8 = vmor %vm1162_vm14, %vm1163_vm10  ;;  %v2420_v8 = vpop.eup %2419 }
 0x9f6   :  { %v1159_v59 = vsub.f32 1.0, %v1158_v58  ;;  %v1156_v13 = vadd.f32 1.0, %v2420_v8 }
 0x9f8   :  { %v1160_v62 = vmul.f32 %v2416_v56, %v1159_v59  ;;  %2421 = vrcp.f32 %v1156_v13  ;;  %v1183_v44 = vand.u32 2147483648, %v1156_v13  ;;  %vm1177_vm2 = vweird.f32 %v1156_v13 }
 0x9f9   :  { %v1181_v27 = vand.u32 2147483647, %v1156_v13 }
 0x9fa   :  { %v1161_v2 = vadd.f32 %v2416_v56, %v1160_v62  ;;  %v1184_v26 = vor.u32 1.1754944e-38, %v1183_v44  ;;  %v2226_v44 = vld [vmem:[%s3578_s7 + $0x40] sm:$0xff] }
 0x9fb   :  { %vm1182_vm5 = vcmp.eq.f32.partialorder %v1181_v27, 8.507059e+37 }
 0x9fc   :  { %v1165_v5 = vsel %vm1164_vm8, %v2416_v56, %v1161_v2 }
 0x9fd   :  { %v1170_v11 = vsel %vm1167_vm0, %v1169_v3, %v1165_v5  ;;  %v1230_v5 = vld [vmem:[#allocation2] sm:$0xc] }
 0x9fe   :  { %v1189_v0 = vmul.f32 %v2418_v9, %v1170_v11  ;;  %v2422_v17 = vpop.eup %2421  ;;  %v1188_v21 = vmul.f32 0.0, %v1170_v11 }
 0x9ff   :  { %v1173_v34 = vmul.f32 %v2422_v17, %v1156_v13  ;;  %vm1178_vm13 = vweird.f32 %v2422_v17 }
 0xa00   :  { %1191 = vrot.lane.b32.xlu0 %v1189_v0, %s2552_s3  ;;  %vm1179_vm4 = vmor %vm1177_vm2, %vm1178_vm13 }
 0xa01   :  { %v1174_v18 = vsub.f32 1.0, %v1173_v34  ;;  %v2231_v34 = vld [vmem:[%s3578_s7 + $0x68] sm:$0xff] }
 0xa03   :  { %v1175_v19 = vmul.f32 %v2422_v17, %v1174_v18  ;;  %v2230_v18 = vld [vmem:[%s3578_s7 + $0x60] sm:$0xff] }
 0xa05   :  { %v1176_v41 = vadd.f32 %v2422_v17, %v1175_v19 }
 0xa07   :  { %v1180_v45 = vsel %vm1179_vm4, %v2422_v17, %v1176_v41  ;;  %v2232_v17 = vld [vmem:[%s3578_s7 + $0x70] sm:$0xff]  ;;  %v2227_v41 = vld [vmem:[%s3578_s7 + $0x48] sm:$0xff] }
 0xa08   :  { %444 = vrot.lane.b32.xlu0 %v2876_v10, %s2552_s3  ;;  %v1199_v10 = vld [vmem:[%s3578_s7 + $0x10] sm:$0xff]  ;;  %v1185_v47 = vsel %vm1182_vm5, %v1184_v26, %v1180_v45  ;;  %1352 = vmatpush.msrb.mxu3 %v2232_v17 }
 0xa09   :  { %1221 = vmatpush.msra.mxu0 %v1199_v10 }
 0xa0a   :  { %1353 = vmatpush.msrb.mxu3 %v2231_v34 }
 0xa0b   :  { %1222 = vmatpush.msra.mxu0 %v1198_v15 }
 0xa0c   :  { %1354 = vmatpush.msrb.mxu3 %v2230_v18 }
 0xa0d   :  { %1223 = vmatpush.msra.mxu0 %v1197_v16 }
 0xa0f   :  { %1374 = vmatpush.msrb.mxu0 %v3054_v23 }
 0xa11   :  { %1375 = vmatpush.msrb.mxu0 %v3064_v14 }
 0xa13   :  { %1376 = vmatpush.msrb.mxu0 %v3076_v28 }
 0xa15   :  { %1377 = vmatpush.msrb.mxu0 %v3089_v31 }
 0xa17   :  { %1378 = vmatpush.msrb.mxu0 %v3102_v33 }
 0xa19   :  { %1379 = vmatpush.msrb.mxu0 %v3115_v36 }
 0xa1b   :  { %1380 = vmatpush.msrb.mxu0 %v3128_v38 }
 0xa1d   :  { %1381 = vmatpush.msrb.mxu0 %v3141_v40 }
 0xa72   :  { %v1192_v50 = vpop.permute.xlu0 %1191 }
 0xa73   :  { %v3223_v25 = vadd.f32 %v1192_v50, %v1188_v21  ;;  %v2229_v21 = vld [vmem:[%s3578_s7 + $0x58] sm:$0xff] }
 0xa74   :  { %1355 = vmatpush.msrb.mxu3 %v2229_v21  ;;  %v2245_v21 = vld [vmem:[%s3578_s7 + $0xb0] sm:$0xff] }
 0xa75   :  { %2423 = vtanh.f32 %v3223_v25  ;;  %v1319_v7 = vrot.slane %v3223_v25, 6  ;;  %v2228_v25 = vld [vmem:[%s3578_s7 + $0x50] sm:$0xff] }
 0xa76   :  { %1356 = vmatpush.msrb.mxu3 %v2228_v25  ;;  %v2243_v25 = vld [vmem:[%s3578_s7 + $0xa0] sm:$0xff] }
 0xa78   :  { %1357 = vmatpush.msrb.mxu3 %v2227_v41 }
 0xa7a   :  { %v445_v30 = vpop.permute.xlu0 %444  ;;  %1358 = vmatpush.msrb.mxu3 %v2226_v44  ;;  %v2242_v44 = vld [vmem:[%s3578_s7 + $0x98] sm:$0xff] }
 0xa7b   :  { %v2424_v46 = vpop.eup %2423  ;;  %448 = vst.msk [vmem:[#allocation3 + $0x6] sm:$0x30] %vm447_vm12, %v445_v30 }
 0xa7c   :  { %v1196_v48 = vmul.f32 %v2424_v46, %v1185_v47  ;;  %768 = vst.msk [vmem:[#allocation3 + $0x8] sm:$0xc] %vm329_vm3, %v2919_v12  ;;  %1509 = vmatpush.msra.mxu3 %v3054_v23 }
 0xa7e   :  { %2221 = vmatmul.msk.f32.vlgmr.msra.gmra.mxu0 %vm124_vm9, %v1196_v48  ;;  %2222 = vmatmul.msk.f32.vlgmr.msra.gmra.mxu1 %vm124_vm9, %v1196_v48 }
 0xa7f   :  { %1529 = vmatpush.msra.mxu0 %v3059_v22  ;;  %1510 = vmatpush.msra.mxu3 %v3064_v14 }
 0xa81   :  { %1530 = vmatpush.msra.mxu0 %v3071_v24  ;;  %1511 = vmatpush.msra.mxu3 %v3076_v28 }
 0xa83   :  { %v1044_v49 = vld [vmem:[#allocation3 + $0x8] sm:$0xff]  ;;  %1531 = vmatpush.msra.mxu0 %v3081_v29  ;;  %1512 = vmatpush.msra.mxu3 %v3089_v31 }
 0xa84   :  { %1069 = vmatmul.f32.gmra.mxu2 %v1044_v49  ;;  %1092 = vmatmul.f32.gmra.mxu3 %v1044_v49 }
 0xa85   :  { %1532 = vmatpush.msra.mxu0 %v3094_v32  ;;  %1513 = vmatpush.msra.mxu3 %v3102_v33 }
 0xa87   :  { %1533 = vmatpush.msra.mxu0 %v3107_v35  ;;  %1514 = vmatpush.msra.mxu3 %v3115_v36 }
 0xa89   :  { %1534 = vmatpush.msra.mxu0 %v3120_v37  ;;  %1515 = vmatpush.msra.mxu3 %v3128_v38 }
 0xa8b   :  { %1535 = vmatpush.msra.mxu0 %v3133_v39  ;;  %1516 = vmatpush.msra.mxu3 %v3141_v40 }
 0xa8c   :  { %2223 = vmatmul.msk.f32.vlgmr.msrb.gmra.mxu2 %vm124_vm9, %v1196_v48 }
 0xa8d   :  { %1536 = vmatpush.msra.mxu0 %v3146_v20 }
 0xafb   :  { %v1248_v12 = vpop.f32.mrf.mxu1 }
 0xafc   :  { %v1273_v51 = vrot.slane %v1248_v12, 6 }
 0xafe   :  { %v1277_v53 = vadd.f32 %v1273_v51, %v1229_v52 }
 0xb00   :  { %v2224_v54 = vmul.f32 -1.442695, %v1277_v53 }
 0xb02   :  { %2425 = vpow2.f32 %v2224_v54 }
 0xb07   :  { %v1070_v55 = vpop.f32.mrf.mxu2  ;;  %v1093_v56 = vpop.f32.mrf.mxu3 }
 0xb08   :  { %v2426_v57 = vpop.eup %2425  ;;  %v1071_v58 = vadd.f32 %v1070_v55, %v1046_v42  ;;  %v1094_v59 = vadd.f32 %v1093_v56, %v1047_v43 }
 0xb09   :  { %v1285_v62 = vadd.f32 1.0, %v2426_v57  ;;  %v3289_v57 = vpop.f32.mrf.mxu0 }
 0xb0a   :  { %1098 = vst [vmem:[#allocation2 + $0x18] sm:$0xff] %v1071_v58 }
 0xb0b   :  { %2427 = vrcp.f32 %v1285_v62  ;;  %1099 = vst [vmem:[#allocation2 + $0x8] sm:$0xff] %v1094_v59  ;;  %v1298_v0 = vand.u32 2147483648, %v1285_v62  ;;  %v1296_v43 = vand.u32 2147483647, %v1285_v62  ;;  %vm1292_vm6 = vweird.f32 %v1285_v62 }
 0xb0d   :  { %v1299_v4 = vor.u32 1.1754944e-38, %v1298_v0  ;;  %vm1297_vm11 = vcmp.eq.f32.partialorder %v1296_v43, 8.507059e+37 }
 0xb0f   :  { %v1268_v63 = vpop.f32.mrf.mxu2 }
 0xb10   :  { %v1274_v2 = vrot.slane %v1268_v63, 6  ;;  %v2246_v63 = vld [vmem:[%s3578_s7 + $0xb8] sm:$0xff] }
 0xb11   :  { %v2428_v3 = vpop.eup %2427  ;;  %1486 = vmatpush.msra.mxu2 %v2246_v63 }
 0xb12   :  { %v1278_v9 = vadd.f32 %v1274_v2, %v1230_v5  ;;  %v1288_v11 = vmul.f32 %v2428_v3, %v1285_v62  ;;  %vm1293_vm3 = vweird.f32 %v2428_v3 }
 0xb13   :  { %vm1294_vm7 = vmor %vm1292_vm6, %vm1293_vm3  ;;  %1487 = vmatpush.msra.mxu2 %v2245_v21 }
 0xb14   :  { %2429 = vtanh.f32 %v1278_v9  ;;  %v1289_v42 = vsub.f32 1.0, %v1288_v11  ;;  %v2225_v16 = vmul.f32 -1.442695, %v1278_v9 }
 0xb16   :  { %v1290_v61 = vmul.f32 %v2428_v3, %v1289_v42  ;;  %2431 = vpow2.f32 %v2225_v16  ;;  %v1365_v42 = vld [vmem:[#allocation2] sm:$0x30] }
 0xb18   :  { %v1291_v1 = vadd.f32 %v2428_v3, %v1290_v61 }
 0xb1a   :  { %v2430_v6 = vpop.eup %2429  ;;  %v1295_v8 = vsel %vm1294_vm7, %v2428_v3, %v1291_v1 }
 0xb1b   :  { %v1300_v10 = vsel %vm1297_vm11, %v1299_v4, %v1295_v8 }
 0xb1c   :  { %v1322_v13 = vmul.f32 %v2430_v6, %v1300_v10  ;;  %v1321_v15 = vmul.f32 %v1319_v7, %v1300_v10  ;;  %v2432_v19 = vpop.eup %2431 }
 0xb1d   :  { %v1286_v50 = vadd.f32 1.0, %v2432_v19 }
 0xb1e   :  { %1324 = vrot.lane.b32.xlu2 %v1322_v13, %s2552_s3 }
 0xb1f   :  { %2433 = vrcp.f32 %v1286_v50  ;;  %v1313_v49 = vand.u32 2147483648, %v1286_v50  ;;  %vm1307_vm15 = vweird.f32 %v1286_v50  ;;  %v1311_v12 = vand.u32 2147483647, %v1286_v50 }
 0xb21   :  { %v1314_v52 = vor.u32 1.1754944e-38, %v1313_v49  ;;  %vm1312_vm10 = vcmp.eq.f32.partialorder %v1311_v12, 8.507059e+37 }
 0xb25   :  { %v2434_v27 = vpop.eup %2433 }
 0xb26   :  { %v1303_v45 = vmul.f32 %v2434_v27, %v1286_v50  ;;  %vm1308_vm12 = vweird.f32 %v2434_v27  ;;  %v2244_v50 = vld [vmem:[%s3578_s7 + $0xa8] sm:$0xff] }
 0xb27   :  { %vm1309_vm1 = vmor %vm1307_vm15, %vm1308_vm12  ;;  %1488 = vmatpush.msra.mxu2 %v2244_v50 }
 0xb28   :  { %v1304_v26 = vsub.f32 1.0, %v1303_v45  ;;  %v2241_v45 = vld [vmem:[%s3578_s7 + $0x90] sm:$0xff] }
 0xb29   :  { %1489 = vmatpush.msra.mxu2 %v2243_v25 }
 0xb2a   :  { %v1305_v30 = vmul.f32 %v2434_v27, %v1304_v26  ;;  %v2240_v26 = vld [vmem:[%s3578_s7 + $0x88] sm:$0xff] }
 0xb2b   :  { %1490 = vmatpush.msra.mxu2 %v2242_v44 }
 0xb2c   :  { %v1306_v48 = vadd.f32 %v2434_v27, %v1305_v30  ;;  %v2239_v30 = vld [vmem:[%s3578_s7 + $0x80] sm:$0xff] }
 0xb2d   :  { %1491 = vmatpush.msra.mxu2 %v2241_v45  ;;  %v2257_v45 = vld [vmem:[%s3578_s7 + $0xe8] sm:$0xff] }
 0xb2e   :  { %v1310_v51 = vsel %vm1309_vm1, %v2434_v27, %v1306_v48 }
 0xb2f   :  { %v1315_v54 = vsel %vm1312_vm10, %v1314_v52, %v1310_v51  ;;  %1492 = vmatpush.msra.mxu2 %v2240_v26 }
 0xb31   :  { %1493 = vmatpush.msra.mxu2 %v2239_v30  ;;  %v2256_v30 = vld [vmem:[%s3578_s7 + $0xe0] sm:$0xff] }
 0xb33   :  { %1644 = vmatpush.msrb.mxu2 %v3054_v23 }
 0xb35   :  { %1645 = vmatpush.msrb.mxu2 %v3064_v14 }
 0xb37   :  { %1646 = vmatpush.msrb.mxu2 %v3076_v28 }
 0xb39   :  { %1647 = vmatpush.msrb.mxu2 %v3089_v31 }
 0xb3b   :  { %1648 = vmatpush.msrb.mxu2 %v3102_v33 }
 0xb3d   :  { %1649 = vmatpush.msrb.mxu2 %v3115_v36 }
 0xb3f   :  { %1650 = vmatpush.msrb.mxu2 %v3128_v38 }
 0xb41   :  { %1651 = vmatpush.msrb.mxu2 %v3141_v40 }
 0xb78   :  { %v1325_v46 = vpop.permute.xlu2 %1324 }
 0xb79   :  { %v1327_v47 = vadd.f32 %v1325_v46, %v1321_v15 }
 0xb7b   :  { %2435 = vtanh.f32 %v1327_v47  ;;  %v1454_v13 = vrot.slane %v1327_v47, 6 }
 0xb81   :  { %v2436_v53 = vpop.eup %2435 }
 0xb82   :  { %v1329_v55 = vmul.f32 %v2436_v53, %v1315_v54 }
 0xb84   :  { %v1340_v56 = vrot.slane %v1329_v55, 2 }
 0xb86   :  { %2234 = vmatmul.msk.f32.vlgmr.msrb.gmra.mxu3 %vm124_vm9, %v1340_v56  ;;  %2235 = vmatmul.msk.f32.vlgmr.msrb.gmra.mxu0 %vm124_vm9, %v1340_v56 }
 0xb87   :  { %2236 = vmatmul.msk.f32.vlgmr.msrb.gmra.mxu1 %vm124_vm9, %v1340_v56  ;;  %1664 = vmatpush.msrb.mxu3 %v3059_v22 }
 0xb89   :  { %1665 = vmatpush.msrb.mxu3 %v3071_v24 }
 0xb8b   :  { %1666 = vmatpush.msrb.mxu3 %v3081_v29 }
 0xb8d   :  { %1667 = vmatpush.msrb.mxu3 %v3094_v32 }
 0xb8f   :  { %1668 = vmatpush.msrb.mxu3 %v3107_v35 }
 0xb91   :  { %1669 = vmatpush.msrb.mxu3 %v3120_v37 }
 0xb93   :  { %1670 = vmatpush.msrb.mxu3 %v3133_v39 }
 0xb95   :  { %1671 = vmatpush.msrb.mxu3 %v3146_v20 }
 0xc03   :  { %v1383_v58 = vpop.f32.mrf.mxu0 }
 0xc04   :  { %v1408_v59 = vrot.slane %v1383_v58, 4  ;;  %v1403_v9 = vpop.f32.mrf.mxu1 }
 0xc05   :  { %v1409_v11 = vrot.slane %v1403_v9, 4 }
 0xc06   :  { %v1412_v62 = vadd.f32 %v1408_v59, %v1364_v60 }
 0xc07   :  { %v1413_v61 = vadd.f32 %v1409_v11, %v1365_v42  ;;  %v2259_v11 = vld [vmem:[%s3578_s7 + $0xf8] sm:$0xff] }
 0xc08   :  { %v2237_v2 = vmul.f32 -1.442695, %v1412_v62  ;;  %1621 = vmatpush.msra.mxu1 %v2259_v11 }
 0xc09   :  { %v2238_v19 = vmul.f32 -1.442695, %v1413_v61  ;;  %v3335_v63 = vpop.f32.mrf.mxu3 }
 0xc0a   :  { %2437 = vpow2.f32 %v2237_v2 }
 0xc10   :  { %v2438_v3 = vpop.eup %2437 }
 0xc11   :  { %v1420_v5 = vadd.f32 1.0, %v2438_v3 }
 0xc13   :  { %2439 = vrcp.f32 %v1420_v5  ;;  %v1433_v4 = vand.u32 2147483648, %v1420_v5  ;;  %v1431_v7 = vand.u32 2147483647, %v1420_v5  ;;  %vm1427_vm8 = vweird.f32 %v1420_v5 }
 0xc14   :  { %2441 = vtanh.f32 %v1413_v61 }
 0xc15   :  { %v1434_v10 = vor.u32 1.1754944e-38, %v1433_v4  ;;  %vm1432_vm13 = vcmp.eq.f32.partialorder %v1431_v7, 8.507059e+37  ;;  %2443 = vpow2.f32 %v2238_v19  ;;  %v1500_v4 = vld [vmem:[#allocation2] sm:$0xc0] }
 0xc19   :  { %v2440_v0 = vpop.eup %2439 }
 0xc1a   :  { %v1423_v43 = vmul.f32 %v2440_v0, %v1420_v5  ;;  %vm1428_vm14 = vweird.f32 %v2440_v0  ;;  %v2442_v16 = vpop.eup %2441  ;;  %v1499_v5 = vld [vmem:[#allocation2 + $0x10] sm:$0xc0] }
 0xc1b   :  { %vm1429_vm0 = vmor %vm1427_vm8, %vm1428_vm14  ;;  %v2444_v41 = vpop.eup %2443 }
 0xc1c   :  { %v1424_v1 = vsub.f32 1.0, %v1423_v43  ;;  %v1421_v27 = vadd.f32 1.0, %v2444_v41 }
 0xc1e   :  { %v1425_v6 = vmul.f32 %v2440_v0, %v1424_v1  ;;  %2445 = vrcp.f32 %v1421_v27  ;;  %v1448_v53 = vand.u32 2147483648, %v1421_v27  ;;  %vm1442_vm4 = vweird.f32 %v1421_v27 }
 0xc1f   :  { %v1446_v54 = vand.u32 2147483647, %v1421_v27 }
 0xc20   :  { %v1426_v8 = vadd.f32 %v2440_v0, %v1425_v6  ;;  %v1449_v56 = vor.u32 1.1754944e-38, %v1448_v53 }
 0xc21   :  { %vm1447_vm3 = vcmp.eq.f32.partialorder %v1446_v54, 8.507059e+37 }
 0xc22   :  { %v1430_v15 = vsel %vm1429_vm0, %v2440_v0, %v1426_v8 }
 0xc23   :  { %v1435_v17 = vsel %vm1432_vm13, %v1434_v10, %v1430_v15 }
 0xc24   :  { %v1457_v34 = vmul.f32 %v2442_v16, %v1435_v17  ;;  %v1456_v18 = vmul.f32 %v1454_v13, %v1435_v17  ;;  %v2446_v46 = vpop.eup %2445 }
 0xc25   :  { %v1438_v47 = vmul.f32 %v2446_v46, %v1421_v27  ;;  %vm1443_vm2 = vweird.f32 %v2446_v46  ;;  %v2258_v27 = vld [vmem:[%s3578_s7 + $0xf0] sm:$0xff] }
 0xc26   :  { %1459 = vrot.lane.b32.xlu0 %v1457_v34, %s2552_s3  ;;  %vm1444_vm5 = vmor %vm1442_vm4, %vm1443_vm2  ;;  %1622 = vmatpush.msra.mxu1 %v2258_v27  ;;  %v2268_v27 = vld [vmem:[%s3578_s7 + $0x118] sm:$0xff] }
 0xc27   :  { %v1439_v48 = vsub.f32 1.0, %v1438_v47 }
 0xc28   :  { %1623 = vmatpush.msra.mxu1 %v2257_v45  ;;  %v2267_v45 = vld [vmem:[%s3578_s7 + $0x110] sm:$0xff] }
 0xc29   :  { %v1440_v49 = vmul.f32 %v2446_v46, %v1439_v48  ;;  %v2254_v48 = vld [vmem:[%s3578_s7 + $0xd0] sm:$0xff] }
 0xc2a   :  { %1624 = vmatpush.msra.mxu1 %v2256_v30  ;;  %v2266_v30 = vld [vmem:[%s3578_s7 + $0x108] sm:$0xff] }
 0xc2b   :  { %v1441_v52 = vadd.f32 %v2446_v46, %v1440_v49  ;;  %v2253_v49 = vld [vmem:[%s3578_s7 + $0xc8] sm:$0xff] }
 0xc2d   :  { %v1445_v55 = vsel %vm1444_vm5, %v2446_v46, %v1441_v52  ;;  %v2255_v46 = vld [vmem:[%s3578_s7 + $0xd8] sm:$0xff] }
 0xc2e   :  { %v1450_v59 = vsel %vm1447_vm3, %v1449_v56, %v1445_v55  ;;  %1625 = vmatpush.msra.mxu1 %v2255_v46  ;;  %v2265_v46 = vld [vmem:[%s3578_s7 + $0x100] sm:$0xff] }
 0xc30   :  { %1626 = vmatpush.msra.mxu1 %v2254_v48 }
 0xc32   :  { %1627 = vmatpush.msra.mxu1 %v2253_v49 }
 0xc98   :  { %v1460_v12 = vpop.permute.xlu0 %1459 }
 0xc99   :  { %v1462_v51 = vadd.f32 %v1460_v12, %v1456_v18  ;;  %v2252_v12 = vld [vmem:[%s3578_s7 + $0xc0] sm:$0xff] }
 0xc9a   :  { %1628 = vmatpush.msra.mxu1 %v2252_v12 }
 0xc9b   :  { %2447 = vtanh.f32 %v1462_v51  ;;  %v1589_v18 = vrot.slane %v1462_v51, 6 }
 0xc9c   :  { %1772 = vmatpush.msrb.mxu1 %v3054_v23 }
 0xc9e   :  { %1773 = vmatpush.msrb.mxu1 %v3064_v14 }
 0xca0   :  { %1774 = vmatpush.msrb.mxu1 %v3076_v28 }
 0xca1   :  { %v2448_v58 = vpop.eup %2447 }
 0xca2   :  { %v1464_v60 = vmul.f32 %v2448_v58, %v1450_v59  ;;  %1775 = vmatpush.msrb.mxu1 %v3089_v31 }
 0xca4   :  { %v1475_v62 = vrot.slane %v1464_v60, 4  ;;  %1776 = vmatpush.msrb.mxu1 %v3102_v33 }
 0xca6   :  { %2247 = vmatmul.msk.f32.vlgmr.msra.gmra.mxu2 %vm124_vm9, %v1475_v62  ;;  %2248 = vmatmul.msk.f32.vlgmr.msra.gmra.mxu3 %vm124_vm9, %v1475_v62 }
 0xca7   :  { %2249 = vmatmul.msk.f32.vlgmr.msra.gmra.mxu0 %vm124_vm9, %v1475_v62  ;;  %1792 = vmatpush.msra.mxu2 %v3059_v22 }
 0xca8   :  { %1777 = vmatpush.msrb.mxu1 %v3115_v36 }
 0xca9   :  { %1793 = vmatpush.msra.mxu2 %v3071_v24 }
 0xcaa   :  { %1778 = vmatpush.msrb.mxu1 %v3128_v38 }
 0xcab   :  { %1794 = vmatpush.msra.mxu2 %v3081_v29 }
 0xcac   :  { %1779 = vmatpush.msrb.mxu1 %v3141_v40 }
 0xcad   :  { %1795 = vmatpush.msra.mxu2 %v3094_v32 }
 0xcaf   :  { %1796 = vmatpush.msra.mxu2 %v3107_v35 }
 0xcb1   :  { %1797 = vmatpush.msra.mxu2 %v3120_v37 }
 0xcb3   :  { %1798 = vmatpush.msra.mxu2 %v3133_v39 }
 0xcb5   :  { %1799 = vmatpush.msra.mxu2 %v3146_v20 }
 0xd24   :  { %v1538_v43 = vpop.f32.mrf.mxu0 }
 0xd25   :  { %v1544_v1 = vrot.slane %v1538_v43, 2 }
 0xd27   :  { %v1548_v7 = vadd.f32 %v1544_v1, %v1500_v4 }
 0xd29   :  { %v1518_v2 = vpop.f32.mrf.mxu3  ;;  %v2251_v44 = vmul.f32 -1.442695, %v1548_v7 }
 0xd2a   :  { %v1543_v3 = vrot.slane %v1518_v2, 2 }
 0xd2c   :  { %v1547_v9 = vadd.f32 %v1543_v3, %v1499_v5 }
 0xd2e   :  { %v2250_v42 = vmul.f32 -1.442695, %v1547_v9 }
 0xd30   :  { %2449 = vpow2.f32 %v2250_v42  ;;  %v3381_v42 = vpop.f32.mrf.mxu2 }
 0xd36   :  { %v2450_v0 = vpop.eup %2449 }
 0xd37   :  { %v1555_v61 = vadd.f32 1.0, %v2450_v0  ;;  %v1634_v0 = vld [vmem:[#allocation2 + $0x18] sm:$0x3] }
 0xd39   :  { %2451 = vrcp.f32 %v1555_v61  ;;  %v1568_v13 = vand.u32 2147483648, %v1555_v61  ;;  %v1566_v16 = vand.u32 2147483647, %v1555_v61  ;;  %vm1562_vm7 = vweird.f32 %v1555_v61 }
 0xd3a   :  { %2453 = vtanh.f32 %v1548_v7 }
 0xd3b   :  { %v1569_v34 = vor.u32 1.1754944e-38, %v1568_v13  ;;  %vm1567_vm12 = vcmp.eq.f32.partialorder %v1566_v16, 8.507059e+37  ;;  %2455 = vpow2.f32 %v2251_v44 }
 0xd3f   :  { %v2452_v6 = vpop.eup %2451 }
 0xd40   :  { %v1558_v8 = vmul.f32 %v2452_v6, %v1555_v61  ;;  %vm1563_vm6 = vweird.f32 %v2452_v6  ;;  %v2454_v21 = vpop.eup %2453 }
 0xd41   :  { %vm1564_vm11 = vmor %vm1562_vm7, %vm1563_vm6  ;;  %v2456_v26 = vpop.eup %2455 }
 0xd42   :  { %v1559_v10 = vsub.f32 1.0, %v1558_v8  ;;  %v1556_v47 = vadd.f32 1.0, %v2456_v26 }
 0xd44   :  { %v1560_v15 = vmul.f32 %v2452_v6, %v1559_v10  ;;  %2457 = vrcp.f32 %v1556_v47  ;;  %v1583_v59 = vand.u32 2147483648, %v1556_v47  ;;  %vm1577_vm1 = vweird.f32 %v1556_v47 }
 0xd45   :  { %v1581_v60 = vand.u32 2147483647, %v1556_v47 }
 0xd46   :  { %v1561_v17 = vadd.f32 %v2452_v6, %v1560_v15  ;;  %v1584_v2 = vor.u32 1.1754944e-38, %v1583_v59  ;;  %v2514_v59 = vld [vmem:[%s3576_s5 + $0x28] sm:$0xff] }
 0xd47   :  { %vm1582_vm14 = vcmp.eq.f32.partialorder %v1581_v60, 8.507059e+37  ;;  %v2515_v60 = vld [vmem:[%s3576_s5 + $0x18] sm:$0xff] }
 0xd48   :  { %v1565_v19 = vsel %vm1564_vm11, %v2452_v6, %v1561_v17 }
 0xd49   :  { %v1570_v50 = vsel %vm1567_vm12, %v1569_v34, %v1565_v19 }
 0xd4a   :  { %v1592_v25 = vmul.f32 %v2454_v21, %v1570_v50  ;;  %v1591_v41 = vmul.f32 %v1589_v18, %v1570_v50  ;;  %v2458_v51 = vpop.eup %2457 }
 0xd4b   :  { %v1573_v52 = vmul.f32 %v2458_v51, %v1556_v47  ;;  %vm1578_vm15 = vweird.f32 %v2458_v51 }
 0xd4c   :  { %1594 = vrot.lane.b32.xlu1 %v1592_v25, %s2552_s3  ;;  %vm1579_vm10 = vmor %vm1577_vm1, %vm1578_vm15  ;;  %v2270_v25 = vld [vmem:[%s3578_s7 + $0x128] sm:$0xff] }
 0xd4d   :  { %v1574_v53 = vsub.f32 1.0, %v1573_v52 }
 0xd4f   :  { %v1575_v54 = vmul.f32 %v2458_v51, %v1574_v53 }
 0xd51   :  { %v1576_v58 = vadd.f32 %v2458_v51, %v1575_v54  ;;  %v2510_v54 = vld [vmem:[%s3576_s5 + $0x68] sm:$0xff] }
 0xd53   :  { %v1580_v62 = vsel %vm1579_vm10, %v2458_v51, %v1576_v58  ;;  %v2513_v58 = vld [vmem:[%s3576_s5 + $0x38] sm:$0xff] }
 0xd54   :  { %v1585_v5 = vsel %vm1582_vm14, %v1584_v2, %v1580_v62  ;;  %v2516_v62 = vld [vmem:[%s3576_s5 + $0x8] sm:$0xff] }
 0xdbe   :  { %v1595_v55 = vpop.permute.xlu1 %1594 }
 0xdbf   :  { %v1597_v56 = vadd.f32 %v1595_v55, %v1591_v41  ;;  %v2269_v41 = vld [vmem:[%s3578_s7 + $0x120] sm:$0xff]  ;;  %v2511_v55 = vld [vmem:[%s3576_s5 + $0x58] sm:$0xff] }
 0xdc1   :  { %2459 = vtanh.f32 %v1597_v56  ;;  %v1718_v16 = vrot.slane %v1597_v56, 6  ;;  %v2512_v56 = vld [vmem:[%s3576_s5 + $0x48] sm:$0xff] }
 0xdc7   :  { %v2460_v3 = vpop.eup %2459 }
 0xdc8   :  { %v1599_v9 = vmul.f32 %v2460_v3, %v1585_v5 }
 0xdca   :  { %v1610_v11 = vrot.slane %v1599_v9, 6  ;;  %v1762_v9 = vld [vmem:[#allocation2 + $0x18] sm:$0xc] }
 0xdcc   :  { %2260 = vmatmul.msk.f32.vlgmr.msra.gmra.mxu1 %vm124_vm9, %v1610_v11  ;;  %2261 = vmatmul.msk.f32.vlgmr.msrb.gmra.mxu2 %vm124_vm9, %v1610_v11 }
 0xdcd   :  { %2262 = vmatmul.msk.f32.vlgmr.msrb.gmra.mxu3 %vm124_vm9, %v1610_v11  ;;  %1927 = vmatpush.msra.mxu1 %v3059_v22  ;;  %v2272_v22 = vld [vmem:[%s3578_s7 + $0x138] sm:$0xff] }
 0xdce   :  { %1749 = vmatpush.msrb.mxu0 %v2272_v22 }
 0xdcf   :  { %1928 = vmatpush.msra.mxu1 %v3071_v24  ;;  %v2271_v24 = vld [vmem:[%s3578_s7 + $0x130] sm:$0xff] }
 0xdd0   :  { %1750 = vmatpush.msrb.mxu0 %v2271_v24 }
 0xdd1   :  { %1929 = vmatpush.msra.mxu1 %v3081_v29 }
 0xdd2   :  { %1751 = vmatpush.msrb.mxu0 %v2270_v25  ;;  %v2282_v25 = vld [vmem:[%s3578_s7 + $0x160] sm:$0xff] }
 0xdd3   :  { %1930 = vmatpush.msra.mxu1 %v3094_v32 }
 0xdd4   :  { %1752 = vmatpush.msrb.mxu0 %v2269_v41  ;;  %v2281_v41 = vld [vmem:[%s3578_s7 + $0x158] sm:$0xff] }
 0xdd5   :  { %1931 = vmatpush.msra.mxu1 %v3107_v35 }
 0xdd6   :  { %1753 = vmatpush.msrb.mxu0 %v2268_v27  ;;  %v2280_v27 = vld [vmem:[%s3578_s7 + $0x150] sm:$0xff] }
 0xdd7   :  { %1932 = vmatpush.msra.mxu1 %v3120_v37 }
 0xdd8   :  { %1754 = vmatpush.msrb.mxu0 %v2267_v45  ;;  %v2279_v45 = vld [vmem:[%s3578_s7 + $0x148] sm:$0xff] }
 0xdd9   :  { %1933 = vmatpush.msra.mxu1 %v3133_v39  ;;  %v1635_v39 = vld [vmem:[#allocation2 + $0x8] sm:$0x3] }
 0xdda   :  { %1755 = vmatpush.msrb.mxu0 %v2266_v30  ;;  %v2517_v30 = vld [vmem:[%s3576_s5 + $0x70] sm:$0xff] }
 0xddb   :  { %1934 = vmatpush.msra.mxu1 %v3146_v20 }
 0xddc   :  { %1756 = vmatpush.msrb.mxu0 %v2265_v46  ;;  %v2518_v46 = vld [vmem:[%s3576_s5 + $0x60] sm:$0xff] }
 0xdde   :  { %1907 = vmatpush.msra.mxu0 %v3054_v23 }
 0xde0   :  { %1908 = vmatpush.msra.mxu0 %v3064_v14 }
 0xde2   :  { %1909 = vmatpush.msra.mxu0 %v3076_v28 }
 0xde4   :  { %1910 = vmatpush.msra.mxu0 %v3089_v31 }
 0xde6   :  { %1911 = vmatpush.msra.mxu0 %v3102_v33 }
 0xde8   :  { %1912 = vmatpush.msra.mxu0 %v3115_v36 }
 0xdea   :  { %1913 = vmatpush.msra.mxu0 %v3128_v38 }
 0xdec   :  { %1914 = vmatpush.msra.mxu0 %v3141_v40  ;;  %v2509_v40 = vld [vmem:[%s3576_s5 + $0x78] sm:$0xff] }
 0xe49   :  { %v3446_v2 = vpop.f32.mrf.mxu1 }
 0xe4f   :  { %v1653_v61 = vpop.f32.mrf.mxu2 }
 0xe50   :  { %v1676_v43 = vadd.f32 %v1653_v61, %v1634_v0  ;;  %v1673_v37 = vpop.f32.mrf.mxu3  ;;  %v2285_v0 = vld [vmem:[%s3578_s7 + $0x178] sm:$0xff] }
 0xe51   :  { %v1677_v1 = vadd.f32 %v1673_v37, %v1635_v39  ;;  %1884 = vmatpush.msra.mxu3 %v2285_v0  ;;  %v2298_v0 = vld [vmem:[%s3578_s7 + $0x1b8] sm:$0xff] }
 0xe52   :  { %v2263_v29 = vmul.f32 -1.442695, %v1676_v43  ;;  %2019 = vmatpush.msrb.mxu2 %v2298_v0 }
 0xe53   :  { %v2264_v50 = vmul.f32 -1.442695, %v1677_v1 }
 0xe54   :  { %2461 = vpow2.f32 %v2263_v29 }
 0xe5a   :  { %v2462_v32 = vpop.eup %2461 }
 0xe5b   :  { %v1684_v35 = vadd.f32 1.0, %v2462_v32  ;;  %v1763_v32 = vld [vmem:[#allocation2 + $0x8] sm:$0xc] }
 0xe5d   :  { %2463 = vrcp.f32 %v1684_v35  ;;  %v1697_v7 = vand.u32 2147483648, %v1684_v35  ;;  %v1695_v10 = vand.u32 2147483647, %v1684_v35  ;;  %vm1691_vm0 = vweird.f32 %v1684_v35 }
 0xe5e   :  { %2465 = vtanh.f32 %v1677_v1 }
 0xe5f   :  { %v1698_v15 = vor.u32 1.1754944e-38, %v1697_v7  ;;  %vm1696_vm2 = vcmp.eq.f32.partialorder %v1695_v10, 8.507059e+37  ;;  %2467 = vpow2.f32 %v2264_v50 }
 0xe63   :  { %v2464_v20 = vpop.eup %2463 }
 0xe64   :  { %v1687_v4 = vmul.f32 %v2464_v20, %v1684_v35  ;;  %vm1692_vm8 = vweird.f32 %v2464_v20  ;;  %v2466_v34 = vpop.eup %2465 }
 0xe65   :  { %vm1693_vm13 = vmor %vm1691_vm0, %vm1692_vm8  ;;  %v2468_v44 = vpop.eup %2467 }
 0xe66   :  { %v1688_v6 = vsub.f32 1.0, %v1687_v4  ;;  %v1685_v26 = vadd.f32 1.0, %v2468_v44 }
 0xe68   :  { %v1689_v8 = vmul.f32 %v2464_v20, %v1688_v6  ;;  %2469 = vrcp.f32 %v1685_v26  ;;  %v1712_v28 = vand.u32 2147483648, %v1685_v26  ;;  %vm1706_vm5 = vweird.f32 %v1685_v26 }
 0xe69   :  { %v1710_v31 = vand.u32 2147483647, %v1685_v26 }
 0xe6a   :  { %v1690_v13 = vadd.f32 %v2464_v20, %v1689_v8  ;;  %v1713_v52 = vor.u32 1.1754944e-38, %v1712_v28  ;;  %v2523_v28 = vld [vmem:[%s3576_s5 + $0x10] sm:$0xff] }
 0xe6b   :  { %vm1711_vm6 = vcmp.eq.f32.partialorder %v1710_v31, 8.507059e+37 }
 0xe6c   :  { %v1694_v17 = vsel %vm1693_vm13, %v2464_v20, %v1690_v13 }
 0xe6d   :  { %v1699_v18 = vsel %vm1696_vm2, %v1698_v15, %v1694_v17 }
 0xe6e   :  { %v1721_v19 = vmul.f32 %v2466_v34, %v1699_v18  ;;  %v1720_v21 = vmul.f32 %v1718_v16, %v1699_v18  ;;  %v2470_v47 = vpop.eup %2469 }
 0xe6f   :  { %v1702_v48 = vmul.f32 %v2470_v47, %v1685_v26  ;;  %vm1707_vm4 = vweird.f32 %v2470_v47  ;;  %v2278_v26 = vld [vmem:[%s3578_s7 + $0x140] sm:$0xff] }
 0xe70   :  { %1723 = vrot.lane.b32.xlu2 %v1721_v19, %s2552_s3  ;;  %vm1708_vm3 = vmor %vm1706_vm5, %vm1707_vm4  ;;  %v2284_v19 = vld [vmem:[%s3578_s7 + $0x170] sm:$0xff] }
 0xe71   :  { %v1703_v49 = vsub.f32 1.0, %v1702_v48  ;;  %1885 = vmatpush.msra.mxu3 %v2284_v19  ;;  %v2519_v48 = vld [vmem:[%s3576_s5 + $0x50] sm:$0xff] }
 0xe72   :  { %v2297_v19 = vld [vmem:[%s3578_s7 + $0x1b0] sm:$0xff] }
 0xe73   :  { %v1704_v12 = vmul.f32 %v2470_v47, %v1703_v49  ;;  %2020 = vmatpush.msrb.mxu2 %v2297_v19  ;;  %v2305_v19 = vld [vmem:[%s3578_s7 + $0x1c8] sm:$0xff] }
 0xe75   :  { %v1705_v14 = vadd.f32 %v2470_v47, %v1704_v12  ;;  %v2520_v12 = vld [vmem:[%s3576_s5 + $0x40] sm:$0xff] }
 0xe77   :  { %v1709_v33 = vsel %vm1708_vm3, %v2470_v47, %v1705_v14  ;;  %v2522_v14 = vld [vmem:[%s3576_s5 + $0x20] sm:$0xff] }
 0xe78   :  { %v1714_v53 = vsel %vm1711_vm6, %v1713_v52, %v1709_v33  ;;  %v2524_v33 = vld [vmem:[%s3576_s5] sm:$0xff] }
 0xeca   :  { %v1724_v51 = vpop.permute.xlu2 %1723 }
 0xecb   :  { %v3416_v23 = vadd.f32 %v1724_v51, %v1720_v21  ;;  %v2283_v21 = vld [vmem:[%s3578_s7 + $0x168] sm:$0xff]  ;;  %v2521_v51 = vld [vmem:[%s3576_s5 + $0x30] sm:$0xff] }
 0xecc   :  { %1886 = vmatpush.msra.mxu3 %v2283_v21  ;;  %v2296_v21 = vld [vmem:[%s3578_s7 + $0x1a8] sm:$0xff] }
 0xecd   :  { %2471 = vtanh.f32 %v3416_v23  ;;  %v1852_v10 = vrot.slane %v3416_v23, 6  ;;  %2021 = vmatpush.msrb.mxu2 %v2296_v21  ;;  %v2304_v21 = vld [vmem:[%s3578_s7 + $0x1c0] sm:$0xff] }
 0xece   :  { %1887 = vmatpush.msra.mxu3 %v2282_v25  ;;  %v2295_v25 = vld [vmem:[%s3578_s7 + $0x1a0] sm:$0xff] }
 0xecf   :  { %2022 = vmatpush.msrb.mxu2 %v2295_v25 }
 0xed0   :  { %1888 = vmatpush.msra.mxu3 %v2281_v41  ;;  %v2294_v41 = vld [vmem:[%s3578_s7 + $0x198] sm:$0xff] }
 0xed1   :  { %2023 = vmatpush.msrb.mxu2 %v2294_v41 }
 0xed2   :  { %1889 = vmatpush.msra.mxu3 %v2280_v27  ;;  %v2293_v27 = vld [vmem:[%s3578_s7 + $0x190] sm:$0xff] }
 0xed3   :  { %v2472_v36 = vpop.eup %2471  ;;  %2024 = vmatpush.msrb.mxu2 %v2293_v27 }
 0xed4   :  { %v1728_v38 = vmul.f32 %v2472_v36, %v1714_v53  ;;  %1890 = vmatpush.msra.mxu3 %v2279_v45  ;;  %v2292_v45 = vld [vmem:[%s3578_s7 + $0x188] sm:$0xff] }
 0xed5   :  { %2025 = vmatpush.msrb.mxu2 %v2292_v45 }
 0xed6   :  { %2273 = vmatmul.msk.f32.vlgmr.msrb.gmra.mxu0 %vm124_vm9, %v1728_v38  ;;  %2274 = vmatmul.msk.f32.vlgmr.msrb.gmra.mxu1 %vm124_vm9, %v1728_v38 }
 0xed7   :  { %2275 = vmatmul.msk.f32.vlgmr.msra.gmra.mxu2 %vm124_vm9, %v1728_v38  ;;  %2062 = vmatpush.msrb.mxu0 %v2509_v40 }
 0xed8   :  { %1891 = vmatpush.msra.mxu3 %v2278_v26  ;;  %v2291_v26 = vld [vmem:[%s3578_s7 + $0x180] sm:$0xff] }
 0xed9   :  { %2063 = vmatpush.msrb.mxu0 %v2510_v54  ;;  %2026 = vmatpush.msrb.mxu2 %v2291_v26 }
 0xeda   :  { %2042 = vmatpush.msrb.mxu3 %v2517_v30 }
 0xedb   :  { %2064 = vmatpush.msrb.mxu0 %v2511_v55 }
 0xedc   :  { %2043 = vmatpush.msrb.mxu3 %v2518_v46 }
 0xedd   :  { %2065 = vmatpush.msrb.mxu0 %v2512_v56 }
 0xede   :  { %2044 = vmatpush.msrb.mxu3 %v2519_v48 }
 0xedf   :  { %2066 = vmatpush.msrb.mxu0 %v2513_v58 }
 0xee0   :  { %2045 = vmatpush.msrb.mxu3 %v2520_v12 }
 0xee1   :  { %2067 = vmatpush.msrb.mxu0 %v2514_v59 }
 0xee2   :  { %2046 = vmatpush.msrb.mxu3 %v2521_v51 }
 0xee3   :  { %2068 = vmatpush.msrb.mxu0 %v2515_v60 }
 0xee4   :  { %2047 = vmatpush.msrb.mxu3 %v2522_v14 }
 0xee5   :  { %2069 = vmatpush.msrb.mxu0 %v2516_v62 }
 0xee6   :  { %2048 = vmatpush.msrb.mxu3 %v2523_v28 }
 0xee8   :  { %2049 = vmatpush.msrb.mxu3 %v2524_v33 }
 0xf53   :  { %v1781_v3 = vpop.f32.mrf.mxu1  ;;  %v3501_v62 = vpop.f32.mrf.mxu0 }
 0xf54   :  { %v1806_v5 = vrot.slane %v1781_v3, 6 }
 0xf56   :  { %v1810_v11 = vadd.f32 %v1806_v5, %v1762_v9  ;;  %v1897_v9 = vld [vmem:[#allocation2 + $0x18] sm:$0x30] }
 0xf58   :  { %v2276_v61 = vmul.f32 -1.442695, %v1810_v11 }
 0xf5a   :  { %2473 = vpow2.f32 %v2276_v61  ;;  %v1801_v24 = vpop.f32.mrf.mxu2 }
 0xf5b   :  { %v1807_v29 = vrot.slane %v1801_v24, 6 }
 0xf5d   :  { %v1811_v37 = vadd.f32 %v1807_v29, %v1763_v32  ;;  %v1898_v32 = vld [vmem:[#allocation2 + $0x8] sm:$0x30] }
 0xf5f   :  { %v2277_v18 = vmul.f32 -1.442695, %v1811_v37 }
 0xf60   :  { %v2474_v43 = vpop.eup %2473 }
 0xf61   :  { %v1818_v22 = vadd.f32 1.0, %v2474_v43 }
 0xf63   :  { %2475 = vrcp.f32 %v1818_v22  ;;  %v1831_v1 = vand.u32 2147483648, %v1818_v22  ;;  %v1829_v6 = vand.u32 2147483647, %v1818_v22  ;;  %vm1825_vm11 = vweird.f32 %v1818_v22 }
 0xf64   :  { %2477 = vtanh.f32 %v1811_v37 }
 0xf65   :  { %v1832_v8 = vor.u32 1.1754944e-38, %v1831_v1  ;;  %vm1830_vm15 = vcmp.eq.f32.partialorder %v1829_v6, 8.507059e+37  ;;  %2479 = vpow2.f32 %v2277_v18 }
 0xf69   :  { %v2476_v35 = vpop.eup %2475 }
 0xf6a   :  { %v1821_v39 = vmul.f32 %v2476_v35, %v1818_v22  ;;  %vm1826_vm7 = vweird.f32 %v2476_v35  ;;  %v2478_v15 = vpop.eup %2477 }
 0xf6b   :  { %vm1827_vm12 = vmor %vm1825_vm11, %vm1826_vm7  ;;  %v2480_v50 = vpop.eup %2479 }
 0xf6c   :  { %v1822_v20 = vsub.f32 1.0, %v1821_v39  ;;  %v1819_v44 = vadd.f32 1.0, %v2480_v50 }
 0xf6e   :  { %v1823_v4 = vmul.f32 %v2476_v35, %v1822_v20  ;;  %2481 = vrcp.f32 %v1819_v44  ;;  %v1846_v38 = vand.u32 2147483648, %v1819_v44  ;;  %vm1840_vm10 = vweird.f32 %v1819_v44 }
 0xf6f   :  { %v1844_v40 = vand.u32 2147483647, %v1819_v44 }
 0xf70   :  { %v1824_v7 = vadd.f32 %v2476_v35, %v1823_v4  ;;  %v1847_v55 = vor.u32 1.1754944e-38, %v1846_v38 }
 0xf71   :  { %vm1845_vm8 = vcmp.eq.f32.partialorder %v1844_v40, 8.507059e+37 }
 0xf72   :  { %v1828_v13 = vsel %vm1827_vm12, %v2476_v35, %v1824_v7 }
 0xf73   :  { %v1833_v16 = vsel %vm1830_vm15, %v1832_v8, %v1828_v13 }
 0xf74   :  { %v1855_v17 = vmul.f32 %v2478_v15, %v1833_v16  ;;  %v1854_v34 = vmul.f32 %v1852_v10, %v1833_v16  ;;  %v2482_v47 = vpop.eup %2481 }
 0xf75   :  { %v1836_v49 = vmul.f32 %v2482_v47, %v1819_v44  ;;  %vm1841_vm1 = vweird.f32 %v2482_v47 }
 0xf76   :  { %1857 = vrot.lane.b32.xlu0 %v1855_v17, %s2552_s3  ;;  %vm1842_vm14 = vmor %vm1840_vm10, %vm1841_vm1 }
 0xf77   :  { %v1837_v23 = vsub.f32 1.0, %v1836_v49 }
 0xf79   :  { %v1838_v31 = vmul.f32 %v2482_v47, %v1837_v23 }
 0xf7b   :  { %v1839_v53 = vadd.f32 %v2482_v47, %v1838_v31 }
 0xf7d   :  { %v1843_v54 = vsel %vm1842_vm14, %v2482_v47, %v1839_v53 }
 0xf7e   :  { %v1848_v58 = vsel %vm1845_vm8, %v1847_v55, %v1843_v54  ;;  %v2032_v55 = vld [vmem:[#allocation2 + $0x18] sm:$0xc0] }
 0xfe8   :  { %v1858_v52 = vpop.permute.xlu0 %1857 }
 0xfe9   :  { %v1860_v36 = vadd.f32 %v1858_v52, %v1854_v34 }
 0xfeb   :  { %2483 = vtanh.f32 %v1860_v36  ;;  %v1987_v10 = vrot.slane %v1860_v36, 6 }
 0xff1   :  { %v2484_v56 = vpop.eup %2483 }
 0xff2   :  { %v1862_v59 = vmul.f32 %v2484_v56, %v1848_v58  ;;  %v2311_v58 = vld [vmem:[%s3578_s7 + $0x1f8] sm:$0xff] }
 0xff3   :  { %2154 = vmatpush.msrb.mxu1 %v2311_v58 }
 0xff4   :  { %v1873_v60 = vrot.slane %v1862_v59, 2 }
 0xff6   :  { %2286 = vmatmul.msk.f32.vlgmr.msra.gmra.mxu3 %vm124_vm9, %v1873_v60  ;;  %2287 = vmatmul.msk.f32.vlgmr.msra.gmra.mxu0 %vm124_vm9, %v1873_v60 }
 0xff7   :  { %2288 = vmatmul.msk.f32.vlgmr.msra.gmra.mxu1 %vm124_vm9, %v1873_v60 }
0x1073   :  { %v1916_v3 = vpop.f32.mrf.mxu0 }
0x1074   :  { %v1941_v5 = vrot.slane %v1916_v3, 4  ;;  %v1936_v24 = vpop.f32.mrf.mxu1 }
0x1075   :  { %v1942_v29 = vrot.slane %v1936_v24, 4 }
0x1076   :  { %v1945_v11 = vadd.f32 %v1941_v5, %v1897_v9 }
0x1077   :  { %v1946_v37 = vadd.f32 %v1942_v29, %v1898_v32 }
0x1078   :  { %v2289_v61 = vmul.f32 -1.442695, %v1945_v11  ;;  %v2033_v11 = vld [vmem:[#allocation2 + $0x8] sm:$0xc0] }
0x1079   :  { %v2290_v18 = vmul.f32 -1.442695, %v1946_v37  ;;  %v3531_v38 = vpop.f32.mrf.mxu3 }
0x107a   :  { %2485 = vpow2.f32 %v2289_v61 }
0x1080   :  { %v2486_v43 = vpop.eup %2485 }
0x1081   :  { %v1953_v22 = vadd.f32 1.0, %v2486_v43 }
0x1083   :  { %2487 = vrcp.f32 %v1953_v22  ;;  %v1966_v1 = vand.u32 2147483648, %v1953_v22  ;;  %v1964_v6 = vand.u32 2147483647, %v1953_v22  ;;  %vm1960_vm13 = vweird.f32 %v1953_v22 }
0x1084   :  { %2489 = vtanh.f32 %v1946_v37 }
0x1085   :  { %v1967_v8 = vor.u32 1.1754944e-38, %v1966_v1  ;;  %vm1965_vm4 = vcmp.eq.f32.partialorder %v1964_v6, 8.507059e+37  ;;  %2491 = vpow2.f32 %v2290_v18  ;;  %v2306_v18 = vld [vmem:[%s3578_s7 + $0x1d0] sm:$0xff] }
0x1089   :  { %v2488_v35 = vpop.eup %2487 }
0x108a   :  { %v1956_v39 = vmul.f32 %v2488_v35, %v1953_v22  ;;  %vm1961_vm0 = vweird.f32 %v2488_v35  ;;  %v2490_v15 = vpop.eup %2489 }
0x108b   :  { %vm1962_vm2 = vmor %vm1960_vm13, %vm1961_vm0  ;;  %v2492_v50 = vpop.eup %2491 }
0x108c   :  { %v1957_v20 = vsub.f32 1.0, %v1956_v39  ;;  %v1954_v44 = vadd.f32 1.0, %v2492_v50 }
0x108e   :  { %v1958_v4 = vmul.f32 %v2488_v35, %v1957_v20  ;;  %2493 = vrcp.f32 %v1954_v44  ;;  %v1981_v23 = vand.u32 2147483648, %v1954_v44  ;;  %vm1975_vm3 = vweird.f32 %v1954_v44 }
0x108f   :  { %v1979_v14 = vand.u32 2147483647, %v1954_v44 }
0x1090   :  { %v1959_v7 = vadd.f32 %v2488_v35, %v1958_v4  ;;  %v1982_v31 = vor.u32 1.1754944e-38, %v1981_v23 }
0x1091   :  { %vm1980_vm7 = vcmp.eq.f32.partialorder %v1979_v14, 8.507059e+37  ;;  %v2316_v14 = vld [vmem:[%s3579_s8] ss:$0 sm:$0xff] }
0x1092   :  { %v1963_v13 = vsel %vm1962_vm2, %v2488_v35, %v1959_v7 }
0x1093   :  { %v1968_v16 = vsel %vm1965_vm4, %v1967_v8, %v1963_v13  ;;  %v2309_v13 = vld [vmem:[%s3578_s7 + $0x1e8] sm:$0xff] }
0x1094   :  { %v1990_v17 = vmul.f32 %v2490_v15, %v1968_v16  ;;  %v1989_v34 = vmul.f32 %v1987_v10, %v1968_v16  ;;  %v2494_v30 = vpop.eup %2493  ;;  %v2310_v10 = vld [vmem:[%s3578_s7 + $0x1f0] sm:$0xff]  ;;  %v2308_v16 = vld [vmem:[%s3578_s7 + $0x1e0] sm:$0xff] }
0x1095   :  { %v1971_v46 = vmul.f32 %v2494_v30, %v1954_v44  ;;  %vm1976_vm5 = vweird.f32 %v2494_v30  ;;  %2155 = vmatpush.msrb.mxu1 %v2310_v10 }
0x1096   :  { %1992 = vrot.lane.b32.xlu1 %v1990_v17, %s2552_s3  ;;  %vm1977_vm6 = vmor %vm1975_vm3, %vm1976_vm5  ;;  %v2307_v17 = vld [vmem:[%s3578_s7 + $0x1d8] sm:$0xff] }
0x1097   :  { %v1972_v47 = vsub.f32 1.0, %v1971_v46  ;;  %2156 = vmatpush.msrb.mxu1 %v2309_v13 }
0x1099   :  { %v1973_v48 = vmul.f32 %v2494_v30, %v1972_v47  ;;  %2157 = vmatpush.msrb.mxu1 %v2308_v16 }
0x109b   :  { %v1974_v51 = vadd.f32 %v2494_v30, %v1973_v48  ;;  %2158 = vmatpush.msrb.mxu1 %v2307_v17 }
0x109d   :  { %v1978_v28 = vsel %vm1977_vm6, %v2494_v30, %v1974_v51  ;;  %2159 = vmatpush.msrb.mxu1 %v2306_v18 }
0x109e   :  { %v1983_v52 = vsel %vm1980_vm7, %v1982_v31, %v1978_v28  ;;  %v1228_v28 = vadd.f32 %v2316_v14, %v3289_v57 }
0x109f   :  { %2160 = vmatpush.msrb.mxu1 %v2305_v19 }
0x10a0   :  { %v1363_v31 = vadd.f32 %v3335_v63, %v1228_v28 }
0x10a1   :  { %2161 = vmatpush.msrb.mxu1 %v2304_v21 }
0x1108   :  { %v1993_v49 = vpop.permute.xlu1 %1992 }
0x1109   :  { %v1995_v12 = vadd.f32 %v1993_v49, %v1989_v34 }
0x110b   :  { %2495 = vtanh.f32 %v1995_v12  ;;  %v2122_v39 = vrot.slane %v1995_v12, 6 }
0x1111   :  { %v2496_v33 = vpop.eup %2495 }
0x1112   :  { %v1997_v36 = vmul.f32 %v2496_v33, %v1983_v52  ;;  %v1498_v33 = vadd.f32 %v3381_v42, %v1363_v31 }
0x1114   :  { %v2008_v53 = vrot.slane %v1997_v36, 4  ;;  %v1633_v52 = vadd.f32 %v3446_v2, %v1498_v33 }
0x1116   :  { %2299 = vmatmul.msk.f32.vlgmr.msrb.gmra.mxu2 %vm124_vm9, %v2008_v53  ;;  %2300 = vmatmul.msk.f32.vlgmr.msrb.gmra.mxu3 %vm124_vm9, %v2008_v53  ;;  %v1761_v36 = vadd.f32 %v3501_v62, %v1633_v52 }
0x1117   :  { %2301 = vmatmul.msk.f32.vlgmr.msrb.gmra.mxu0 %vm124_vm9, %v2008_v53 }
0x1194   :  { %v2071_v5 = vpop.f32.mrf.mxu0 }
0x1195   :  { %v2077_v9 = vrot.slane %v2071_v5, 2 }
0x1197   :  { %v2081_v61 = vadd.f32 %v2077_v9, %v2033_v11 }
0x1199   :  { %v2051_v40 = vpop.f32.mrf.mxu3  ;;  %v2303_v8 = vmul.f32 -1.442695, %v2081_v61  ;;  %v2028_v53 = vpop.f32.mrf.mxu2 }
0x119a   :  { %v2076_v54 = vrot.slane %v2051_v40, 2  ;;  %v1896_v40 = vadd.f32 %v3531_v38, %v1761_v36 }
0x119c   :  { %v2080_v56 = vadd.f32 %v2076_v54, %v2032_v55  ;;  %v2031_v54 = vadd.f32 %v2028_v53, %v1896_v40 }
0x119e   :  { %v2302_v59 = vmul.f32 -1.442695, %v2080_v56 }
0x11a0   :  { %2497 = vpow2.f32 %v2302_v59 }
0x11a6   :  { %v2498_v60 = vpop.eup %2497 }
0x11a7   :  { %v2088_v3 = vadd.f32 1.0, %v2498_v60 }
0x11a9   :  { %2499 = vrcp.f32 %v2088_v3  ;;  %v2101_v24 = vand.u32 2147483648, %v2088_v3  ;;  %v2099_v32 = vand.u32 2147483647, %v2088_v3  ;;  %vm2095_vm12 = vweird.f32 %v2088_v3 }
0x11aa   :  { %2501 = vtanh.f32 %v2081_v61 }
0x11ab   :  { %v2102_v37 = vor.u32 1.1754944e-38, %v2101_v24  ;;  %vm2100_vm1 = vcmp.eq.f32.partialorder %v2099_v32, 8.507059e+37  ;;  %2503 = vpow2.f32 %v2303_v8 }
0x11af   :  { %v2500_v0 = vpop.eup %2499 }
0x11b0   :  { %v2091_v43 = vmul.f32 %v2500_v0, %v2088_v3  ;;  %vm2096_vm11 = vweird.f32 %v2500_v0  ;;  %v2502_v1 = vpop.eup %2501 }
0x11b1   :  { %vm2097_vm15 = vmor %vm2095_vm12, %vm2096_vm11  ;;  %v2504_v15 = vpop.eup %2503 }
0x11b2   :  { %v2092_v22 = vsub.f32 1.0, %v2091_v43  ;;  %v2089_v34 = vadd.f32 1.0, %v2504_v15 }
0x11b4   :  { %v2093_v29 = vmul.f32 %v2500_v0, %v2092_v22  ;;  %2505 = vrcp.f32 %v2089_v34  ;;  %v2116_v30 = vand.u32 2147483648, %v2089_v34  ;;  %vm2110_vm14 = vweird.f32 %v2089_v34 }
0x11b5   :  { %v2114_v46 = vand.u32 2147483647, %v2089_v34 }
0x11b6   :  { %v2094_v35 = vadd.f32 %v2500_v0, %v2093_v29  ;;  %v2117_v48 = vor.u32 1.1754944e-38, %v2116_v30 }
0x11b7   :  { %vm2115_vm0 = vcmp.eq.f32.partialorder %v2114_v46, 8.507059e+37 }
0x11b8   :  { %v2098_v20 = vsel %vm2097_vm15, %v2500_v0, %v2094_v35 }
0x11b9   :  { %v2103_v4 = vsel %vm2100_vm1, %v2102_v37, %v2098_v20 }
0x11ba   :  { %v2125_v6 = vmul.f32 %v2502_v1, %v2103_v4  ;;  %v2124_v7 = vmul.f32 %v2122_v39, %v2103_v4  ;;  %v2506_v50 = vpop.eup %2505 }
0x11bb   :  { %v2106_v25 = vmul.f32 %v2506_v50, %v2089_v34  ;;  %vm2111_vm10 = vweird.f32 %v2506_v50 }
0x11bc   :  { %2127 = vrot.lane.b32.xlu2 %v2125_v6, %s2552_s3  ;;  %vm2112_vm8 = vmor %vm2110_vm14, %vm2111_vm10 }
0x11bd   :  { %v2107_v41 = vsub.f32 1.0, %v2106_v25 }
0x11bf   :  { %v2108_v44 = vmul.f32 %v2506_v50, %v2107_v41 }
0x11c1   :  { %v2109_v26 = vadd.f32 %v2506_v50, %v2108_v44 }
0x11c3   :  { %v2113_v47 = vsel %vm2112_vm8, %v2506_v50, %v2109_v26 }
0x11c4   :  { %v2118_v12 = vsel %vm2115_vm0, %v2117_v48, %v2113_v47 }
0x1216   :  { %v2128_v27 = vpop.permute.xlu2 %2127 }
0x1217   :  { %v2130_v45 = vadd.f32 %v2128_v27, %v2124_v7 }
0x1219   :  { %2507 = vtanh.f32 %v2130_v45 }
0x121f   :  { %v2508_v49 = vpop.eup %2507 }
0x1220   :  { %v2132_v51 = vmul.f32 %v2508_v49, %v2118_v12 }
0x1222   :  { %v2143_v23 = vrot.slane %v2132_v51, 6 }
0x1224   :  { %2312 = vmatmul.msk.f32.vlgmr.msrb.gmra.mxu1 %vm124_vm9, %v2143_v23  ;;  %vm2167_vm9 = vcmask 9216  }
0x12a1   :  { %v2163_v55 = vpop.f32.mrf.mxu1 }
0x12a2   :  { %v2166_v57 = vadd.f32 %v2163_v55, %v2031_v54 }
0x12a4   :  { %2168 = vst.msk [vmem:[#allocation4] sm:$0x3] %vm2167_vm9, %v2166_v57 }
0x12a5   :  { %2179 = dma.vmem_to_hbm [thread:$0]  %s2175_s20, 32, %s2177_s23, [#allocation5]  }
0x12a6   :  { %2549 = dma.done.wait [#allocation5], 32  }
0x12a7   :  { %2550 = vsyncadd [#allocation5], 4294967264 }
0x12a8   :  { %2184 = vsyncpa [#allocation5], 1 }

</bundles_post_ra>
